<compile_context>
chip_gen: v7x
topology: tpu7x:2x2x1
jax: 0.10.0
libtpu: 0.0.40
codegen_flags: <defaults>
</compile_context>

<pallas_src>
import jax
import jax.numpy as jnp
from jax import lax
from jax.experimental import pallas as pl
from jax.experimental.pallas import tpu as pltpu


def _round_up(x, m):
    return (x + m - 1) // m * m


def _make_kernel(radii, nsamples, n_channels, chunk, tile_m):
    """Fused multi-scale ball-query + group + max-pool kernel body."""
    radii2 = [float(r) * float(r) for r in radii]     # python floats (safe to close over)
    caps = [float(int(n)) for n in nsamples]
    num_scales = len(radii2)
    c_total = n_channels * num_scales
    NEG = -3.0e38                                     # python literal, NOT a jnp constant

    def kernel(tri_ref, qt_ref, qb_ref, x_ref, xb_ref, f_ref, o_ref, acc_ref, cnt_ref):
        j = pl.program_id(1)                          # chunk index along the support axis

        @pl.when(j == 0)
        def _init():
            acc_ref[...] = jnp.full((c_total, tile_m), NEG, jnp.float32)
            cnt_ref[...] = jnp.zeros((num_scales, tile_m), jnp.float32)

        qt = qt_ref[...]          # (3, tile_m)   query xyz, transposed (queries on lanes)
        qb = qb_ref[...]          # (1, tile_m)   query batch id (f32)
        xc = x_ref[...]           # (chunk, 3)    support xyz chunk
        xb = xb_ref[...]          # (chunk, 1)    support batch id (f32)
        fc = f_ref[...]           # (chunk, C)    support features chunk
        tri = tri_ref[...]        # (chunk, chunk) bf16 lower-triangular (incl. diagonal)

        # Squared distance support->query, pure VPU broadcast (matches CUDA ball_query).
        dx = xc[:, 0:1] - qt[0:1, :]
        dy = xc[:, 1:2] - qt[1:2, :]
        dz = xc[:, 2:3] - qt[2:3, :]
        d2 = dx * dx + dy * dy + dz * dz              # (chunk, tile_m)
        same_batch = xb == qb                         # (chunk, tile_m)

        for s in range(num_scales):                   # unrolled, shares d2 / same_batch
            in_ball = (d2 < radii2[s]) & same_batch
            # Chunk-local inclusive prefix count of hits along the point axis (MXU, bf16
            # 0/1 inputs, f32 accumulation -> exact integers).
            prefix = jnp.dot(tri, in_ball.astype(jnp.bfloat16),
                             preferred_element_type=jnp.float32)   # (chunk, tile_m)
            carry = cnt_ref[s:s + 1, :]                             # hits in earlier chunks
            sel = in_ball & ((carry + prefix) <= caps[s])           # first `nsample` hits
            cnt_ref[s:s + 1, :] = carry + prefix[chunk - 1:chunk, :]

            # Running masked max over the selected neighbors, all channels of this scale.
            rows = []
            for c in range(n_channels):
                vals = jnp.where(sel, fc[:, c:c + 1], NEG)          # (chunk, tile_m)
                rows.append(jnp.max(vals, axis=0, keepdims=True))   # (1, tile_m)
            mx = jnp.concatenate(rows, axis=0)                      # (C, tile_m)
            lo, hi = s * n_channels, (s + 1) * n_channels
            acc_ref[lo:hi, :] = jnp.maximum(acc_ref[lo:hi, :], mx)

        @pl.when(j == pl.num_programs(1) - 1)
        def _finalize():
            for s in range(num_scales):
                lo, hi = s * n_channels, (s + 1) * n_channels
                has = cnt_ref[s:s + 1, :] > 0.0                     # empty ball -> zeros
                o_ref[lo:hi, :] = jnp.where(has, acc_ref[lo:hi, :], 0.0)

    return kernel


def stack_point_feature(xyz, xyz_batch_cnt, new_xyz, new_xyz_batch_cnt, features,
                        *, radii, nsamples, pool_method="max_pool",
                        tile_m=128, chunk=128):
    """JAX/Pallas equivalent of StackPointFeature.forward (stacked point-cloud layout)."""
    assert len(radii) == len(nsamples)
    if pool_method != "max_pool":
        # TODO(synk): avg_pool branch (F.avg_pool2d over repeated-pad samples) not implemented.
        raise NotImplementedError("only max_pool is implemented")

    N, C = features.shape
    M = new_xyz.shape[0]
    num_scales = len(radii)
    c_total = C * num_scales

    # Per-point batch ids from the stacked batch counts (counts are static Python ints).
    xyz_bid = jnp.concatenate([jnp.full((int(n),), i, jnp.float32)
                               for i, n in enumerate(xyz_batch_cnt)])
    new_bid = jnp.concatenate([jnp.full((int(n),), i, jnp.float32)
                               for i, n in enumerate(new_xyz_batch_cnt)])

    Np = _round_up(N, chunk)
    Mp = _round_up(M, tile_m)

    # Support points: pad with batch id -1 so padded points never match a real query.
    x_pad = jnp.zeros((Np, 3), jnp.float32).at[:N].set(xyz.astype(jnp.float32))
    xb_pad = jnp.full((Np, 1), -1.0, jnp.float32).at[:N, 0].set(xyz_bid)
    f_pad = jnp.zeros((Np, C), jnp.float32).at[:N].set(features.astype(jnp.float32))

    # Queries transposed so the query axis sits on the 128-wide lane dimension.
    qt_pad = jnp.zeros((3, Mp), jnp.float32).at[:, :M].set(new_xyz.astype(jnp.float32).T)
    qb_pad = jnp.full((1, Mp), -2.0, jnp.float32).at[0, :M].set(new_bid)

    # Small fixed chunk-local lower-triangular prefix matrix (bf16 0/1 -> exact counts).
    row = lax.broadcasted_iota(jnp.int32, (chunk, chunk), 0)
    col = lax.broadcasted_iota(jnp.int32, (chunk, chunk), 1)
    tri = (col <= row).astype(jnp.bfloat16)

    kernel = _make_kernel(radii, nsamples, C, chunk, tile_m)
    out_t = pl.pallas_call(
        kernel,
        out_shape=jax.ShapeDtypeStruct((c_total, Mp), jnp.float32),
        grid_spec=pltpu.PrefetchScalarGridSpec(
            num_scalar_prefetch=0,
            grid=(Mp // tile_m, Np // chunk),          # queries parallel, chunks innermost
            in_specs=[
                pl.BlockSpec((chunk, chunk), lambda i, j: (0, 0)),   # tri (tiny, resident)
                pl.BlockSpec((3, tile_m), lambda i, j: (0, i)),      # new_xyz^T tile
                pl.BlockSpec((1, tile_m), lambda i, j: (0, i)),      # query batch id tile
                pl.BlockSpec((chunk, 3), lambda i, j: (j, 0)),       # xyz chunk
                pl.BlockSpec((chunk, 1), lambda i, j: (j, 0)),       # xyz batch id chunk
                pl.BlockSpec((chunk, C), lambda i, j: (j, 0)),       # features chunk
            ],
            out_specs=pl.BlockSpec((c_total, tile_m), lambda i, j: (0, i)),
            scratch_shapes=[pltpu.VMEM((c_total, tile_m), jnp.float32),     # running max
                            pltpu.VMEM((num_scales, tile_m), jnp.float32)],  # hit counts
        ),
        compiler_params=pltpu.CompilerParams(
            dimension_semantics=("parallel", "arbitrary"),
            vmem_limit_bytes=32 * 1024 * 1024),
    )(tri, qt_pad, qb_pad, x_pad, xb_pad, f_pad)

    new_features = out_t[:, :M].T                      # (M, C * num_scales)
    return new_xyz, new_features


def _reference(xyz, xyz_bid, new_xyz, new_bid, features, radii, nsamples):
    """Pure-JAX reference of the same semantics (for correctness check)."""
    diff = new_xyz[:, None, :] - xyz[None, :, :]
    d2 = diff[..., 0] ** 2 + diff[..., 1] ** 2 + diff[..., 2] ** 2          # (M, N)
    same = new_bid[:, None] == xyz_bid[None, :]
    outs = []
    for radius, nsample in zip(radii, nsamples):
        mask = (d2 < radius * radius) & same
        prefix = jnp.cumsum(mask.astype(jnp.int32), axis=-1)
        sel = mask & (prefix <= nsample)
        vals = jnp.where(sel[:, :, None], features[None, :, :], -3.0e38)
        mx = jnp.max(vals, axis=1)                                          # (M, C)
        total = jnp.sum(mask, axis=-1, keepdims=True)
        outs.append(jnp.where(total > 0, mx, 0.0))
    return jnp.concatenate(outs, axis=1)


if __name__ == "__main__":
    key = jax.random.PRNGKey(0)
    k1, k2, k3 = jax.random.split(key, 3)

    # Small shapes consistent with the stacked-point-cloud interface (padded internally).
    N, M, C = 200, 250, 8
    xyz_batch_cnt = [120, 80]        # N1 + N2 = 200
    new_xyz_batch_cnt = [130, 120]   # M1 + M2 = 250
    radii = [0.5, 1.0]
    nsamples = [8, 16]

    xyz = jax.random.uniform(k1, (N, 3), jnp.float32, 0.0, 3.0)
    new_xyz = jax.random.uniform(k2, (M, 3), jnp.float32, 0.0, 3.0)
    features = jax.random.normal(k3, (N, C), jnp.float32)

    out_xyz, out_feat = stack_point_feature(
        xyz, xyz_batch_cnt, new_xyz, new_xyz_batch_cnt, features,
        radii=radii, nsamples=nsamples, pool_method="max_pool",
        tile_m=128, chunk=128)
    out_feat = jax.block_until_ready(out_feat)

    # Correctness check against a pure-JAX reference.
    xyz_bid = jnp.concatenate([jnp.full((int(n),), i, jnp.float32)
                               for i, n in enumerate(xyz_batch_cnt)])
    new_bid = jnp.concatenate([jnp.full((int(n),), i, jnp.float32)
                               for i, n in enumerate(new_xyz_batch_cnt)])
    ref = _reference(xyz, xyz_bid, new_xyz, new_bid, features, radii, nsamples)
    assert out_feat.shape == (M, C * len(radii))
    err = float(jnp.max(jnp.abs(out_feat - ref)))
    assert jnp.allclose(out_feat, ref, atol=1e-5), err

    print("KERNEL_OK")
</pallas_src>

<mosaic_0001>
module attributes {stable_mosaic.version = 11 : i64} {
  func.func @kernel(%arg0: i32, %arg1: i32, %arg2: memref<128x128xbf16, #tpu.memory_space<vmem>>, %arg3: memref<3x128xf32, #tpu.memory_space<vmem>>, %arg4: memref<1x128xf32, #tpu.memory_space<vmem>>, %arg5: memref<128x3xf32, #tpu.memory_space<vmem>>, %arg6: memref<128x1xf32, #tpu.memory_space<vmem>>, %arg7: memref<128x8xf32, #tpu.memory_space<vmem>>, %arg8: memref<16x128xf32, #tpu.memory_space<vmem>>, %arg9: memref<16x128xf32, #tpu.memory_space<vmem>>, %arg10: memref<2x128xf32, #tpu.memory_space<vmem>>) attributes {dimension_semantics = [#tpu.dimension_semantics<parallel>, #tpu.dimension_semantics<arbitrary>], iteration_bounds = array<i64: 2, 2>, scalar_prefetch = 0 : i64, scratch_operands = 2 : i64, tpu.core_type = #tpu.core_type<tc>, window_params = [{pipeline_mode = #tpu.pipeline_mode<synchronous>, transform_indices = @transform_0, window_bounds = array<i64: 128, 128>}, {transform_indices = @transform_1, window_bounds = array<i64: 3, 128>}, {transform_indices = @transform_2, window_bounds = array<i64: 1, 128>}, {transform_indices = @transform_3, window_bounds = array<i64: 128, 3>}, {transform_indices = @transform_4, window_bounds = array<i64: 128, 1>}, {transform_indices = @transform_5, window_bounds = array<i64: 128, 8>}, {transform_indices = @transform_6, window_bounds = array<i64: 16, 128>}]} {
    %c0_i32 = arith.constant 0 : i32
    %0 = arith.cmpi eq, %arg1, %c0_i32 : i32
    %1 = arith.extui %0 : i1 to i32
    %c0_i32_0 = arith.constant 0 : i32
    %2 = arith.cmpi ne, %1, %c0_i32_0 : i32
    scf.if %2 {
      %cst_64 = arith.constant -3.000000e+38 : f32
      %187 = vector.broadcast %cst_64 : f32 to vector<16x128xf32>
      %c0_65 = arith.constant 0 : index
      %c0_66 = arith.constant 0 : index
      %188 = vector.load %arg9[%c0_65, %c0_66] : memref<16x128xf32, #tpu.memory_space<vmem>>, vector<16x128xf32>
      tpu.vector_store %arg9[%c0_65, %c0_66], %187 {strides = array<i32>} : memref<16x128xf32, #tpu.memory_space<vmem>>, vector<16x128xf32>,
      %cst_67 = arith.constant 0.000000e+00 : f32
      %189 = vector.broadcast %cst_67 : f32 to vector<2x128xf32>
      %c0_68 = arith.constant 0 : index
      %c0_69 = arith.constant 0 : index
      %190 = vector.load %arg10[%c0_68, %c0_69] : memref<2x128xf32, #tpu.memory_space<vmem>>, vector<2x128xf32>
      tpu.vector_store %arg10[%c0_68, %c0_69], %189 {strides = array<i32>} : memref<2x128xf32, #tpu.memory_space<vmem>>, vector<2x128xf32>,
    } else {
    }
    %c0 = arith.constant 0 : index
    %c0_1 = arith.constant 0 : index
    %3 = vector.load %arg3[%c0, %c0_1] : memref<3x128xf32, #tpu.memory_space<vmem>>, vector<3x128xf32>
    %c0_2 = arith.constant 0 : index
    %c0_3 = arith.constant 0 : index
    %4 = vector.load %arg4[%c0_2, %c0_3] : memref<1x128xf32, #tpu.memory_space<vmem>>, vector<1x128xf32>
    %c0_4 = arith.constant 0 : index
    %c0_5 = arith.constant 0 : index
    %5 = vector.load %arg5[%c0_4, %c0_5] : memref<128x3xf32, #tpu.memory_space<vmem>>, vector<128x3xf32>
    %c0_6 = arith.constant 0 : index
    %c0_7 = arith.constant 0 : index
    %6 = vector.load %arg6[%c0_6, %c0_7] : memref<128x1xf32, #tpu.memory_space<vmem>>, vector<128x1xf32>
    %c0_8 = arith.constant 0 : index
    %c0_9 = arith.constant 0 : index
    %7 = vector.load %arg7[%c0_8, %c0_9] : memref<128x8xf32, #tpu.memory_space<vmem>>, vector<128x8xf32>
    %c0_10 = arith.constant 0 : index
    %c0_11 = arith.constant 0 : index
    %8 = vector.load %arg2[%c0_10, %c0_11] : memref<128x128xbf16, #tpu.memory_space<vmem>>, vector<128x128xbf16>
    %9 = vector.extract_strided_slice %5 {offsets = [0, 0], sizes = [128, 1], strides = [1, 1]} : vector<128x3xf32> to vector<128x1xf32>
    %10 = vector.extract_strided_slice %3 {offsets = [0, 0], sizes = [1, 128], strides = [1, 1]} : vector<3x128xf32> to vector<1x128xf32>
    %11 = vector.broadcast %9 : vector<128x1xf32> to vector<128x128xf32>
    %12 = vector.broadcast %10 : vector<1x128xf32> to vector<128x128xf32>
    %13 = arith.subf %11, %12 : vector<128x128xf32>
    %14 = vector.extract_strided_slice %5 {offsets = [0, 1], sizes = [128, 1], strides = [1, 1]} : vector<128x3xf32> to vector<128x1xf32>
    %15 = vector.extract_strided_slice %3 {offsets = [1, 0], sizes = [1, 128], strides = [1, 1]} : vector<3x128xf32> to vector<1x128xf32>
    %16 = vector.broadcast %14 : vector<128x1xf32> to vector<128x128xf32>
    %17 = vector.broadcast %15 : vector<1x128xf32> to vector<128x128xf32>
    %18 = arith.subf %16, %17 : vector<128x128xf32>
    %19 = vector.extract_strided_slice %5 {offsets = [0, 2], sizes = [128, 1], strides = [1, 1]} : vector<128x3xf32> to vector<128x1xf32>
    %20 = vector.extract_strided_slice %3 {offsets = [2, 0], sizes = [1, 128], strides = [1, 1]} : vector<3x128xf32> to vector<1x128xf32>
    %21 = vector.broadcast %19 : vector<128x1xf32> to vector<128x128xf32>
    %22 = vector.broadcast %20 : vector<1x128xf32> to vector<128x128xf32>
    %23 = arith.subf %21, %22 : vector<128x128xf32>
    %24 = arith.mulf %13, %13 : vector<128x128xf32>
    %25 = arith.mulf %18, %18 : vector<128x128xf32>
    %26 = arith.addf %24, %25 : vector<128x128xf32>
    %27 = arith.mulf %23, %23 : vector<128x128xf32>
    %28 = arith.addf %26, %27 : vector<128x128xf32>
    %29 = vector.broadcast %6 : vector<128x1xf32> to vector<128x128xf32>
    %30 = vector.broadcast %4 : vector<1x128xf32> to vector<128x128xf32>
    %31 = arith.cmpf oeq, %29, %30 : vector<128x128xf32>
    %cst = arith.constant 2.500000e-01 : f32
    %32 = vector.broadcast %cst : f32 to vector<128x128xf32>
    %33 = arith.cmpf olt, %28, %32 : vector<128x128xf32>
    %34 = arith.andi %33, %31 : vector<128x128xi1>
    %35 = arith.extui %34 : vector<128x128xi1> to vector<128x128xi32>
    %36 = arith.sitofp %35 : vector<128x128xi32> to vector<128x128xf32>
    %37 = arith.truncf %36 : vector<128x128xf32> to vector<128x128xbf16>
    %cst_12 = arith.constant dense<0.000000e+00> : vector<128x128xf32>
    %38 = tpu.matmul %8, %37, %cst_12 {dimension_numbers = #tpu.dot_dimension_numbers<[1], [0], [0], [1], [0, 0, 1, 1], [], []>} : vector<128x128xbf16>, vector<128x128xbf16>, vector<128x128xf32> -> vector<128x128xf32>
    %c0_13 = arith.constant 0 : index
    %c0_14 = arith.constant 0 : index
    %39 = vector.load %arg10[%c0_13, %c0_14] : memref<2x128xf32, #tpu.memory_space<vmem>>, vector<1x128xf32>
    %40 = vector.broadcast %39 : vector<1x128xf32> to vector<128x128xf32>
    %41 = arith.addf %40, %38 : vector<128x128xf32>
    %cst_15 = arith.constant 8.000000e+00 : f32
    %42 = vector.broadcast %cst_15 : f32 to vector<128x128xf32>
    %43 = arith.cmpf ole, %41, %42 : vector<128x128xf32>
    %44 = arith.andi %34, %43 : vector<128x128xi1>
    %45 = vector.extract_strided_slice %38 {offsets = [127, 0], sizes = [1, 128], strides = [1, 1]} : vector<128x128xf32> to vector<1x128xf32>
    %46 = arith.addf %39, %45 : vector<1x128xf32>
    %c0_16 = arith.constant 0 : index
    %c0_17 = arith.constant 0 : index
    %47 = vector.load %arg10[%c0_16, %c0_17] : memref<2x128xf32, #tpu.memory_space<vmem>>, vector<1x128xf32>
    tpu.vector_store %arg10[%c0_16, %c0_17], %46 {strides = array<i32>} : memref<2x128xf32, #tpu.memory_space<vmem>>, vector<1x128xf32>,
    %48 = vector.extract_strided_slice %7 {offsets = [0, 0], sizes = [128, 1], strides = [1, 1]} : vector<128x8xf32> to vector<128x1xf32>
    %cst_18 = arith.constant -3.000000e+38 : f32
    %49 = vector.shape_cast %48 : vector<128x1xf32> to vector<128x1xf32>
    %50 = vector.broadcast %49 : vector<128x1xf32> to vector<128x128xf32>
    %51 = vector.broadcast %cst_18 : f32 to vector<128x128xf32>
    %52 = arith.select %44, %50, %51 : vector<128x128xi1>, vector<128x128xf32>
    %cst_19 = arith.constant dense<0xFF800000> : vector<128xf32>
    %53 = vector.multi_reduction <maximumf>, %52, %cst_19 [0] : vector<128x128xf32> to vector<128xf32>
    %54 = vector.shape_cast %53 : vector<128xf32> to vector<1x128xf32>
    %55 = vector.extract_strided_slice %7 {offsets = [0, 1], sizes = [128, 1], strides = [1, 1]} : vector<128x8xf32> to vector<128x1xf32>
    %cst_20 = arith.constant -3.000000e+38 : f32
    %56 = vector.shape_cast %55 : vector<128x1xf32> to vector<128x1xf32>
    %57 = vector.broadcast %56 : vector<128x1xf32> to vector<128x128xf32>
    %58 = vector.broadcast %cst_20 : f32 to vector<128x128xf32>
    %59 = arith.select %44, %57, %58 : vector<128x128xi1>, vector<128x128xf32>
    %cst_21 = arith.constant dense<0xFF800000> : vector<128xf32>
    %60 = vector.multi_reduction <maximumf>, %59, %cst_21 [0] : vector<128x128xf32> to vector<128xf32>
    %61 = vector.shape_cast %60 : vector<128xf32> to vector<1x128xf32>
    %62 = vector.extract_strided_slice %7 {offsets = [0, 2], sizes = [128, 1], strides = [1, 1]} : vector<128x8xf32> to vector<128x1xf32>
    %cst_22 = arith.constant -3.000000e+38 : f32
    %63 = vector.shape_cast %62 : vector<128x1xf32> to vector<128x1xf32>
    %64 = vector.broadcast %63 : vector<128x1xf32> to vector<128x128xf32>
    %65 = vector.broadcast %cst_22 : f32 to vector<128x128xf32>
    %66 = arith.select %44, %64, %65 : vector<128x128xi1>, vector<128x128xf32>
    %cst_23 = arith.constant dense<0xFF800000> : vector<128xf32>
    %67 = vector.multi_reduction <maximumf>, %66, %cst_23 [0] : vector<128x128xf32> to vector<128xf32>
    %68 = vector.shape_cast %67 : vector<128xf32> to vector<1x128xf32>
    %69 = vector.extract_strided_slice %7 {offsets = [0, 3], sizes = [128, 1], strides = [1, 1]} : vector<128x8xf32> to vector<128x1xf32>
    %cst_24 = arith.constant -3.000000e+38 : f32
    %70 = vector.shape_cast %69 : vector<128x1xf32> to vector<128x1xf32>
    %71 = vector.broadcast %70 : vector<128x1xf32> to vector<128x128xf32>
    %72 = vector.broadcast %cst_24 : f32 to vector<128x128xf32>
    %73 = arith.select %44, %71, %72 : vector<128x128xi1>, vector<128x128xf32>
    %cst_25 = arith.constant dense<0xFF800000> : vector<128xf32>
    %74 = vector.multi_reduction <maximumf>, %73, %cst_25 [0] : vector<128x128xf32> to vector<128xf32>
    %75 = vector.shape_cast %74 : vector<128xf32> to vector<1x128xf32>
    %76 = vector.extract_strided_slice %7 {offsets = [0, 4], sizes = [128, 1], strides = [1, 1]} : vector<128x8xf32> to vector<128x1xf32>
    %cst_26 = arith.constant -3.000000e+38 : f32
    %77 = vector.shape_cast %76 : vector<128x1xf32> to vector<128x1xf32>
    %78 = vector.broadcast %77 : vector<128x1xf32> to vector<128x128xf32>
    %79 = vector.broadcast %cst_26 : f32 to vector<128x128xf32>
    %80 = arith.select %44, %78, %79 : vector<128x128xi1>, vector<128x128xf32>
    %cst_27 = arith.constant dense<0xFF800000> : vector<128xf32>
    %81 = vector.multi_reduction <maximumf>, %80, %cst_27 [0] : vector<128x128xf32> to vector<128xf32>
    %82 = vector.shape_cast %81 : vector<128xf32> to vector<1x128xf32>
    %83 = vector.extract_strided_slice %7 {offsets = [0, 5], sizes = [128, 1], strides = [1, 1]} : vector<128x8xf32> to vector<128x1xf32>
    %cst_28 = arith.constant -3.000000e+38 : f32
    %84 = vector.shape_cast %83 : vector<128x1xf32> to vector<128x1xf32>
    %85 = vector.broadcast %84 : vector<128x1xf32> to vector<128x128xf32>
    %86 = vector.broadcast %cst_28 : f32 to vector<128x128xf32>
    %87 = arith.select %44, %85, %86 : vector<128x128xi1>, vector<128x128xf32>
    %cst_29 = arith.constant dense<0xFF800000> : vector<128xf32>
    %88 = vector.multi_reduction <maximumf>, %87, %cst_29 [0] : vector<128x128xf32> to vector<128xf32>
    %89 = vector.shape_cast %88 : vector<128xf32> to vector<1x128xf32>
    %90 = vector.extract_strided_slice %7 {offsets = [0, 6], sizes = [128, 1], strides = [1, 1]} : vector<128x8xf32> to vector<128x1xf32>
    %cst_30 = arith.constant -3.000000e+38 : f32
    %91 = vector.shape_cast %90 : vector<128x1xf32> to vector<128x1xf32>
    %92 = vector.broadcast %91 : vector<128x1xf32> to vector<128x128xf32>
    %93 = vector.broadcast %cst_30 : f32 to vector<128x128xf32>
    %94 = arith.select %44, %92, %93 : vector<128x128xi1>, vector<128x128xf32>
    %cst_31 = arith.constant dense<0xFF800000> : vector<128xf32>
    %95 = vector.multi_reduction <maximumf>, %94, %cst_31 [0] : vector<128x128xf32> to vector<128xf32>
    %96 = vector.shape_cast %95 : vector<128xf32> to vector<1x128xf32>
    %97 = vector.extract_strided_slice %7 {offsets = [0, 7], sizes = [128, 1], strides = [1, 1]} : vector<128x8xf32> to vector<128x1xf32>
    %cst_32 = arith.constant -3.000000e+38 : f32
    %98 = vector.shape_cast %97 : vector<128x1xf32> to vector<128x1xf32>
    %99 = vector.broadcast %98 : vector<128x1xf32> to vector<128x128xf32>
    %100 = vector.broadcast %cst_32 : f32 to vector<128x128xf32>
    %101 = arith.select %44, %99, %100 : vector<128x128xi1>, vector<128x128xf32>
    %cst_33 = arith.constant dense<0xFF800000> : vector<128xf32>
    %102 = vector.multi_reduction <maximumf>, %101, %cst_33 [0] : vector<128x128xf32> to vector<128xf32>
    %103 = vector.shape_cast %102 : vector<128xf32> to vector<1x128xf32>
    %104 = tpu.concatenate %54, %61, %68, %75, %82, %89, %96, %103 in 0 : vector<1x128xf32>, vector<1x128xf32>, vector<1x128xf32>, vector<1x128xf32>, vector<1x128xf32>, vector<1x128xf32>, vector<1x128xf32>, vector<1x128xf32> -> vector<8x128xf32>
    %c0_34 = arith.constant 0 : index
    %c0_35 = arith.constant 0 : index
    %105 = vector.load %arg9[%c0_34, %c0_35] : memref<16x128xf32, #tpu.memory_space<vmem>>, vector<8x128xf32>
    %106 = arith.maximumf %105, %104 : vector<8x128xf32>
    %c0_36 = arith.constant 0 : index
    %c0_37 = arith.constant 0 : index
    %107 = vector.load %arg9[%c0_36, %c0_37] : memref<16x128xf32, #tpu.memory_space<vmem>>, vector<8x128xf32>
    tpu.vector_store %arg9[%c0_36, %c0_37], %106 {strides = array<i32>} : memref<16x128xf32, #tpu.memory_space<vmem>>, vector<8x128xf32>,
    %cst_38 = arith.constant 1.000000e+00 : f32
    %108 = vector.broadcast %cst_38 : f32 to vector<128x128xf32>
    %109 = arith.cmpf olt, %28, %108 : vector<128x128xf32>
    %110 = arith.andi %109, %31 : vector<128x128xi1>
    %111 = arith.extui %110 : vector<128x128xi1> to vector<128x128xi32>
    %112 = arith.sitofp %111 : vector<128x128xi32> to vector<128x128xf32>
    %113 = arith.truncf %112 : vector<128x128xf32> to vector<128x128xbf16>
    %cst_39 = arith.constant dense<0.000000e+00> : vector<128x128xf32>
    %114 = tpu.matmul %8, %113, %cst_39 {dimension_numbers = #tpu.dot_dimension_numbers<[1], [0], [0], [1], [0, 0, 1, 1], [], []>} : vector<128x128xbf16>, vector<128x128xbf16>, vector<128x128xf32> -> vector<128x128xf32>
    %c1 = arith.constant 1 : index
    %c0_40 = arith.constant 0 : index
    %115 = vector.load %arg10[%c1, %c0_40] : memref<2x128xf32, #tpu.memory_space<vmem>>, vector<1x128xf32>
    %116 = vector.broadcast %115 : vector<1x128xf32> to vector<128x128xf32>
    %117 = arith.addf %116, %114 : vector<128x128xf32>
    %cst_41 = arith.constant 1.600000e+01 : f32
    %118 = vector.broadcast %cst_41 : f32 to vector<128x128xf32>
    %119 = arith.cmpf ole, %117, %118 : vector<128x128xf32>
    %120 = arith.andi %110, %119 : vector<128x128xi1>
    %121 = vector.extract_strided_slice %114 {offsets = [127, 0], sizes = [1, 128], strides = [1, 1]} : vector<128x128xf32> to vector<1x128xf32>
    %122 = arith.addf %115, %121 : vector<1x128xf32>
    %c1_42 = arith.constant 1 : index
    %c0_43 = arith.constant 0 : index
    %123 = vector.load %arg10[%c1_42, %c0_43] : memref<2x128xf32, #tpu.memory_space<vmem>>, vector<1x128xf32>
    tpu.vector_store %arg10[%c1_42, %c0_43], %122 {strides = array<i32>} : memref<2x128xf32, #tpu.memory_space<vmem>>, vector<1x128xf32>,
    %124 = vector.extract_strided_slice %7 {offsets = [0, 0], sizes = [128, 1], strides = [1, 1]} : vector<128x8xf32> to vector<128x1xf32>
    %cst_44 = arith.constant -3.000000e+38 : f32
    %125 = vector.shape_cast %124 : vector<128x1xf32> to vector<128x1xf32>
    %126 = vector.broadcast %125 : vector<128x1xf32> to vector<128x128xf32>
    %127 = vector.broadcast %cst_44 : f32 to vector<128x128xf32>
    %128 = arith.select %120, %126, %127 : vector<128x128xi1>, vector<128x128xf32>
    %cst_45 = arith.constant dense<0xFF800000> : vector<128xf32>
    %129 = vector.multi_reduction <maximumf>, %128, %cst_45 [0] : vector<128x128xf32> to vector<128xf32>
    %130 = vector.shape_cast %129 : vector<128xf32> to vector<1x128xf32>
    %131 = vector.extract_strided_slice %7 {offsets = [0, 1], sizes = [128, 1], strides = [1, 1]} : vector<128x8xf32> to vector<128x1xf32>
    %cst_46 = arith.constant -3.000000e+38 : f32
    %132 = vector.shape_cast %131 : vector<128x1xf32> to vector<128x1xf32>
    %133 = vector.broadcast %132 : vector<128x1xf32> to vector<128x128xf32>
    %134 = vector.broadcast %cst_46 : f32 to vector<128x128xf32>
    %135 = arith.select %120, %133, %134 : vector<128x128xi1>, vector<128x128xf32>
    %cst_47 = arith.constant dense<0xFF800000> : vector<128xf32>
    %136 = vector.multi_reduction <maximumf>, %135, %cst_47 [0] : vector<128x128xf32> to vector<128xf32>
    %137 = vector.shape_cast %136 : vector<128xf32> to vector<1x128xf32>
    %138 = vector.extract_strided_slice %7 {offsets = [0, 2], sizes = [128, 1], strides = [1, 1]} : vector<128x8xf32> to vector<128x1xf32>
    %cst_48 = arith.constant -3.000000e+38 : f32
    %139 = vector.shape_cast %138 : vector<128x1xf32> to vector<128x1xf32>
    %140 = vector.broadcast %139 : vector<128x1xf32> to vector<128x128xf32>
    %141 = vector.broadcast %cst_48 : f32 to vector<128x128xf32>
    %142 = arith.select %120, %140, %141 : vector<128x128xi1>, vector<128x128xf32>
    %cst_49 = arith.constant dense<0xFF800000> : vector<128xf32>
    %143 = vector.multi_reduction <maximumf>, %142, %cst_49 [0] : vector<128x128xf32> to vector<128xf32>
    %144 = vector.shape_cast %143 : vector<128xf32> to vector<1x128xf32>
    %145 = vector.extract_strided_slice %7 {offsets = [0, 3], sizes = [128, 1], strides = [1, 1]} : vector<128x8xf32> to vector<128x1xf32>
    %cst_50 = arith.constant -3.000000e+38 : f32
    %146 = vector.shape_cast %145 : vector<128x1xf32> to vector<128x1xf32>
    %147 = vector.broadcast %146 : vector<128x1xf32> to vector<128x128xf32>
    %148 = vector.broadcast %cst_50 : f32 to vector<128x128xf32>
    %149 = arith.select %120, %147, %148 : vector<128x128xi1>, vector<128x128xf32>
    %cst_51 = arith.constant dense<0xFF800000> : vector<128xf32>
    %150 = vector.multi_reduction <maximumf>, %149, %cst_51 [0] : vector<128x128xf32> to vector<128xf32>
    %151 = vector.shape_cast %150 : vector<128xf32> to vector<1x128xf32>
    %152 = vector.extract_strided_slice %7 {offsets = [0, 4], sizes = [128, 1], strides = [1, 1]} : vector<128x8xf32> to vector<128x1xf32>
    %cst_52 = arith.constant -3.000000e+38 : f32
    %153 = vector.shape_cast %152 : vector<128x1xf32> to vector<128x1xf32>
    %154 = vector.broadcast %153 : vector<128x1xf32> to vector<128x128xf32>
    %155 = vector.broadcast %cst_52 : f32 to vector<128x128xf32>
    %156 = arith.select %120, %154, %155 : vector<128x128xi1>, vector<128x128xf32>
    %cst_53 = arith.constant dense<0xFF800000> : vector<128xf32>
    %157 = vector.multi_reduction <maximumf>, %156, %cst_53 [0] : vector<128x128xf32> to vector<128xf32>
    %158 = vector.shape_cast %157 : vector<128xf32> to vector<1x128xf32>
    %159 = vector.extract_strided_slice %7 {offsets = [0, 5], sizes = [128, 1], strides = [1, 1]} : vector<128x8xf32> to vector<128x1xf32>
    %cst_54 = arith.constant -3.000000e+38 : f32
    %160 = vector.shape_cast %159 : vector<128x1xf32> to vector<128x1xf32>
    %161 = vector.broadcast %160 : vector<128x1xf32> to vector<128x128xf32>
    %162 = vector.broadcast %cst_54 : f32 to vector<128x128xf32>
    %163 = arith.select %120, %161, %162 : vector<128x128xi1>, vector<128x128xf32>
    %cst_55 = arith.constant dense<0xFF800000> : vector<128xf32>
    %164 = vector.multi_reduction <maximumf>, %163, %cst_55 [0] : vector<128x128xf32> to vector<128xf32>
    %165 = vector.shape_cast %164 : vector<128xf32> to vector<1x128xf32>
    %166 = vector.extract_strided_slice %7 {offsets = [0, 6], sizes = [128, 1], strides = [1, 1]} : vector<128x8xf32> to vector<128x1xf32>
    %cst_56 = arith.constant -3.000000e+38 : f32
    %167 = vector.shape_cast %166 : vector<128x1xf32> to vector<128x1xf32>
    %168 = vector.broadcast %167 : vector<128x1xf32> to vector<128x128xf32>
    %169 = vector.broadcast %cst_56 : f32 to vector<128x128xf32>
    %170 = arith.select %120, %168, %169 : vector<128x128xi1>, vector<128x128xf32>
    %cst_57 = arith.constant dense<0xFF800000> : vector<128xf32>
    %171 = vector.multi_reduction <maximumf>, %170, %cst_57 [0] : vector<128x128xf32> to vector<128xf32>
    %172 = vector.shape_cast %171 : vector<128xf32> to vector<1x128xf32>
    %173 = vector.extract_strided_slice %7 {offsets = [0, 7], sizes = [128, 1], strides = [1, 1]} : vector<128x8xf32> to vector<128x1xf32>
    %cst_58 = arith.constant -3.000000e+38 : f32
    %174 = vector.shape_cast %173 : vector<128x1xf32> to vector<128x1xf32>
    %175 = vector.broadcast %174 : vector<128x1xf32> to vector<128x128xf32>
    %176 = vector.broadcast %cst_58 : f32 to vector<128x128xf32>
    %177 = arith.select %120, %175, %176 : vector<128x128xi1>, vector<128x128xf32>
    %cst_59 = arith.constant dense<0xFF800000> : vector<128xf32>
    %178 = vector.multi_reduction <maximumf>, %177, %cst_59 [0] : vector<128x128xf32> to vector<128xf32>
    %179 = vector.shape_cast %178 : vector<128xf32> to vector<1x128xf32>
    %180 = tpu.concatenate %130, %137, %144, %151, %158, %165, %172, %179 in 0 : vector<1x128xf32>, vector<1x128xf32>, vector<1x128xf32>, vector<1x128xf32>, vector<1x128xf32>, vector<1x128xf32>, vector<1x128xf32>, vector<1x128xf32> -> vector<8x128xf32>
    %c8 = arith.constant 8 : index
    %c0_60 = arith.constant 0 : index
    %181 = vector.load %arg9[%c8, %c0_60] : memref<16x128xf32, #tpu.memory_space<vmem>>, vector<8x128xf32>
    %182 = arith.maximumf %181, %180 : vector<8x128xf32>
    %c8_61 = arith.constant 8 : index
    %c0_62 = arith.constant 0 : index
    %183 = vector.load %arg9[%c8_61, %c0_62] : memref<16x128xf32, #tpu.memory_space<vmem>>, vector<8x128xf32>
    tpu.vector_store %arg9[%c8_61, %c0_62], %182 {strides = array<i32>} : memref<16x128xf32, #tpu.memory_space<vmem>>, vector<8x128xf32>,
    %c1_i32 = arith.constant 1 : i32
    %184 = arith.cmpi eq, %arg1, %c1_i32 : i32
    %185 = arith.extui %184 : i1 to i32
    %c0_i32_63 = arith.constant 0 : i32
    %186 = arith.cmpi ne, %185, %c0_i32_63 : i32
    scf.if %186 {
      %c0_64 = arith.constant 0 : index
      %c0_65 = arith.constant 0 : index
      %187 = vector.load %arg10[%c0_64, %c0_65] : memref<2x128xf32, #tpu.memory_space<vmem>>, vector<1x128xf32>
      %cst_66 = arith.constant 0.000000e+00 : f32
      %188 = vector.broadcast %cst_66 : f32 to vector<1x128xf32>
      %189 = arith.cmpf ogt, %187, %188 : vector<1x128xf32>
      %c0_67 = arith.constant 0 : index
      %c0_68 = arith.constant 0 : index
      %190 = vector.load %arg9[%c0_67, %c0_68] : memref<16x128xf32, #tpu.memory_space<vmem>>, vector<8x128xf32>
      %cst_69 = arith.constant 0.000000e+00 : f32
      %191 = vector.shape_cast %189 : vector<1x128xi1> to vector<1x128xi1>
      %192 = vector.broadcast %191 : vector<1x128xi1> to vector<8x128xi1>
      %193 = vector.broadcast %cst_69 : f32 to vector<8x128xf32>
      %194 = arith.select %192, %190, %193 : vector<8x128xi1>, vector<8x128xf32>
      %c0_70 = arith.constant 0 : index
      %c0_71 = arith.constant 0 : index
      %195 = vector.load %arg8[%c0_70, %c0_71] : memref<16x128xf32, #tpu.memory_space<vmem>>, vector<8x128xf32>
      tpu.vector_store %arg8[%c0_70, %c0_71], %194 {strides = array<i32>} : memref<16x128xf32, #tpu.memory_space<vmem>>, vector<8x128xf32>,
      %c1_72 = arith.constant 1 : index
      %c0_73 = arith.constant 0 : index
      %196 = vector.load %arg10[%c1_72, %c0_73] : memref<2x128xf32, #tpu.memory_space<vmem>>, vector<1x128xf32>
      %cst_74 = arith.constant 0.000000e+00 : f32
      %197 = vector.broadcast %cst_74 : f32 to vector<1x128xf32>
      %198 = arith.cmpf ogt, %196, %197 : vector<1x128xf32>
      %c8_75 = arith.constant 8 : index
      %c0_76 = arith.constant 0 : index
      %199 = vector.load %arg9[%c8_75, %c0_76] : memref<16x128xf32, #tpu.memory_space<vmem>>, vector<8x128xf32>
      %cst_77 = arith.constant 0.000000e+00 : f32
      %200 = vector.shape_cast %198 : vector<1x128xi1> to vector<1x128xi1>
      %201 = vector.broadcast %200 : vector<1x128xi1> to vector<8x128xi1>
      %202 = vector.broadcast %cst_77 : f32 to vector<8x128xf32>
      %203 = arith.select %201, %199, %202 : vector<8x128xi1>, vector<8x128xf32>
      %c8_78 = arith.constant 8 : index
      %c0_79 = arith.constant 0 : index
      %204 = vector.load %arg8[%c8_78, %c0_79] : memref<16x128xf32, #tpu.memory_space<vmem>>, vector<8x128xf32>
      tpu.vector_store %arg8[%c8_78, %c0_79], %203 {strides = array<i32>} : memref<16x128xf32, #tpu.memory_space<vmem>>, vector<8x128xf32>,
    } else {
    }
    return
  }
  func.func @transform_0(%arg0: i32, %arg1: i32) -> (i32, i32) {
    %c0_i32 = arith.constant 0 : i32
    %c0_i32_0 = arith.constant 0 : i32
    %c0_i32_1 = arith.constant 0 : i32
    return %c0_i32, %c0_i32_0 : i32, i32
  }
  func.func @transform_1(%arg0: i32, %arg1: i32) -> (i32, i32) {
    %c0_i32 = arith.constant 0 : i32
    %c0_i32_0 = arith.constant 0 : i32
    return %c0_i32, %arg0 : i32, i32
  }
  func.func @transform_2(%arg0: i32, %arg1: i32) -> (i32, i32) {
    %c0_i32 = arith.constant 0 : i32
    %c0_i32_0 = arith.constant 0 : i32
    return %c0_i32, %arg0 : i32, i32
  }
  func.func @transform_3(%arg0: i32, %arg1: i32) -> (i32, i32) {
    %c0_i32 = arith.constant 0 : i32
    %c0_i32_0 = arith.constant 0 : i32
    return %arg1, %c0_i32 : i32, i32
  }
  func.func @transform_4(%arg0: i32, %arg1: i32) -> (i32, i32) {
    %c0_i32 = arith.constant 0 : i32
    %c0_i32_0 = arith.constant 0 : i32
    return %arg1, %c0_i32 : i32, i32
  }
  func.func @transform_5(%arg0: i32, %arg1: i32) -> (i32, i32) {
    %c0_i32 = arith.constant 0 : i32
    %c0_i32_0 = arith.constant 0 : i32
    return %arg1, %c0_i32 : i32, i32
  }
  func.func @transform_6(%arg0: i32, %arg1: i32) -> (i32, i32) {
    %c0_i32 = arith.constant 0 : i32
    %c0_i32_0 = arith.constant 0 : i32
    return %c0_i32, %arg0 : i32, i32
  }
}

</mosaic_0001>

<bundles_post_ra>
// kernel: tpu_custom_call.1
= control target key start
LH: loop header
LB: loop body
LE: loop exit
PB: predicated region body
PF: predicated region fallthrough
CT: control target
= control target key end

     0   :  { %11 = vsyncpa [#allocation5], 0  ;;  %s5605_s0 = inlined_call_operand.vmem [shape: bf16[128,128], index: 0, kind: input, shape index: {}]   ;;  %s5606_s1 = inlined_call_operand.vmem [shape: f32[3,256], index: 1, kind: input, shape index: {}]   ;;  %s5607_s2 = inlined_call_operand.vmem [shape: f32[1,256], index: 2, kind: input, shape index: {}]   ;;  %s5608_s3 = inlined_call_operand.vmem [shape: f32[256,3], index: 3, kind: input, shape index: {}]   ;;  %s5609_s4 = inlined_call_operand.vmem [shape: f32[256,1], index: 4, kind: input, shape index: {}]   ;;  %s5610_s5 = inlined_call_operand.vmem [shape: f32[256,8], index: 5, kind: input, shape index: {}]   ;;  %s5611_s6 = inlined_call_operand.hbm [shape: f32[16,256], index: 6, kind: output, shape index: {}]  }
   0x1   :  { %13 = vsyncpa [#allocation5 + $0x1], 0  ;;  %s3141_s21 = smov 0   ;;  %s3143_s22 = smov 0  }
   0x2   :  { %s3145_s23 = smov 0   ;;  %s3147_s24 = smov 0  }
   0x3   :  { %s3149_s25 = smov 0   ;;  %s3151_s26 = smov 0  }
   0x4   :  { %s3153_s27 = smov 0   ;;  %s3155_s28 = smov 0  }
   0x5 LB: > { %5820 = sst [smem:[#allocation7_spill]] %s3060_s21  ;;  %s2669_s29 = sadd.s32 4294967295, %s3088_s28   ;;  %s3088_s28 = sphi %s3155_s28, %s19_s28   ;;  %s3084_s27 = sphi %s3153_s27, %s6309_s27   ;;  %s3080_s26 = sphi %s3151_s26, %s6308_s26   ;;  %s3076_s25 = sphi %s3149_s25, %s6307_s25   ;;  %s3072_s24 = sphi %s3147_s24, %s6306_s24   ;;  %s3068_s23 = sphi %s3145_s23, %s6305_s23   ;;  %s3064_s22 = sphi %s3143_s22, %s6311_s22   ;;  %s3060_s21 = sphi %s3141_s21, %s6310_s21  }
   0x6   : > { %5821 = sst [smem:[#allocation8_spill]] %s3068_s23  ;;  %s2670_s30 = sadd.s32 4294967294, %s3088_s28  }
   0x7   : > { %5822 = sst [smem:[#allocation9_spill]] %s3080_s26  ;;  %s28_s7 = sadd.s32 1, %s3080_s26 }
   0x8   : > { %5823 = sst [smem:[#allocation10_spill]] %s3084_s27  ;;  %p29_p0 = scmp.ge.s32.totalorder %s28_s7, 2 }
   0x9   : > { %s31_s8 = sadd.s32 1, %s3084_s27  ;;  %p199_p1 = scmp.ne.s32.totalorder %s3068_s23, %s3064_s22 }
   0xa   : > { %p200_p2 = scmp.eq.s32.totalorder %s2669_s29, 3  ;;  %s6313_s7 = smov (%p29_p0, %s28_s7), 0 }
   0xb   : > { %5824 = sst [smem:[#allocation11_spill]] %s6313_s7  ;;  %s6315_s8 = smov (!%p29_p0, %s31_s8), %s3084_s27 }
   0xc   : > { %p3190_p3 = por %p200_p2, %p199_p1  ;;  %p205_p4 = scmp.ne.s32.totalorder %s3064_s22, %s3060_s21 }
   0xd   : > { %p33_p5 = scmp.ge.s32.totalorder %s6315_s8, 2  ;;  %p206_p6 = scmp.eq.s32.totalorder %s2670_s30, 3 }
   0xe   : > { %p2673_p7 = scmp.ge.s32.totalorder %s3088_s28, 1  ;;  %p267_p8 = scmp.lt.s32.totalorder %s3088_s28, 5 }
   0xf   : > { %s6317_s8 = smov (%p33_p5, %s6315_s8), 0  ;;  %p3200_p9 = por %p206_p6, %p205_p4 }
  0x10   : > { %5826 = sst [smem:[#allocation12_spill]] %s6317_s8  ;;  %p268_p10 = pnand %p2673_p7, %p267_p8 }
  0x11   : > { %s5827_s10 = scalar_select %p3200_p9, 1, 0 }
  0x12   : > { %s186_s11 = ssub.s32 %s3084_s27, %s6317_s8  ;;  %s189_s12 = sadd.s32 1, %s3068_s23 }
  0x13   : > { %5828 = sst [smem:[#allocation13_spill]] %s5827_s10  ;;  %p187_p11 = scmp.eq.s32.totalorder %s186_s11, 0 }
  0x14   : > { %271 = sbr.rel (%p268_p10) target bundleno = 796 (0x31c), region = 44 }
  0x15   : > { %s3208_s13 = scalar_select %p187_p11, %s3068_s23, %s189_s12  }
  0x17   : > { %5829 = sst [smem:[#allocation14_spill]] %s3208_s13 }
  0x1b   : > { %s5613_s14 = sand.u32 1, %s3064_s22   ;;  %p314_p12 = scmp.lt.s32.totalorder %s3076_s25, 1 }
  0x1c   : > { %s2674_s15 = sshll.u32 %s5613_s14, 4  ;;  %s2676_s16 = sshll.u32 %s3072_s24, 4 }
  0x1d   : > { %p322_p13 = scmp.lt.s32.totalorder %s2676_s16, 31  ;;  %s3243_s20 = scalar_lea.vmem [#allocation4], %s2674_s15 }
  0x1e   : > { %s3216_s17 = scalar_select %p314_p12, %s3076_s25, 1 }
  0x1f   : > { %s6319_s16 = smov (!%p322_p13, %s2676_s16), 31  ;;  %p2682_p0 = scmp.ne.s32.totalorder %s3072_s24, 0 }
  0x20   : > { %s2675_s18 = sshll.u32 %s3216_s17, 2  ;;  %s320_s29 = scalar_lea.vmem %s5607_s2, %s3216_s17  ;;  %v3090_v0 = vmov (!%p2682_p0), -3e+38   ;;  %v3091_v1 = vmov (!%p2682_p0), 0.0  }
  0x21   : > { %s3226_s12 = scalar_lea.vmem %s5606_s1, %s2675_s18  ;;  %s2677_s8 = sshll.u32 %s6319_s16, 3  ;;  %344 = vst [vmem:[#allocation2] sm:$0xff] (!%p2682_p0), %v3090_v0  ;;  %345 = vst [vmem:[#allocation2 + $0x8] sm:$0xff] (!%p2682_p0), %v3090_v0 }
  0x22   : > { %s3231_s27 = scalar_lea.vmem %s5608_s3, %s2677_s8  ;;  %s3236_s23 = scalar_lea.vmem %s5609_s4, %s2677_s8  ;;  %346 = vst [vmem:[#allocation3] sm:$0x3] (!%p2682_p0), %v3091_v1 }
  0x23   : > { %s3241_s19 = scalar_lea.vmem %s5610_s5, %s2677_s8  ;;  %343 = sbr.rel (%p2682_p0) target bundleno = 42 (0x2a), region = 48 }
  0x2a PF: > { %v351_v2 = vld [vmem:[%s3231_s27 + $0x10] sm:$0xff]  ;;  %v349_v3 = vld [vmem:[%s3231_s27] sm:$0xff]  ;;  %v3092_v4 = vmov 1   ;;  %v3093_v5 = vmov 0   ;;  %v352_v6 = vld [vmem:[%s3231_s27 + $0x18] sm:$0xff]  ;;  %v3094_v14 = vmov 2  }
  0x2b   : > { %2944 = vset.pattern.permute.xlu0 %v3092_v4  ;;  %2943 = vset.pattern.permute.xlu1 %v3093_v5  ;;  %v354_v7 = vld [vmem:[%s3231_s27 + $0x28] sm:$0xff]  ;;  %v356_v8 = vld [vmem:[%s3231_s27 + $0x38] sm:$0xff]  ;;  %v353_v15 = vld [vmem:[%s3231_s27 + $0x20] sm:$0xff]  ;;  %p2756_p1 = scmp.ne.s32.totalorder %s3072_s24, 1 }
  0x2c   : > { %425 = vperm.xlu1 %2943, %v351_v2   ;;  %514 = vperm.xlu0 %2944, %v349_v3   ;;  %v358_v9 = vld [vmem:[%s3231_s27 + $0x48] sm:$0xff]  ;;  %v360_v10 = vld [vmem:[%s3231_s27 + $0x58] sm:$0xff]  ;;  %v355_v16 = vld [vmem:[%s3231_s27 + $0x30] sm:$0xff] }
  0x2d   : > { %v362_v11 = vld [vmem:[%s3231_s27 + $0x68] sm:$0xff]  ;;  %v364_v12 = vld [vmem:[%s3231_s27 + $0x78] sm:$0xff]  ;;  %v357_v17 = vld [vmem:[%s3231_s27 + $0x40] sm:$0xff] }
  0x2e   : > { %v350_v13 = vld [vmem:[%s3231_s27 + $0x8] sm:$0xff]  ;;  %v359_v18 = vld [vmem:[%s3231_s27 + $0x50] sm:$0xff]  ;;  %v361_v19 = vld [vmem:[%s3231_s27 + $0x60] sm:$0xff] }
  0x2f   : > { %v363_v20 = vld [vmem:[%s3231_s27 + $0x70] sm:$0xff]  ;;  %v365_v21 = vld [vmem:[%s3236_s23] sm:$0xff]  ;;  %v368_v22 = vld [vmem:[%s3236_s23 + $0x18] sm:$0xff] }
  0x30   : > { %430 = vperm.xlu1 %2943, %v352_v6   ;;  %526 = vperm.xlu0 %2944, %v352_v6   ;;  %v370_v23 = vld [vmem:[%s3236_s23 + $0x28] sm:$0xff]  ;;  %v372_v25 = vld [vmem:[%s3236_s23 + $0x38] sm:$0xff]  ;;  %v367_v26 = vld [vmem:[%s3236_s23 + $0x10] sm:$0xff] }
  0x31   : > { %v366_v24 = vld [vmem:[%s3236_s23 + $0x8] sm:$0xff]  ;;  %v369_v28 = vld [vmem:[%s3236_s23 + $0x20] sm:$0xff]  ;;  %v376_v29 = vld [vmem:[%s3236_s23 + $0x58] sm:$0xff] }
  0x32   : > { %v374_v27 = vld [vmem:[%s3236_s23 + $0x48] sm:$0xff]  ;;  %v371_v30 = vld [vmem:[%s3236_s23 + $0x30] sm:$0xff]  ;;  %v373_v32 = vld [vmem:[%s3236_s23 + $0x40] sm:$0xff] }
  0x33   : > { %v378_v31 = vld [vmem:[%s3236_s23 + $0x68] sm:$0xff]  ;;  %v380_v33 = vld [vmem:[%s3236_s23 + $0x78] sm:$0xff]  ;;  %v375_v34 = vld [vmem:[%s3236_s23 + $0x50] sm:$0xff] }
  0x34   : > { %440 = vperm.xlu1 %2943, %v354_v7   ;;  %534 = vperm.xlu0 %2944, %v354_v7   ;;  %v3284_v35 = vld [vmem:[%s3241_s19 + $0x8] sm:$0xff]  ;;  %v377_v36 = vld [vmem:[%s3236_s23 + $0x60] sm:$0xff]  ;;  %v3293_v39 = vld [vmem:[%s3241_s19 + $0x18] sm:$0xff] }
  0x35   : > { %5830 = vst [vmem:[#allocation15_spill] sm:$0xff] %v3293_v39  ;;  %v379_v40 = vld [vmem:[%s3236_s23 + $0x70] sm:$0xff]  ;;  %v3302_v43 = vld [vmem:[%s3241_s19 + $0x28] sm:$0xff]  ;;  %v3305_v44 = vld [vmem:[%s3241_s19] sm:$0xff] }
  0x36   : > { %5831 = vst [vmem:[#allocation16_spill] sm:$0xff] %v3302_v43  ;;  %v3314_v47 = vld [vmem:[%s3241_s19 + $0x38] sm:$0xff]  ;;  %v3317_v48 = vld [vmem:[%s3241_s19 + $0x10] sm:$0xff]  ;;  %v3326_v51 = vld [vmem:[%s3241_s19 + $0x48] sm:$0xff] }
  0x37   : > { %5832 = vst [vmem:[#allocation17_spill] sm:$0xff] %v3314_v47  ;;  %5833 = vst [vmem:[#allocation18_spill] sm:$0xff] %v3326_v51  ;;  %v3329_v52 = vld [vmem:[%s3241_s19 + $0x20] sm:$0xff]  ;;  %v3338_v55 = vld [vmem:[%s3241_s19 + $0x58] sm:$0xff] }
  0x38   : > { %450 = vperm.xlu1 %2943, %v356_v8   ;;  %542 = vperm.xlu0 %2944, %v356_v8   ;;  %5834 = vst [vmem:[#allocation19_spill] sm:$0xff] %v3338_v55  ;;  %v3341_v56 = vld [vmem:[%s3241_s19 + $0x30] sm:$0xff]  ;;  %v3350_v59 = vld [vmem:[%s3241_s19 + $0x68] sm:$0xff]  ;;  %v3353_v60 = vld [vmem:[%s3241_s19 + $0x40] sm:$0xff] }
  0x39   : > { %5835 = vst [vmem:[#allocation20_spill] sm:$0xff] %v3350_v59  ;;  %v2968_v61 = vld [vmem:[%s5605_s0] sm:$0xff]   ;;  %v3365_v0 = vld [vmem:[%s3241_s19 + $0x78] sm:$0xff]  ;;  %v3368_v1 = vld [vmem:[%s3241_s19 + $0x50] sm:$0xff] }
  0x3a   : > { %5836 = vst [vmem:[#allocation21_spill] sm:$0xff] %v3365_v0  ;;  %2809 = vmatprep.mubr.bf16.mxu0 %v2968_v61  ;;  %2841 = vmatprep.mubr.bf16.mxu1 %v2968_v61 }
  0x3c   : > { %460 = vperm.xlu1 %2943, %v358_v9   ;;  %550 = vperm.xlu0 %2944, %v358_v9  }
  0x40   : > { %470 = vperm.xlu1 %2943, %v360_v10   ;;  %558 = vperm.xlu0 %2944, %v360_v10  }
  0x44   : > { %480 = vperm.xlu1 %2943, %v362_v11   ;;  %566 = vperm.xlu0 %2944, %v362_v11  }
  0x48   : > { %490 = vperm.xlu1 %2943, %v364_v12   ;;  %574 = vperm.xlu0 %2944, %v364_v12  }
  0x4c   : > { %2945 = vset.pattern.permute.xlu1 %v3092_v4  ;;  %2947 = vset.pattern.permute.xlu0 %v3094_v14 }
  0x4d   : > { %518 = vperm.xlu1 %2945, %v350_v13   ;;  %602 = vperm.xlu0 %2947, %v350_v13  }
  0x51   : > { %522 = vperm.xlu1 %2945, %v351_v2   ;;  %614 = vperm.xlu0 %2947, %v353_v15  }
  0x55   : > { %530 = vperm.xlu1 %2945, %v353_v15   ;;  %622 = vperm.xlu0 %2947, %v355_v16  }
  0x59   : > { %538 = vperm.xlu1 %2945, %v355_v16   ;;  %630 = vperm.xlu0 %2947, %v357_v17  }
  0x5d   : > { %546 = vperm.xlu1 %2945, %v357_v17   ;;  %638 = vperm.xlu0 %2947, %v359_v18  }
  0x61   : > { %554 = vperm.xlu1 %2945, %v359_v18   ;;  %646 = vperm.xlu0 %2947, %v361_v19  }
  0x65   : > { %562 = vperm.xlu1 %2945, %v361_v19   ;;  %654 = vperm.xlu0 %2947, %v363_v20  }
  0x69   : > { %570 = vperm.xlu1 %2945, %v363_v20   ;;  %2948 = vset.pattern.permute.xlu0 %v3093_v5 }
  0x6a   : > { %415 = vperm.xlu0 %2948, %v349_v3  }
  0x6d   : > { %2946 = vset.pattern.permute.xlu1 %v3094_v14 }
  0x6e   : > { %598 = vperm.xlu1 %2946, %v349_v3   ;;  %420 = vperm.xlu0 %2948, %v350_v13  }
  0x72   : > { %606 = vperm.xlu1 %2946, %v351_v2   ;;  %435 = vperm.xlu0 %2948, %v353_v15  }
  0x76   : > { %610 = vperm.xlu1 %2946, %v352_v6   ;;  %445 = vperm.xlu0 %2948, %v355_v16  }
  0x7a   : > { %618 = vperm.xlu1 %2946, %v354_v7   ;;  %455 = vperm.xlu0 %2948, %v357_v17  }
  0x7e   : > { %626 = vperm.xlu1 %2946, %v356_v8   ;;  %465 = vperm.xlu0 %2948, %v359_v18   ;;  %v3387_v8 = vld [vmem:[%s3241_s19 + $0x70] sm:$0xff] }
  0x82   : > { %634 = vperm.xlu1 %2946, %v358_v9   ;;  %475 = vperm.xlu0 %2948, %v361_v19  }
  0x86   : > { %642 = vperm.xlu1 %2946, %v360_v10   ;;  %485 = vperm.xlu0 %2948, %v363_v20  }
  0x8a   : > { %650 = vperm.xlu1 %2946, %v362_v11   ;;  %763 = vperm.xlu0 %2948, %v365_v21  }
  0x8e   : > { %658 = vperm.xlu1 %2946, %v364_v12   ;;  %778 = vperm.xlu0 %2948, %v368_v22  }
  0x92   : > { %2949 = vset.pattern.permute.xlu1 %v3093_v5  ;;  %788 = vperm.xlu0 %2948, %v370_v23   ;;  %v3377_v5 = vld [vmem:[%s3241_s19 + $0x60] sm:$0xff] }
  0x93   : > { %768 = vperm.xlu1 %2949, %v366_v24  }
  0x96   : > { %798 = vperm.xlu0 %2948, %v372_v25  }
  0x97   : > { %773 = vperm.xlu1 %2949, %v367_v26  }
  0x9a   : > { %808 = vperm.xlu0 %2948, %v374_v27  }
  0x9b   : > { %783 = vperm.xlu1 %2949, %v369_v28  }
  0x9e   : > { %818 = vperm.xlu0 %2948, %v376_v29   ;;  %v493_v29 = vlaneseq }
  0x9f   : > { %793 = vperm.xlu1 %2949, %v371_v30  }
  0xa2   : > { %828 = vperm.xlu0 %2948, %v378_v31  }
  0xa3   : > { %803 = vperm.xlu1 %2949, %v373_v32   ;;  %v494_v32 = vshrl.u32 %v493_v29, 7 }
  0xa5   : > { %v663_v61 = vsub.s32 2, %v494_v32 }
  0xa6   : > { %838 = vperm.xlu0 %2948, %v380_v33  }
  0xa7   : > { %813 = vperm.xlu1 %2949, %v375_v34  }
  0xaa   : > { %1145 = vperm.xlu0 %2948, %v3284_v35  }
  0xab   : > { %v3288_v37 = vpop.permute.xlu1 %425  ;;  %823 = vperm.xlu1 %2949, %v377_v36   ;;  %v3290_v38 = vpop.permute.xlu0 %514  ;;  %v3456_v36 = vsub.s32 0, %v494_v32 }
  0xad   : > { %5842 = vst [vmem:[#allocation27_spill] sm:$0xff] %v3456_v36 }
  0xae   : > { %1155 = vperm.xlu0 %2948, %v3293_v39  }
  0xaf   : > { %v3297_v41 = vpop.permute.xlu1 %430  ;;  %833 = vperm.xlu1 %2949, %v379_v40   ;;  %v3299_v42 = vpop.permute.xlu0 %526  ;;  %v347_v40 = vld [vmem:[%s3226_s12] sm:$0x7] }
  0xb2   : > { %1165 = vperm.xlu0 %2948, %v3302_v43  }
  0xb3   : > { %v3308_v45 = vpop.permute.xlu1 %440  ;;  %1140 = vperm.xlu1 %2949, %v3305_v44   ;;  %v3311_v46 = vpop.permute.xlu0 %534 }
  0xb6   : > { %1175 = vperm.xlu0 %2948, %v3314_v47  }
  0xb7   : > { %v3320_v49 = vpop.permute.xlu1 %450  ;;  %1150 = vperm.xlu1 %2949, %v3317_v48   ;;  %v3323_v50 = vpop.permute.xlu0 %542 }
  0xba   : > { %1185 = vperm.xlu0 %2948, %v3326_v51  }
  0xbb   : > { %v3332_v53 = vpop.permute.xlu1 %460  ;;  %1160 = vperm.xlu1 %2949, %v3329_v52   ;;  %v3335_v54 = vpop.permute.xlu0 %550 }
  0xbe   : > { %1195 = vperm.xlu0 %2948, %v3338_v55  }
  0xbf   : > { %v3344_v57 = vpop.permute.xlu1 %470  ;;  %1170 = vperm.xlu1 %2949, %v3341_v56   ;;  %v3347_v58 = vpop.permute.xlu0 %558 }
  0xc2   : > { %1205 = vperm.xlu0 %2948, %v3350_v59  }
  0xc3   : > { %v3359_v62 = vpop.permute.xlu1 %480  ;;  %1180 = vperm.xlu1 %2949, %v3353_v60   ;;  %v3362_v63 = vpop.permute.xlu0 %566 }
  0xc6   : > { %1215 = vperm.xlu0 %2948, %v3365_v0  }
  0xc7   : > { %v3371_v2 = vpop.permute.xlu1 %490  ;;  %1190 = vperm.xlu1 %2949, %v3368_v1   ;;  %v3374_v3 = vpop.permute.xlu0 %574 }
  0xca   : > { %2951 = vset.pattern.permute.xlu0 %v3092_v4 }
  0xcb   : > { %1200 = vperm.xlu1 %2949, %v3377_v5   ;;  %1260 = vperm.xlu0 %2951, %v3284_v35  }
  0xcc   : > { %v3382_v6 = vpop.permute.xlu1 %518  ;;  %v3384_v7 = vpop.permute.xlu0 %602 }
  0xcf   : > { %1210 = vperm.xlu1 %2949, %v3387_v8   ;;  %1272 = vperm.xlu0 %2951, %v3329_v52  }
  0xd0   : > { %v3391_v9 = vpop.permute.xlu1 %522  ;;  %v3393_v10 = vpop.permute.xlu0 %614 }
  0xd3   : > { %2950 = vset.pattern.permute.xlu1 %v3092_v4  ;;  %1280 = vperm.xlu0 %2951, %v3341_v56  }
  0xd4   : > { %v3397_v11 = vpop.permute.xlu1 %530  ;;  %1256 = vperm.xlu1 %2950, %v3305_v44   ;;  %v3400_v12 = vpop.permute.xlu0 %622 }
  0xd7   : > { %1288 = vperm.xlu0 %2951, %v3353_v60  }
  0xd8   : > { %v3403_v13 = vpop.permute.xlu1 %538  ;;  %1264 = vperm.xlu1 %2950, %v3317_v48   ;;  %v3406_v15 = vpop.permute.xlu0 %630 }
  0xdb   : > { %1296 = vperm.xlu0 %2951, %v3368_v1  }
  0xdc   : > { %v3409_v16 = vpop.permute.xlu1 %546  ;;  %1268 = vperm.xlu1 %2950, %v3293_v39   ;;  %v3412_v4 = vpop.permute.xlu0 %638 }
  0xdf   : > { %1304 = vperm.xlu0 %2951, %v3377_v5  }
  0xe0   : > { %v3415_v17 = vpop.permute.xlu1 %554  ;;  %1276 = vperm.xlu1 %2950, %v3302_v43   ;;  %v3418_v18 = vpop.permute.xlu0 %646 }
  0xe1   : > { %5837 = vst [vmem:[#allocation22_spill] sm:$0xff] %v3415_v17  ;;  %5838 = vst [vmem:[#allocation23_spill] sm:$0xff] %v3418_v18 }
  0xe3   : > { %1312 = vperm.xlu0 %2951, %v3387_v8  }
  0xe4   : > { %v3421_v19 = vpop.permute.xlu1 %562  ;;  %1284 = vperm.xlu1 %2950, %v3314_v47   ;;  %v3424_v20 = vpop.permute.xlu0 %654 }
  0xe5   : > { %5839 = vst [vmem:[#allocation24_spill] sm:$0xff] %v3421_v19  ;;  %5840 = vst [vmem:[#allocation25_spill] sm:$0xff] %v3424_v20 }
  0xe7   : > { %2952 = vset.pattern.permute.xlu0 %v3094_v14 }
  0xe8   : > { %v3427_v21 = vpop.permute.xlu1 %570  ;;  %1292 = vperm.xlu1 %2950, %v3326_v51   ;;  %1357 = vperm.xlu0 %2952, %v3305_v44  }
  0xe9   : > { %5841 = vst [vmem:[#allocation26_spill] sm:$0xff] %v3427_v21  ;;  %v416_v22 = vpop.permute.xlu0 %415 }
  0xec   : > { %1300 = vperm.xlu1 %2950, %v3338_v55   ;;  %1369 = vperm.xlu0 %2952, %v3293_v39  }
  0xed   : > { %v599_v23 = vpop.permute.xlu1 %598  ;;  %v421_v24 = vpop.permute.xlu0 %420 }
  0xf0   : > { %1308 = vperm.xlu1 %2950, %v3350_v59   ;;  %1377 = vperm.xlu0 %2952, %v3302_v43  }
  0xf1   : > { %v3435_v25 = vpop.permute.xlu1 %606  ;;  %v3437_v26 = vpop.permute.xlu0 %435 }
  0xf4   : > { %1316 = vperm.xlu1 %2950, %v3365_v0   ;;  %1385 = vperm.xlu0 %2952, %v3314_v47   ;;  %v3470_v47 = vrot.slane %v347_v40, %v663_v61 }
  0xf5   : > { %v611_v27 = vpop.permute.xlu1 %610  ;;  %v3441_v28 = vpop.permute.xlu0 %445 }
  0xf6   : > { %v665_v61 = vsub.f32 %v599_v23, %v3470_v47 }
  0xf8   : > { %2953 = vset.pattern.permute.xlu1 %v3094_v14  ;;  %1393 = vperm.xlu0 %2952, %v3326_v51   ;;  %v579_v14 = vsub.s32 1, %v494_v32 }
  0xf9   : > { %1361 = vperm.xlu1 %2953, %v3284_v35   ;;  %v3446_v30 = vpop.permute.xlu1 %618  ;;  %v3448_v31 = vpop.permute.xlu0 %455 }
  0xfa   : > { %v3468_v20 = vrot.slane %v347_v40, %v579_v14 }
  0xfc   : > { %1401 = vperm.xlu0 %2952, %v3338_v55   ;;  %v3466_v55 = vrot.slane %v347_v40, %v3456_v36  ;;  %v581_v32 = vsub.f32 %v3290_v38, %v3468_v20  ;;  %v584_v40 = vsub.f32 %v3299_v42, %v3468_v20  ;;  %v582_v38 = vsub.f32 %v3382_v6, %v3468_v20 }
  0xfd   : > { %1365 = vperm.xlu1 %2953, %v3317_v48   ;;  %v3452_v33 = vpop.permute.xlu1 %626  ;;  %v3454_v34 = vpop.permute.xlu0 %465  ;;  %v666_v36 = vsub.f32 %v3384_v7, %v3470_v47 }
  0xfe   : > { %v498_v21 = vsub.f32 %v421_v24, %v3466_v55  ;;  %v500_v14 = vsub.f32 %v3297_v41, %v3466_v55  ;;  %v502_v24 = vsub.f32 %v3308_v45, %v3466_v55  ;;  %v499_v41 = vsub.f32 %v3288_v37, %v3466_v55 }
  0xff   : > { %v697_v42 = vmul.f32 %v581_v32, %v581_v32  ;;  %v700_v23 = vmul.f32 %v584_v40, %v584_v40  ;;  %v588_v37 = vsub.f32 %v3323_v50, %v3468_v20  ;;  %v506_v32 = vsub.f32 %v3332_v53, %v3466_v55 }
 0x100   : > { %1409 = vperm.xlu0 %2952, %v3350_v59   ;;  %v497_v59 = vsub.f32 %v416_v22, %v3466_v55  ;;  %v586_v22 = vsub.f32 %v3311_v46, %v3468_v20  ;;  %v684_v46 = vmul.f32 %v500_v14, %v500_v14  ;;  %v686_v7 = vmul.f32 %v502_v24, %v502_v24 }
 0x101   : > { %1373 = vperm.xlu1 %2953, %v3329_v52   ;;  %v3461_v51 = vpop.permute.xlu1 %634  ;;  %v3463_v29 = vpop.permute.xlu0 %475  ;;  %v668_v14 = vsub.f32 %v611_v27, %v3470_v47  ;;  %v590_v50 = vsub.f32 %v3335_v54, %v3468_v20  ;;  %v583_v53 = vsub.f32 %v3391_v9, %v3468_v20  ;;  %v592_v54 = vsub.f32 %v3347_v58, %v3468_v20 }
 0x102   : > { %5843 = vst [vmem:[#allocation28_spill] sm:$0xff] %v3463_v29  ;;  %v681_v45 = vmul.f32 %v497_v59, %v497_v59  ;;  %v702_v29 = vmul.f32 %v586_v22, %v586_v22  ;;  %v729_v59 = vmul.f32 %v665_v61, %v665_v61  ;;  %v704_v22 = vmul.f32 %v588_v37, %v588_v37 }
 0x103   : > { %v667_v9 = vsub.f32 %v3435_v25, %v3470_v47  ;;  %v699_v58 = vmul.f32 %v583_v53, %v583_v53  ;;  %v501_v25 = vsub.f32 %v3437_v26, %v3466_v55 }
 0x104   : > { %1417 = vperm.xlu0 %2952, %v3365_v0   ;;  %v682_v0 = vmul.f32 %v498_v21, %v498_v21  ;;  %v698_v21 = vmul.f32 %v582_v38, %v582_v38  ;;  %v713_v17 = vadd.f32 %v697_v42, %v681_v45  ;;  %v716_v38 = vadd.f32 %v700_v23, %v684_v46 }
 0x105   : > { %1381 = vperm.xlu1 %2953, %v3341_v56   ;;  %v3478_v18 = vpop.permute.xlu1 %642  ;;  %v3480_v43 = vpop.permute.xlu0 %485  ;;  %v3528_v27 = vadd.f32 %v702_v29, %v686_v7  ;;  %v690_v42 = vmul.f32 %v506_v32, %v506_v32  ;;  %v732_v46 = vmul.f32 %v668_v14, %v668_v14  ;;  %v731_v26 = vmul.f32 %v667_v9, %v667_v9 }
 0x106   : > { %5844 = vst [vmem:[#allocation29_spill] sm:$0xff] %v3480_v43  ;;  %v5633_v43 = vmov 3   ;;  %v714_v39 = vadd.f32 %v698_v21, %v682_v0  ;;  %v3526_v0 = vld [vmem:[%s320_s29] ss:$0 sm:$0xff]  ;;  %v745_v61 = vadd.f32 %v729_v59, %v713_v17  ;;  %v706_v17 = vmul.f32 %v590_v50, %v590_v50 }
 0x107   : > { %v708_v21 = vmul.f32 %v592_v54, %v592_v54  ;;  %v5848_v59 = vmov 0  ;;  %v503_v54 = vsub.f32 %v3441_v28, %v3466_v55 }
 0x108   : > { %2955 = vset.pattern.permute.xlu0 %v5633_v43  ;;  %v504_v43 = vsub.f32 %v3320_v49, %v3466_v55  ;;  %v683_v49 = vmul.f32 %v499_v41, %v499_v41  ;;  %v508_v41 = vsub.f32 %v3344_v57, %v3466_v55  ;;  %v510_v57 = vsub.f32 %v3359_v62, %v3466_v55 }
 0x109   : > { %1389 = vperm.xlu1 %2953, %v3353_v60   ;;  %v3499_v6 = vpop.permute.xlu1 %650  ;;  %v3501_v19 = vpop.permute.xlu0 %763  ;;  %1462 = vperm.xlu0 %2955, %v3284_v35   ;;  %vm863_vm2 = vcmp.lt.f32.partialorder %v745_v61, 0.25  ;;  %v5846_v62 = vmov 0  ;;  %v3575_v32 = vadd.f32 %v706_v17, %v690_v42  ;;  %vm1979_vm8 = vcmp.lt.f32.partialorder %v745_v61, 1.0 }
 0x10a   : > { %5845 = vst [vmem:[#allocation30_spill] sm:$0xff] %v3499_v6  ;;  %v730_v6 = vmul.f32 %v666_v36, %v666_v36  ;;  %v688_v36 = vmul.f32 %v504_v43, %v504_v43  ;;  %vm847_vm0 = vcmp.eq.f32.partialorder %v3501_v19, %v3526_v0  ;;  %v692_v7 = vmul.f32 %v508_v41, %v508_v41 }
 0x10b   : > { %vm3559_vm4 = vmand %vm863_vm2, %vm847_vm0  ;;  %v694_v14 = vmul.f32 %v510_v57, %v510_v57  ;;  %v715_v53 = vadd.f32 %v699_v58, %v683_v49  ;;  %v3096_v41 = vmov 1.0|1.0   ;;  %v5850_v17 = vmov 0 }
 0x10c   : > { %v3534_v45 = vadd.f32 %v730_v6, %v714_v39  ;;  %v594_v39 = vsub.f32 %v3362_v63, %v3468_v20  ;;  %v670_v6 = vsub.f32 %v3446_v30, %v3470_v47  ;;  %v3553_v23 = vadd.f32 %v704_v22, %v688_v36  ;;  %vm3598_vm10 = vmand %vm1979_vm8, %vm847_vm0 }
 0x10d   : > { %1397 = vperm.xlu1 %2953, %v3368_v1   ;;  %v3512_v40 = vpop.permute.xlu1 %658  ;;  %v3514_v24 = vpop.permute.xlu0 %778  ;;  %1474 = vperm.xlu0 %2955, %v3329_v52   ;;  %v5847_v62 = vsel %vm3559_vm4, 4294967295, %v5846_v62  ;;  %v585_v63 = vsub.f32 %v3397_v11, %v3468_v20  ;;  %v748_v30 = vadd.f32 %v732_v46, %v716_v38  ;;  %v512_v11 = vsub.f32 %v3371_v2, %v3466_v55 }
 0x10e   : > { %vm864_vm3 = vcmp.lt.f32.partialorder %v3534_v45, 0.25  ;;  %v710_v50 = vmul.f32 %v594_v39, %v594_v39  ;;  %v685_v36 = vmul.f32 %v501_v25, %v501_v25  ;;  %v734_v22 = vmul.f32 %v670_v6, %v670_v6 }
 0x10f   : > { %vm850_vm7 = vcmp.eq.f32.partialorder %v3514_v24, %v3526_v0  ;;  %v3586_v42 = vadd.f32 %v708_v21, %v692_v7  ;;  %v669_v2 = vsub.f32 %v3393_v10, %v3470_v47  ;;  %v701_v49 = vmul.f32 %v585_v63, %v585_v63 }
 0x110   : > { %v747_v9 = vadd.f32 %v731_v26, %v715_v53  ;;  %v672_v46 = vsub.f32 %v3452_v33, %v3470_v47  ;;  %vm866_vm9 = vcmp.lt.f32.partialorder %v748_v30, 0.25  ;;  %v5851_v17 = vsel %vm3598_vm10, 4294967295, %v5850_v17 }
 0x111   : > { %1405 = vperm.xlu1 %2953, %v3377_v5   ;;  %v3541_v43 = vpop.permute.xlu0 %788  ;;  %1482 = vperm.xlu0 %2955, %v3341_v56   ;;  %v5852_v10 = vmov 3   ;;  %v3606_v28 = vadd.f32 %v710_v50, %v694_v14  ;;  %v596_v61 = vsub.f32 %v3374_v3, %v3468_v20  ;;  %v587_v33 = vsub.f32 %v3403_v13, %v3468_v20  ;;  %vm3615_vm11 = vmand %vm866_vm9, %vm850_vm7 }
 0x112   : > { %v769_v29 = vpop.permute.xlu1 %768  ;;  %v5853_v19 = vmov 0  ;;  %vm1980_vm12 = vcmp.lt.f32.partialorder %v3534_v45, 1.0  ;;  %v3623_v58 = vmul.f32 %v512_v11, %v512_v11  ;;  %v717_v25 = vadd.f32 %v701_v49, %v685_v36  ;;  %v5866_v49 = vld [vmem:[#allocation22_spill] sm:$0xff] }
 0x113   : > { %vm848_vm1 = vcmp.eq.f32.partialorder %v769_v29, %v3526_v0  ;;  %v5854_v19 = vsel %vm3615_vm11, 4294967295, %v5853_v19  ;;  %v750_v3 = vadd.f32 %v734_v22, %v3528_v27  ;;  %v5855_v13 = vmov 0 }
 0x114   : > { %vm3570_vm5 = vmand %vm864_vm3, %vm848_vm1  ;;  %v733_v6 = vmul.f32 %v669_v2, %v669_v2  ;;  %v671_v45 = vsub.f32 %v3400_v12, %v3470_v47  ;;  %v687_v7 = vmul.f32 %v503_v54, %v503_v54  ;;  %vm1982_vm15 = vcmp.lt.f32.partialorder %v748_v30, 1.0 }
 0x115   : > { %1413 = vperm.xlu1 %2953, %v3387_v8   ;;  %v3566_v37 = vpop.permute.xlu0 %798  ;;  %v5849_v59 = vsel %vm3570_vm5, 4294967295, %v5848_v59  ;;  %1490 = vperm.xlu0 %2955, %v3353_v60   ;;  %vm2708_vm6 = vmpackc.low %vm3570_vm5, %vm3559_vm4  ;;  %v736_v27 = vmul.f32 %v672_v46, %v672_v46  ;;  %v674_v21 = vsub.f32 %v3461_v51, %v3470_v47  ;;  %v5857_v29 = vmov 0 }
 0x116   : > { %v774_v38 = vpop.permute.xlu1 %773  ;;  %2793 = vmatprep.subr.msk.bf16.mxu0 %vm2708_vm6, %v3096_v41  ;;  %vm3629_vm14 = vmand %vm1980_vm12, %vm848_vm1  ;;  %vm852_vm2 = vcmp.eq.f32.partialorder %v3541_v43, %v3526_v0  ;;  %vm865_vm3 = vcmp.lt.f32.partialorder %v747_v9, 0.25  ;;  %v703_v63 = vmul.f32 %v587_v33, %v587_v33  ;;  %v673_v51 = vsub.f32 %v3406_v15, %v3470_v47  ;;  %v5871_v43 = vld [vmem:[#allocation28_spill] sm:$0xff] }
 0x117   : > { %2794 = vmatpush3.bf16.msk.msra.mxu0 %vm2708_vm6, %v3096_v41  ;;  %vm849_vm13 = vcmp.eq.f32.partialorder %v774_v38, %v3526_v0  ;;  %v5856_v13 = vsel %vm3629_vm14, 4294967295, %v5855_v13  ;;  %vm2740_vm0 = vmpackc.low %vm3629_vm14, %vm3598_vm10  ;;  %v505_v24 = vsub.f32 %v3448_v31, %v3466_v55  ;;  %v5859_v26 = vmov 0 }
 0x118   : > { %vm3644_vm1 = vmand %vm1982_vm15, %vm850_vm7  ;;  %2825 = vmatprep.subr.msk.bf16.mxu1 %vm2740_vm0, %v3096_v41  ;;  %vm1981_vm7 = vcmp.lt.f32.partialorder %v747_v9, 1.0  ;;  %v589_v14 = vsub.f32 %v3409_v16, %v3468_v20  ;;  %v675_v15 = vsub.f32 %v3412_v4, %v3470_v47  ;;  %vm868_vm8 = vcmp.lt.f32.partialorder %v750_v3, 0.25 }
 0x119   : > { %2954 = vset.pattern.permute.xlu1 %v5852_v10  ;;  %v3603_v57 = vpop.permute.xlu0 %808  ;;  %1498 = vperm.xlu0 %2955, %v3368_v1   ;;  %v5858_v29 = vsel %vm3644_vm1, 4294967295, %v5857_v29  ;;  %vm3660_vm6 = vmand %vm865_vm3, %vm849_vm13  ;;  %v5861_v31 = vmov 0  ;;  %v749_v50 = vadd.f32 %v733_v6, %v717_v25  ;;  %v3678_v11 = vmul.f32 %v596_v61, %v596_v61 }
 0x11a   : > { %1458 = vperm.xlu1 %2954, %v3305_v44   ;;  %v3621_v39 = vpop.permute.xlu1 %783  ;;  %v5860_v26 = vsel %vm3660_vm6, 4294967295, %v5859_v26  ;;  %2826 = vmatpush3.bf16.msk.msra.mxu1 %vm2740_vm0, %v3096_v41  ;;  %vm3674_vm9 = vmand %vm1981_vm7, %vm849_vm13  ;;  %v735_v53 = vmul.f32 %v671_v45, %v671_v45  ;;  %v719_v36 = vadd.f32 %v703_v63, %v687_v7  ;;  %v507_v22 = vsub.f32 %v3454_v34, %v3466_v55 }
 0x11b   : > { %v5862_v31 = vsel %vm3674_vm9, 4294967295, %v5861_v31  ;;  %vm3685_vm12 = vmand %vm868_vm8, %vm852_vm2  ;;  %v5863_v16 = vmov 0  ;;  %v752_v4 = vadd.f32 %v736_v27, %v3553_v23  ;;  %v738_v38 = vmul.f32 %v674_v21, %v674_v21  ;;  %v5876_v21 = vld [vmem:[#allocation30_spill] sm:$0xff] }
 0x11c   : > { %v5864_v16 = vsel %vm3685_vm12, 4294967295, %v5863_v16  ;;  %v676_v2 = vsub.f32 %v3478_v18, %v3470_v47  ;;  %vm2710_vm15 = vmpackc.low %vm3615_vm11, %vm3660_vm6  ;;  %v737_v54 = vmul.f32 %v673_v51, %v673_v51  ;;  %v591_v23 = vsub.f32 %v5866_v49, %v3468_v20  ;;  %v5867_v18 = vld [vmem:[#allocation15_spill] sm:$0xff] }
 0x11d   : > { %v3651_v12 = vpop.permute.xlu0 %818  ;;  %1506 = vperm.xlu0 %2955, %v3377_v5   ;;  %5865 = vst [vmem:[#allocation31_spill] sm:$0xff] %v5864_v16  ;;  %v689_v9 = vmul.f32 %v505_v24, %v505_v24  ;;  %vm1984_vm0 = vcmp.lt.f32.partialorder %v750_v3, 1.0  ;;  %2795 = vmatprep.subr.msk.bf16.mxu0 %vm2710_vm15, %v3096_v41  ;;  %vm2742_vm3 = vmpackc.low %vm3644_vm1, %vm3674_vm9  ;;  %v705_v10 = vmul.f32 %v589_v14, %v589_v14  ;;  %v5868_v33 = vmov 0  ;;  %v4297_v16 = vld [vmem:[#allocation3 + $0x1] ss:$0 sm:$0xff] }
 0x11e   : > { %1466 = vperm.xlu1 %2954, %v3317_v48   ;;  %v3666_v30 = vpop.permute.xlu1 %793  ;;  %v3716_v61 = vmul.f32 %v675_v15, %v675_v15  ;;  %vm3721_vm7 = vmand %vm1984_vm0, %vm852_vm2  ;;  %vm867_vm13 = vcmp.lt.f32.partialorder %v749_v50, 0.25  ;;  %2827 = vmatprep.subr.msk.bf16.mxu1 %vm2742_vm3, %v3096_v41  ;;  %v691_v25 = vmul.f32 %v507_v22, %v507_v22  ;;  %v509_v3 = vsub.f32 %v5871_v43, %v3466_v55 }
 0x11f   : > { %v5869_v33 = vsel %vm3721_vm7, 4294967295, %v5868_v33  ;;  %2796 = vmatpush3.bf16.msk.msra.mxu0 %vm2710_vm15, %v3096_v41  ;;  %vm5872_vm2 = vcmp.eq.f32.partialorder %v3621_v39, %v3526_v0  ;;  %v5873_v6 = vmov 0  ;;  %vm1983_vm8 = vcmp.lt.f32.partialorder %v749_v50, 1.0  ;;  %2828 = vmatpush3.bf16.msk.msra.mxu1 %vm2742_vm3, %v3096_v41  ;;  %v5886_v39 = vld [vmem:[#allocation16_spill] sm:$0xff] }
 0x120   : > { %5870 = vst [vmem:[#allocation22_spill] sm:$0xff] %v5869_v33  ;;  %vm3739_vm0 = vmand %vm867_vm13, %vm5872_vm2  ;;  %v751_v45 = vadd.f32 %v735_v53, %v719_v36  ;;  %v754_v7 = vadd.f32 %v738_v38, %v3575_v32  ;;  %v740_v27 = vmul.f32 %v676_v2, %v676_v2  ;;  %v678_v63 = vsub.f32 %v5876_v21, %v3470_v47  ;;  %v5881_v32 = vld [vmem:[#allocation24_spill] sm:$0xff]  ;;  %v5887_v38 = vld [vmem:[#allocation23_spill] sm:$0xff] }
 0x121   : > { %v3698_v34 = vpop.permute.xlu0 %828  ;;  %1514 = vperm.xlu0 %2955, %v3387_v8   ;;  %v5874_v6 = vsel %vm3739_vm0, 4294967295, %v5873_v6  ;;  %vm870_vm15 = vcmp.lt.f32.partialorder %v752_v4, 0.25  ;;  %vm5877_vm14 = vmmov %vm5872_vm2  ;;  %v5878_v51 = vmov 0  ;;  %v3097_v14 = vmov 4  }
 0x122   : > { %1470 = vperm.xlu1 %2954, %v5867_v18   ;;  %v3714_v46 = vpop.permute.xlu1 %803  ;;  %5875 = vst [vmem:[#allocation15_spill] sm:$0xff] %v5874_v6  ;;  %vm3750_vm5 = vmand %vm1983_vm8, %vm5877_vm14  ;;  %v707_v15 = vmul.f32 %v591_v23, %v591_v23  ;;  %v593_v50 = vsub.f32 %v5881_v32, %v3468_v20  ;;  %v721_v53 = vadd.f32 %v705_v10, %v689_v9  ;;  %v5883_v36 = vmov 0  ;;  %v5888_v10 = vld [vmem:[#allocation29_spill] sm:$0xff] }
 0x123   : > { %v5879_v51 = vsel %vm3750_vm5, 4294967295, %v5878_v51  ;;  %vm5882_vm13 = vcmp.eq.f32.partialorder %v3566_v37, %v3526_v0  ;;  %v677_v2 = vsub.f32 %v5887_v38, %v3470_v47  ;;  %v680_v49 = vsub.f32 %v3512_v40, %v3470_v47  ;;  %vm2712_vm2 = vmpackc.low %vm3685_vm12, %vm3739_vm0 }
 0x124   : > { %5880 = vst [vmem:[#allocation28_spill] sm:$0xff] %v5879_v51  ;;  %vm3762_vm3 = vmand %vm870_vm15, %vm5882_vm13  ;;  %v723_v23 = vadd.f32 %v707_v15, %v691_v25  ;;  %v693_v9 = vmul.f32 %v509_v3, %v509_v3  ;;  %v511_v43 = vsub.f32 %v5888_v10, %v3466_v55  ;;  %vm1986_vm15 = vcmp.lt.f32.partialorder %v752_v4, 1.0  ;;  %2797 = vmatprep.subr.msk.bf16.mxu0 %vm2712_vm2, %v3096_v41  ;;  %v5893_v3 = vld [vmem:[#allocation26_spill] sm:$0xff]  ;;  %v5901_v15 = vld [vmem:[#allocation17_spill] sm:$0xff] }
 0x125   : > { %v3754_v24 = vpop.permute.xlu0 %838  ;;  %2956 = vset.pattern.permute.xlu0 %v3097_v14  ;;  %v5884_v36 = vsel %vm3762_vm3, 4294967295, %v5883_v36  ;;  %vm2744_vm13 = vmpackc.low %vm3721_vm7, %vm3750_vm5  ;;  %v756_v40 = vadd.f32 %v740_v27, %v3586_v42  ;;  %v742_v21 = vmul.f32 %v678_v63, %v678_v63  ;;  %vm5889_vm8 = vcmp.eq.f32.partialorder %v3566_v37, %v3526_v0  ;;  %2798 = vmatpush3.bf16.msk.msra.mxu0 %vm2712_vm2, %v3096_v41 }
 0x126   : > { %5885 = vst [vmem:[#allocation30_spill] sm:$0xff] %v5884_v36  ;;  %1478 = vperm.xlu1 %2954, %v5886_v39   ;;  %v3767_v22 = vpop.permute.xlu1 %813  ;;  %1559 = vperm.xlu0 %2956, %v3305_v44   ;;  %vm3793_vm14 = vmand %vm1986_vm15, %vm5889_vm8  ;;  %v5890_v25 = vmov 0  ;;  %vm872_vm12 = vcmp.lt.f32.partialorder %v754_v7, 0.25  ;;  %vm869_vm0 = vcmp.lt.f32.partialorder %v751_v45, 0.25  ;;  %v709_v4 = vmul.f32 %v593_v50, %v593_v50 }
 0x127   : > { %v5891_v25 = vsel %vm3793_vm14, 4294967295, %v5890_v25  ;;  %2829 = vmatprep.subr.msk.bf16.mxu1 %vm2744_vm13, %v3096_v41  ;;  %v595_v42 = vsub.f32 %v5893_v3, %v3468_v20  ;;  %vm5894_vm7 = vcmp.eq.f32.partialorder %v3603_v57, %v3526_v0  ;;  %v5895_v37 = vmov 0 }
 0x128   : > { %5892 = vst [vmem:[#allocation24_spill] sm:$0xff] %v5891_v25  ;;  %vm3806_vm5 = vmand %vm872_vm12, %vm5894_vm7  ;;  %vm5898_vm8 = vcmp.eq.f32.partialorder %v3666_v30, %v3526_v0  ;;  %v5899_v27 = vmov 0  ;;  %vm1985_vm2 = vcmp.lt.f32.partialorder %v751_v45, 1.0  ;;  %2830 = vmatpush3.bf16.msk.msra.mxu1 %vm2744_vm13, %v3096_v41  ;;  %v753_v63 = vadd.f32 %v737_v54, %v721_v53 }
 0x129   : > { %v3799_v55 = vpop.permute.xlu0 %1145  ;;  %v5896_v37 = vsel %vm3806_vm5, 4294967295, %v5895_v37  ;;  %vm3813_vm15 = vmand %vm869_vm0, %vm5898_vm8  ;;  %v728_v32 = vadd.f32 %v3678_v11, %v3623_v58  ;;  %v744_v50 = vmul.f32 %v680_v49, %v680_v49  ;;  %vm1988_vm12 = vcmp.lt.f32.partialorder %v754_v7, 1.0  ;;  %v5909_v7 = vld [vmem:[#allocation25_spill] sm:$0xff] }
 0x12a   : > { %5897 = vst [vmem:[#allocation16_spill] sm:$0xff] %v5896_v37  ;;  %v5900_v27 = vsel %vm3813_vm15, 4294967295, %v5899_v27  ;;  %1486 = vperm.xlu1 %2954, %v5901_v15   ;;  %v3819_v20 = vpop.permute.xlu1 %823  ;;  %vm5902_vm0 = vmmov %vm5898_vm8  ;;  %v5903_v45 = vmov 0  ;;  %1571 = vperm.xlu0 %2956, %v5867_v18   ;;  %v725_v54 = vadd.f32 %v709_v4, %v693_v9  ;;  %v695_v53 = vmul.f32 %v511_v43, %v511_v43 }
 0x12b   : > { %vm3828_vm8 = vmand %vm1985_vm2, %vm5902_vm0  ;;  %v5906_v58 = vmov 0  ;;  %v755_v30 = vadd.f32 %v3716_v61, %v723_v23  ;;  %v741_v11 = vmul.f32 %v677_v2, %v677_v2  ;;  %v679_v38 = vsub.f32 %v5909_v7, %v3470_v47  ;;  %v5914_v47 = vld [vmem:[#allocation18_spill] sm:$0xff] }
 0x12c   : > { %v5904_v45 = vsel %vm3828_vm8, 4294967295, %v5903_v45  ;;  %vm5905_vm13 = vmmov %vm5894_vm7  ;;  %v758_v49 = vadd.f32 %v742_v21, %v3606_v28  ;;  %vm874_vm2 = vcmp.lt.f32.partialorder %v756_v40, 0.25  ;;  %v711_v9 = vmul.f32 %v595_v42, %v595_v42 }
 0x12d   : > { %vm3836_vm1 = vmand %vm1988_vm12, %vm5905_vm13  ;;  %v3850_v57 = vpop.permute.xlu0 %1155  ;;  %vm5910_vm0 = vcmp.eq.f32.partialorder %v3651_v12, %v3526_v0  ;;  %v5911_v61 = vmov 0  ;;  %vm1990_vm7 = vcmp.lt.f32.partialorder %v756_v40, 1.0  ;;  %vm871_vm11 = vcmp.lt.f32.partialorder %v753_v63, 0.25 }
 0x12e   : > { %v5907_v58 = vsel %vm3836_vm1, 4294967295, %v5906_v58  ;;  %vm5646_vm12 = vmpackc.low %vm3762_vm3, %vm3813_vm15  ;;  %1494 = vperm.xlu1 %2954, %v5914_v47   ;;  %v834_v28 = vpop.permute.xlu1 %833  ;;  %v760_v2 = vadd.f32 %v744_v50, %v728_v32  ;;  %v5915_v23 = vmov 0  ;;  %v5919_v10 = vmov 0  ;;  %1579 = vperm.xlu0 %2956, %v5886_v39  }
 0x12f   : > { %5908 = vst [vmem:[#allocation23_spill] sm:$0xff] %v5907_v58  ;;  %vm3855_vm13 = vmand %vm874_vm2, %vm5910_vm0  ;;  %2799 = vmatprep.subr.msk.bf16.mxu0 %vm5646_vm12, %v3096_v41  ;;  %vm1987_vm2 = vcmp.lt.f32.partialorder %v753_v63, 1.0  ;;  %v727_v12 = vadd.f32 %v711_v9, %v695_v53  ;;  %v5924_v43 = vmov 0  ;;  %v757_v40 = vadd.f32 %v741_v11, %v725_v54  ;;  %v5940_v63 = vld [vmem:[#allocation19_spill] sm:$0xff]  ;;  %v5962_v11 = vld [vmem:[#allocation20_spill] sm:$0xff] }
 0x130   : > { %v5912_v61 = vsel %vm3855_vm13, 4294967295, %v5911_v61  ;;  %vm2746_vm10 = vmpackc.low %vm3793_vm14, %vm3828_vm8  ;;  %vm5918_vm14 = vcmp.eq.f32.partialorder %v3714_v46, %v3526_v0  ;;  %v5928_v21 = vmov 0  ;;  %v743_v4 = vmul.f32 %v679_v38, %v679_v38 }
 0x131   : > { %5913 = vst [vmem:[#allocation29_spill] sm:$0xff] %v5912_v61  ;;  %vm3875_vm4 = vmand %vm1990_vm7, %vm5910_vm0  ;;  %2831 = vmatprep.subr.msk.bf16.mxu1 %vm2746_vm10, %v3096_v41  ;;  %v3913_v46 = vpop.permute.xlu0 %1165  ;;  %v5933_v3 = vmov 0  ;;  %v5937_v42 = vmov 0  ;;  %v5942_v50 = vmov 0  ;;  %v5950_v54 = vmov 0 }
 0x132   : > { %v5916_v23 = vsel %vm3875_vm4, 4294967295, %v5915_v23  ;;  %vm3884_vm8 = vmand %vm871_vm11, %vm5918_vm14  ;;  %2832 = vmatpush3.bf16.msk.msra.mxu1 %vm2746_vm10, %v3096_v41  ;;  %vm873_vm11 = vcmp.lt.f32.partialorder %v755_v30, 0.25  ;;  %5931 = vst [vmem:[#allocation32_spill] sm:$0xff] %v3913_v46  ;;  %vm5932_vm10 = vcmp.eq.f32.partialorder %v3698_v34, %v3526_v0  ;;  %1502 = vperm.xlu1 %2954, %v5940_v63   ;;  %v3932_v32 = vpop.permute.xlu1 %1140  ;;  %v759_v34 = vadd.f32 %v743_v4, %v727_v12  ;;  %v2969_v12 = vld [vmem:[%s5605_s0 + $0x8] sm:$0xff]  }
 0x133   : > { %5917 = vst [vmem:[#allocation26_spill] sm:$0xff] %v5916_v23  ;;  %v5920_v10 = vsel %vm3884_vm8, 4294967295, %v5919_v10  ;;  %vm5922_vm7 = vmpackc.low %vm3762_vm3, %vm3813_vm15  ;;  %vm1992_vm15 = vcmp.lt.f32.partialorder %v758_v49, 1.0  ;;  %1587 = vperm.xlu0 %2956, %v5901_v15   ;;  %v5954_v53 = vmov 0  ;;  %v5967_v38 = vmov 0  ;;  %v2980_v23 = vld [vmem:[%s3241_s19 + $0x48] sm:$0xff] }
 0x134   : > { %5921 = vst [vmem:[#allocation17_spill] sm:$0xff] %v5920_v10  ;;  %2800 = vmatpush3.bf16.msk.msra.mxu0 %vm5922_vm7, %v3096_v41  ;;  %vm5923_vm0 = vmmov %vm5918_vm14  ;;  %vm876_vm14 = vcmp.lt.f32.partialorder %v758_v49, 0.25  ;;  %vm5927_vm7 = vcmp.eq.f32.partialorder %v3767_v22, %v3526_v0  ;;  %v5946_v22 = vmov 0  ;;  %v5970_v49 = vld [vmem:[#allocation21_spill] sm:$0xff]  ;;  %v5998_v58 = vmov 6  }
 0x135   : > { %vm3898_vm12 = vmand %vm1987_vm2, %vm5923_vm0  ;;  %vm1989_vm2 = vcmp.lt.f32.partialorder %v755_v30, 1.0  ;;  %v3974_v30 = vpop.permute.xlu0 %1175  ;;  %v6006_v61 = vmov 7   ;;  %v2985_v10 = vld [vmem:[%s3241_s19 + $0x28] sm:$0xff] }
 0x136   : > { %v5925_v43 = vsel %vm3898_vm12, 4294967295, %v5924_v43  ;;  %vm3909_vm3 = vmand %vm873_vm11, %vm5927_vm7  ;;  %5957 = vst [vmem:[#allocation38_spill] sm:$0xff] %v3974_v30  ;;  %1510 = vperm.xlu1 %2954, %v5962_v11   ;;  %v3986_v7 = vpop.permute.xlu1 %1150 }
 0x137   : > { %5926 = vst [vmem:[#allocation25_spill] sm:$0xff] %v5925_v43  ;;  %v5929_v21 = vsel %vm3909_vm3, 4294967295, %v5928_v21  ;;  %vm3918_vm0 = vmand %vm876_vm14, %vm5932_vm10  ;;  %1595 = vperm.xlu0 %2956, %v5914_v47   ;;  %v2984_v43 = vld [vmem:[%s3241_s19 + $0x18] sm:$0xff] }
 0x138   : > { %5930 = vst [vmem:[#allocation18_spill] sm:$0xff] %v5929_v21  ;;  %v5934_v3 = vsel %vm3918_vm0, 4294967295, %v5933_v3  ;;  %vm5936_vm9 = vmmov %vm5927_vm7  ;;  %vm1994_vm0 = vcmp.lt.f32.partialorder %v760_v2, 1.0 }
 0x139   : > { %5935 = vst [vmem:[#allocation33_spill] sm:$0xff] %v5934_v3  ;;  %vm3925_vm6 = vmand %vm1989_vm2, %vm5936_vm9  ;;  %vm5945_vm2 = vcmp.eq.f32.partialorder %v3754_v24, %v3526_v0  ;;  %v5959_v24 = vmov 0 }
 0x13a   : > { %v5938_v42 = vsel %vm3925_vm6, 4294967295, %v5937_v42  ;;  %vm5941_vm14 = vmmov %vm5932_vm10  ;;  %vm878_vm10 = vcmp.lt.f32.partialorder %v760_v2, 0.25  ;;  %1518 = vperm.xlu1 %2954, %v5970_v49   ;;  %v4012_v9 = vpop.permute.xlu1 %1160 }
 0x13b   : > { %5939 = vst [vmem:[#allocation34_spill] sm:$0xff] %v5938_v42  ;;  %vm3937_vm7 = vmand %vm1992_vm15, %vm5941_vm14  ;;  %vm875_vm14 = vcmp.lt.f32.partialorder %v757_v40, 0.25  ;;  %1603 = vperm.xlu0 %2956, %v5940_v63  }
 0x13c   : > { %v5943_v50 = vsel %vm3937_vm7, 4294967295, %v5942_v50  ;;  %vm2716_vm9 = vmpackc.low %vm3806_vm5, %vm3884_vm8  ;;  %5971 = vst [vmem:[#allocation21_spill] sm:$0xff] %v4012_v9 }
 0x13d   : > { %5944 = vst [vmem:[#allocation19_spill] sm:$0xff] %v5943_v50  ;;  %vm3948_vm11 = vmand %vm878_vm10, %vm5945_vm2  ;;  %2801 = vmatprep.subr.msk.bf16.mxu0 %vm2716_vm9, %v3096_v41  ;;  %vm5953_vm10 = vcmp.eq.f32.partialorder %v3819_v20, %v3526_v0  ;;  %v4004_v20 = vpop.permute.xlu0 %1185 }
 0x13e   : > { %v5947_v22 = vsel %vm3948_vm11, 4294967295, %v5946_v22  ;;  %vm2748_vm15 = vmpackc.low %vm3836_vm1, %vm3898_vm12  ;;  %2802 = vmatpush3.bf16.msk.msra.mxu0 %vm2716_vm9, %v3096_v41  ;;  %vm1991_vm1 = vcmp.lt.f32.partialorder %v757_v40, 1.0  ;;  %vm861_vm9 = vcmp.eq.f32.partialorder %v834_v28, %v3526_v0  ;;  %v5963_v0 = vmov 0  ;;  %5966 = vst [vmem:[#allocation40_spill] sm:$0xff] %v4004_v20  ;;  %v4038_v2 = vpop.permute.xlu1 %1170  ;;  %2957 = vset.pattern.permute.xlu1 %v3097_v14  ;;  %v2970_v40 = vld [vmem:[%s5605_s0 + $0x10] sm:$0xff]  }
 0x13f   : > { %5948 = vst [vmem:[#allocation35_spill] sm:$0xff] %v5947_v22  ;;  %vm5949_vm5 = vmmov %vm5945_vm2  ;;  %2833 = vmatprep.subr.msk.bf16.mxu1 %vm2748_vm15, %v3096_v41  ;;  %1563 = vperm.xlu1 %2957, %v3284_v35   ;;  %v2973_v22 = vld [vmem:[%s5605_s0 + $0x28] sm:$0xff]  }
 0x140   : > { %vm3961_vm8 = vmand %vm1994_vm0, %vm5949_vm5  ;;  %2834 = vmatpush3.bf16.msk.msra.mxu1 %vm2748_vm15, %v3096_v41  ;;  %vm877_vm15 = vcmp.lt.f32.partialorder %v759_v34, 0.25  ;;  %1611 = vperm.xlu0 %2956, %v5962_v11  }
 0x141   : > { %v5951_v54 = vsel %vm3961_vm8, 4294967295, %v5950_v54  ;;  %vm3970_vm2 = vmand %vm875_vm14, %vm5953_vm10  ;;  %v4030_v28 = vpop.permute.xlu0 %1195 }
 0x142   : > { %5952 = vst [vmem:[#allocation36_spill] sm:$0xff] %v5951_v54  ;;  %v5955_v53 = vsel %vm3970_vm2, 4294967295, %v5954_v53  ;;  %vm5958_vm5 = vmmov %vm5953_vm10 }
 0x143   : > { %5956 = vst [vmem:[#allocation37_spill] sm:$0xff] %v5955_v53  ;;  %vm3980_vm0 = vmand %vm1991_vm1, %vm5958_vm5  ;;  %vm1993_vm5 = vcmp.lt.f32.partialorder %v759_v34, 1.0  ;;  %v4054_v34 = vpop.permute.xlu1 %1180  ;;  %1567 = vperm.xlu1 %2957, %v3317_v48  }
 0x144   : > { %v5960_v24 = vsel %vm3980_vm0, 4294967295, %v5959_v24  ;;  %vm2718_vm14 = vmpackc.low %vm3855_vm13, %vm3909_vm3  ;;  %5973 = vst [vmem:[#allocation42_spill] sm:$0xff] %v4030_v28  ;;  %1619 = vperm.xlu0 %2956, %v5970_v49  }
 0x145   : > { %5961 = vst [vmem:[#allocation39_spill] sm:$0xff] %v5960_v24  ;;  %2803 = vmatprep.subr.msk.bf16.mxu0 %vm2718_vm14, %v3096_v41  ;;  %vm2750_vm1 = vmpackc.low %vm3875_vm4, %vm3925_vm6  ;;  %v4051_v4 = vpop.permute.xlu0 %1205  ;;  %v2975_v24 = vld [vmem:[%s5605_s0 + $0x38] sm:$0xff]  }
 0x146   : > { %2835 = vmatprep.subr.msk.bf16.mxu1 %vm2750_vm1, %v3096_v41  ;;  %2804 = vmatpush3.bf16.msk.msra.mxu0 %vm2718_vm14, %v3096_v41  ;;  %vm4000_vm10 = vmand %vm877_vm15, %vm861_vm9  ;;  %vm5972_vm14 = vnez %v5934_v3  ;;  %5974 = vst [vmem:[#allocation43_spill] sm:$0xff] %v4051_v4  ;;  %v2971_v4 = vld [vmem:[%s5605_s0 + $0x18] sm:$0xff]  }
 0x147   : > { %v5964_v0 = vsel %vm4000_vm10, 4294967295, %v5963_v0  ;;  %2836 = vmatpush3.bf16.msk.msra.mxu1 %vm2750_vm1, %v3096_v41  ;;  %vm4007_vm13 = vmand %vm1993_vm5, %vm861_vm9  ;;  %5975 = vst [vmem:[#allocation44_spill] sm:$0xff] %v4054_v34  ;;  %v4059_v50 = vpop.permute.xlu1 %1190  ;;  %1575 = vperm.xlu1 %2957, %v3329_v52  }
 0x148   : > { %5965 = vst [vmem:[#allocation20_spill] sm:$0xff] %v5964_v0  ;;  %v5968_v38 = vsel %vm4007_vm13, 4294967295, %v5967_v38  ;;  %vm2720_vm15 = vmpackc.low %vm5972_vm14, %vm3970_vm2  ;;  %vm6050_vm14 = vnez %v5847_v62 }
 0x149   : > { %5969 = vst [vmem:[#allocation41_spill] sm:$0xff] %v5968_v38  ;;  %2805 = vmatprep.subr.msk.bf16.mxu0 %vm2720_vm15, %v3096_v41  ;;  %vm2752_vm1 = vmpackc.low %vm3937_vm7, %vm3980_vm0  ;;  %v4057_v14 = vpop.permute.xlu0 %1215 }
 0x14a   : > { %2837 = vmatprep.subr.msk.bf16.mxu1 %vm2752_vm1, %v3096_v41  ;;  %2806 = vmatpush3.bf16.msk.msra.mxu0 %vm2720_vm15, %v3096_v41  ;;  %vm2722_vm9 = vmpackc.low %vm3948_vm11, %vm4000_vm10  ;;  %5976 = vst [vmem:[#allocation45_spill] sm:$0xff] %v4057_v14 }
 0x14b   : > { %2838 = vmatpush3.bf16.msk.msra.mxu1 %vm2752_vm1, %v3096_v41  ;;  %2807 = vmatprep.subr.msk.bf16.mxu0 %vm2722_vm9, %v3096_v41  ;;  %vm2754_vm5 = vmpackc.low %vm3961_vm8, %vm4007_vm13  ;;  %5977 = vst [vmem:[#allocation46_spill] sm:$0xff] %v4059_v50  ;;  %v4069_v3 = vpop.permute.xlu1 %1200  ;;  %vm6041_vm1 = vnez %v5860_v26 }
 0x14c   : > { %2839 = vmatprep.subr.msk.bf16.mxu1 %vm2754_vm5, %v3096_v41  ;;  %5978 = vst [vmem:[#allocation47_spill] sm:$0xff] %v4069_v3  ;;  %1583 = vperm.xlu1 %2957, %v3341_v56  }
 0x14e   : > { %2808 = vmatpush3.bf16.msk.msra.mxu0 %vm2722_vm9, %v3096_v41 }
 0x14f   : > { %2840 = vmatpush3.bf16.msk.msra.mxu1 %vm2754_vm5, %v3096_v41  ;;  %v2972_v41 = vld [vmem:[%s5605_s0 + $0x20] sm:$0xff]   ;;  %v4075_v54 = vpop.permute.xlu1 %1210 }
 0x150   : > { %5979 = vst [vmem:[#allocation48_spill] sm:$0xff] %v4075_v54  ;;  %1591 = vperm.xlu1 %2957, %v3353_v60  }
 0x151   : > { %2810 = vmatmul.mubr.bf16.vlgmr.msra.gmra.mrb[0].mxu0 %v2969_v12 }
 0x152   : > { %2842 = vmatmul.mubr.bf16.vlgmr.msra.gmra.mrb[0].mxu1 %v2969_v12  ;;  %2813 = vmatprep.mubr.bf16.mxu0 %v2970_v40  ;;  %v3098_v12 = vmov 5  }
 0x153   : > { %2845 = vmatprep.mubr.bf16.mxu1 %v2970_v40  ;;  %2959 = vset.pattern.permute.xlu0 %v3098_v12  ;;  %v4071_v40 = vpop.permute.xlu0 %1260 }
 0x154   : > { %1664 = vperm.xlu0 %2959, %v3284_v35   ;;  %v2974_v35 = vld [vmem:[%s5605_s0 + $0x30] sm:$0xff]   ;;  %1599 = vperm.xlu1 %2957, %v3368_v1  }
 0x157   : > { %v4077_v14 = vpop.permute.xlu0 %1272 }
 0x158   : > { %5980 = vst [vmem:[#allocation49_spill] sm:$0xff] %v4077_v14  ;;  %1676 = vperm.xlu0 %2959, %v3329_v52   ;;  %1607 = vperm.xlu1 %2957, %v3377_v5  }
 0x159   : > { %2814 = vmatmul.mubr.bf16.gmra.mrb[4].mxu0 %v2971_v4 }
 0x15a   : > { %2846 = vmatmul.mubr.bf16.gmra.mrb[4].mxu1 %v2971_v4  ;;  %2817 = vmatprep.mubr.bf16.mxu0 %v2972_v41  ;;  %v4089_v4 = vpop.permute.xlu1 %1256 }
 0x15b   : > { %2849 = vmatprep.mubr.bf16.mxu1 %v2972_v41  ;;  %v4087_v3 = vpop.permute.xlu0 %1280 }
 0x15c   : > { %1684 = vperm.xlu0 %2959, %v3341_v56   ;;  %1615 = vperm.xlu1 %2957, %v3387_v8  }
 0x15e   : > { %v4095_v41 = vpop.permute.xlu1 %1264 }
 0x15f   : > { %v4093_v52 = vpop.permute.xlu0 %1288 }
 0x160   : > { %5981 = vst [vmem:[#allocation50_spill] sm:$0xff] %v4093_v52  ;;  %1692 = vperm.xlu0 %2959, %v3353_v60   ;;  %2958 = vset.pattern.permute.xlu1 %v3098_v12 }
 0x161   : > { %2818 = vmatmul.mubr.bf16.gmra.mrb[8].mxu0 %v2973_v22  ;;  %1660 = vperm.xlu1 %2958, %v3305_v44  }
 0x162   : > { %2850 = vmatmul.mubr.bf16.gmra.mrb[8].mxu1 %v2973_v22  ;;  %2821 = vmatprep.mubr.bf16.mxu0 %v2974_v35  ;;  %v4104_v56 = vpop.permute.xlu1 %1268 }
 0x163   : > { %2853 = vmatprep.mubr.bf16.mxu1 %v2974_v35  ;;  %v4102_v53 = vpop.permute.xlu0 %1296 }
 0x164   : > { %5982 = vst [vmem:[#allocation51_spill] sm:$0xff] %v4102_v53  ;;  %1700 = vperm.xlu0 %2959, %v3368_v1  }
 0x165   : > { %1668 = vperm.xlu1 %2958, %v3317_v48  }
 0x166   : > { %v4110_v35 = vpop.permute.xlu1 %1276 }
 0x167   : > { %v4108_v22 = vpop.permute.xlu0 %1304  ;;  %5984 = vst [vmem:[#allocation53_spill] sm:$0xff] %v4110_v35 }
 0x168   : > { %5983 = vst [vmem:[#allocation52_spill] sm:$0xff] %v4108_v22  ;;  %1708 = vperm.xlu0 %2959, %v3377_v5  }
 0x169   : > { %2822 = vmatmul.mubr.bf16.gmra.mrb[12].mxu0 %v2975_v24  ;;  %1672 = vperm.xlu1 %2958, %v5867_v18  }
 0x16a   : > { %2854 = vmatmul.mubr.bf16.gmra.mrb[12].mxu1 %v2975_v24  ;;  %v4116_v38 = vpop.permute.xlu1 %1284  ;;  %v5671_v24 = vmov 6  }
 0x16b   : > { %v4114_v60 = vpop.permute.xlu0 %1312  ;;  %5986 = vst [vmem:[#allocation55_spill] sm:$0xff] %v4116_v38 }
 0x16c   : > { %5985 = vst [vmem:[#allocation54_spill] sm:$0xff] %v4114_v60  ;;  %1716 = vperm.xlu0 %2959, %v3387_v8  }
 0x16d   : > { %1680 = vperm.xlu1 %2958, %v5886_v39  }
 0x16e   : > { %v4120_v54 = vpop.permute.xlu1 %1292 }
 0x16f   : > { %5987 = vst [vmem:[#allocation56_spill] sm:$0xff] %v4120_v54  ;;  %v4123_v22 = vpop.permute.xlu0 %1357  ;;  %v2978_v54 = vld [vmem:[%s3241_s19 + $0x20] sm:$0xff] }
 0x170   : > { %2960 = vset.pattern.permute.xlu0 %v5671_v24 }
 0x171   : > { %1761 = vperm.xlu0 %2960, %v3305_v44   ;;  %1688 = vperm.xlu1 %2958, %v5901_v15  }
 0x172   : > { %v4127_v12 = vpop.permute.xlu1 %1300 }
 0x173   : > { %5988 = vst [vmem:[#allocation57_spill] sm:$0xff] %v4127_v12  ;;  %v4129_v60 = vpop.permute.xlu0 %1369  ;;  %v2981_v12 = vld [vmem:[%s3241_s19 + $0x40] sm:$0xff] }
 0x175   : > { %1773 = vperm.xlu0 %2960, %v5867_v18   ;;  %1696 = vperm.xlu1 %2958, %v5914_v47  }
 0x176   : > { %v4133_v48 = vpop.permute.xlu1 %1308 }
 0x177   : > { %5989 = vst [vmem:[#allocation58_spill] sm:$0xff] %v4133_v48  ;;  %v4135_v8 = vpop.permute.xlu0 %1377 }
 0x178   : > { %5990 = vst [vmem:[#allocation59_spill] sm:$0xff] %v4135_v8 }
 0x179   : > { %1781 = vperm.xlu0 %2960, %v5886_v39   ;;  %1704 = vperm.xlu1 %2958, %v5940_v63  }
 0x17a   : > { %v4139_v24 = vpop.permute.xlu1 %1316 }
 0x17b   : > { %5991 = vst [vmem:[#allocation60_spill] sm:$0xff] %v4139_v24  ;;  %v4141_v44 = vpop.permute.xlu0 %1385 }
 0x17c   : > { %5992 = vst [vmem:[#allocation61_spill] sm:$0xff] %v4141_v44 }
 0x17d   : > { %1789 = vperm.xlu0 %2960, %v5901_v15   ;;  %1712 = vperm.xlu1 %2958, %v5962_v11  }
 0x17e   : > { %v4147_v18 = vpop.permute.xlu1 %1361 }
 0x17f   : > { %v4145_v0 = vpop.permute.xlu0 %1393 }
 0x180   : > { %5993 = vst [vmem:[#allocation62_spill] sm:$0xff] %v4145_v0  ;;  %v2977_v0 = vld [vmem:[%s3241_s19 + $0x10] sm:$0xff] }
 0x181   : > { %1797 = vperm.xlu0 %2960, %v5914_v47   ;;  %1720 = vperm.xlu1 %2958, %v5970_v49  }
 0x182   : > { %v4153_v48 = vpop.permute.xlu1 %1365 }
 0x183   : > { %v4151_v39 = vpop.permute.xlu0 %1401 }
 0x184   : > { %5994 = vst [vmem:[#allocation63_spill] sm:$0xff] %v4151_v39 }
 0x185   : > { %1801 = vperm.xlu0 %2960, %v3368_v1   ;;  %2961 = vset.pattern.permute.xlu1 %v5998_v58  ;;  %v2976_v1 = vld [vmem:[%s3241_s19 + $0x8] sm:$0xff] }
 0x186   : > { %v4159_v24 = vpop.permute.xlu1 %1373  ;;  %1765 = vperm.xlu1 %2961, %v2976_v1  }
 0x187   : > { %v4157_v15 = vpop.permute.xlu0 %1409  ;;  %5996 = vst [vmem:[#allocation65_spill] sm:$0xff] %v4159_v24 }
 0x188   : > { %5995 = vst [vmem:[#allocation64_spill] sm:$0xff] %v4157_v15  ;;  %v5683_v15 = vmov 7  }
 0x189   : > { %1809 = vperm.xlu0 %2960, %v3377_v5  }
 0x18a   : > { %v4165_v63 = vpop.permute.xlu1 %1381  ;;  %1769 = vperm.xlu1 %2961, %v2977_v0  }
 0x18b   : > { %v4163_v47 = vpop.permute.xlu0 %1417 }
 0x18c   : > { %5997 = vst [vmem:[#allocation66_spill] sm:$0xff] %v4163_v47 }
 0x18d   : > { %1821 = vperm.xlu0 %2960, %v5970_v49  }
 0x18e   : > { %v4170_v11 = vpop.permute.xlu1 %1389  ;;  %1777 = vperm.xlu1 %2961, %v2978_v54  }
 0x18f   : > { %5999 = vst [vmem:[#allocation67_spill] sm:$0xff] %v4170_v11  ;;  %v4173_v5 = vpop.permute.xlu0 %1462 }
 0x191   : > { %2966 = vset.pattern.permute.xlu0 %v5683_v15  ;;  %v2979_v15 = vld [vmem:[%s3241_s19 + $0x30] sm:$0xff] }
 0x192   : > { %1866 = vperm.xlu0 %2966, %v2976_v1   ;;  %v4176_v47 = vpop.permute.xlu1 %1397  ;;  %1785 = vperm.xlu1 %2961, %v2979_v15  }
 0x193   : > { %6000 = vst [vmem:[#allocation68_spill] sm:$0xff] %v4176_v47  ;;  %v4178_v49 = vpop.permute.xlu0 %1474 }
 0x194   : > { %6001 = vst [vmem:[#allocation69_spill] sm:$0xff] %v4178_v49 }
 0x196   : > { %1878 = vperm.xlu0 %2966, %v2978_v54   ;;  %v4181_v20 = vpop.permute.xlu1 %1405  ;;  %1793 = vperm.xlu1 %2961, %v2981_v12  }
 0x197   : > { %6002 = vst [vmem:[#allocation70_spill] sm:$0xff] %v4181_v20  ;;  %v4183_v37 = vpop.permute.xlu0 %1482  ;;  %v2982_v20 = vld [vmem:[%s3241_s19 + $0x68] sm:$0xff] }
 0x19a   : > { %1886 = vperm.xlu0 %2966, %v2979_v15   ;;  %v4186_v1 = vpop.permute.xlu1 %1413  ;;  %2962 = vset.pattern.permute.xlu1 %v6006_v61  ;;  %v2983_v15 = vld [vmem:[%s3241_s19] sm:$0xff] }
 0x19b   : > { %6003 = vst [vmem:[#allocation71_spill] sm:$0xff] %v4186_v1  ;;  %v4188_v39 = vpop.permute.xlu0 %1490  ;;  %1862 = vperm.xlu1 %2962, %v2983_v15  }
 0x19c   : > { %6004 = vst [vmem:[#allocation72_spill] sm:$0xff] %v4188_v39 }
 0x19e   : > { %1898 = vperm.xlu0 %2966, %v2980_v23   ;;  %v4194_v54 = vpop.permute.xlu1 %1458 }
 0x19f   : > { %v4192_v28 = vpop.permute.xlu0 %1498  ;;  %1870 = vperm.xlu1 %2962, %v2977_v0  }
 0x1a0   : > { %6005 = vst [vmem:[#allocation73_spill] sm:$0xff] %v4192_v28 }
 0x1a2   : > { %1914 = vperm.xlu0 %2966, %v2982_v20   ;;  %v4201_v39 = vpop.permute.xlu1 %1466 }
 0x1a3   : > { %v4199_v1 = vpop.permute.xlu0 %1506  ;;  %1874 = vperm.xlu1 %2962, %v2984_v43  }
 0x1a4   : > { %6007 = vst [vmem:[#allocation74_spill] sm:$0xff] %v4199_v1  ;;  %v2986_v1 = vld [vmem:[%s3241_s19 + $0x38] sm:$0xff] }
 0x1a6   : > { %v4205_v11 = vpop.permute.xlu1 %1470 }
 0x1a7   : > { %v4203_v23 = vpop.permute.xlu0 %1514  ;;  %1882 = vperm.xlu1 %2962, %v2985_v10  }
 0x1a8   : > { %6008 = vst [vmem:[#allocation75_spill] sm:$0xff] %v4203_v23  ;;  %v2987_v23 = vld [vmem:[%s3241_s19 + $0x58] sm:$0xff] }
 0x1aa   : > { %v4208_v52 = vpop.permute.xlu1 %1478 }
 0x1ab   : > { %6009 = vst [vmem:[#allocation76_spill] sm:$0xff] %v4208_v52  ;;  %v4210_v34 = vpop.permute.xlu0 %1559  ;;  %1890 = vperm.xlu1 %2962, %v2986_v1   ;;  %v2988_v1 = vld [vmem:[%s3241_s19 + $0x50] sm:$0xff] }
 0x1ae   : > { %v4213_v15 = vpop.permute.xlu1 %1486 }
 0x1af   : > { %6010 = vst [vmem:[#allocation77_spill] sm:$0xff] %v4213_v15  ;;  %v4216_v42 = vpop.permute.xlu0 %1571  ;;  %2963 = vset.pattern.permute.xlu1 %v5998_v58 }
 0x1b0   : > { %1805 = vperm.xlu1 %2963, %v2987_v23  }
 0x1b2   : > { %v4219_v0 = vpop.permute.xlu1 %1494 }
 0x1b3   : > { %6011 = vst [vmem:[#allocation78_spill] sm:$0xff] %v4219_v0  ;;  %v4222_v43 = vpop.permute.xlu0 %1579 }
 0x1b4   : > { %6012 = vst [vmem:[#allocation79_spill] sm:$0xff] %v4222_v43  ;;  %2964 = vset.pattern.permute.xlu1 %v6006_v61 }
 0x1b5   : > { %1894 = vperm.xlu1 %2964, %v2981_v12   ;;  %v2989_v12 = vld [vmem:[%s3241_s19 + $0x70] sm:$0xff] }
 0x1b6   : > { %v4225_v28 = vpop.permute.xlu1 %1502 }
 0x1b7   : > { %6013 = vst [vmem:[#allocation80_spill] sm:$0xff] %v4225_v28  ;;  %v4227_v10 = vpop.permute.xlu0 %1587 }
 0x1b8   : > { %6014 = vst [vmem:[#allocation81_spill] sm:$0xff] %v4227_v10 }
 0x1b9   : > { %1902 = vperm.xlu1 %2964, %v2988_v1   ;;  %v2990_v1 = vld [vmem:[%s3241_s19 + $0x60] sm:$0xff] }
 0x1ba   : > { %v4230_v47 = vpop.permute.xlu1 %1510 }
 0x1bb   : > { %6015 = vst [vmem:[#allocation82_spill] sm:$0xff] %v4230_v47  ;;  %v4232_v0 = vpop.permute.xlu0 %1595 }
 0x1bc   : > { %6016 = vst [vmem:[#allocation83_spill] sm:$0xff] %v4232_v0 }
 0x1bd   : > { %1906 = vperm.xlu1 %2964, %v2987_v23  }
 0x1be   : > { %v4235_v53 = vpop.permute.xlu1 %1518 }
 0x1bf   : > { %6017 = vst [vmem:[#allocation84_spill] sm:$0xff] %v4235_v53  ;;  %v4237_v50 = vpop.permute.xlu0 %1603 }
 0x1c0   : > { %6018 = vst [vmem:[#allocation85_spill] sm:$0xff] %v4237_v50 }
 0x1c1   : > { %2965 = vset.pattern.permute.xlu1 %v5998_v58  ;;  %v2991_v58 = vld [vmem:[%s3241_s19 + $0x78] sm:$0xff] }
 0x1c2   : > { %1813 = vperm.xlu1 %2965, %v2982_v20   ;;  %v4240_v28 = vpop.permute.xlu1 %1563 }
 0x1c3   : > { %v4242_v21 = vpop.permute.xlu0 %1611 }
 0x1c4   : > { %6019 = vst [vmem:[#allocation86_spill] sm:$0xff] %v4242_v21 }
 0x1c6   : > { %1817 = vperm.xlu1 %2965, %v2989_v12   ;;  %v4246_v23 = vpop.permute.xlu1 %1567 }
 0x1c7   : > { %v4248_v47 = vpop.permute.xlu0 %1619 }
 0x1c8   : > { %6020 = vst [vmem:[#allocation87_spill] sm:$0xff] %v4248_v47 }
 0x1ca   : > { %2967 = vset.pattern.permute.xlu1 %v6006_v61  ;;  %v4251_v20 = vpop.permute.xlu1 %1575 }
 0x1cb   : > { %1910 = vperm.xlu1 %2967, %v2990_v1   ;;  %6021 = vst [vmem:[#allocation88_spill] sm:$0xff] %v4251_v20 }
 0x1ce   : > { %v4255_v0 = vpop.permute.xlu1 %1583 }
 0x1cf   : > { %1918 = vperm.xlu1 %2967, %v2989_v12  }
 0x1d2   : > { %v4259_v21 = vpop.permute.xlu1 %1591 }
 0x1d3   : > { %1922 = vperm.xlu1 %2967, %v2991_v58   ;;  %v4253_v53 = vpop.permute.xlu0 %1664  ;;  %6023 = vst [vmem:[#allocation90_spill] sm:$0xff] %v4259_v21 }
 0x1d6   : > { %v4263_v1 = vpop.permute.xlu1 %1599 }
 0x1d7   : > { %v4257_v50 = vpop.permute.xlu0 %1676  ;;  %6024 = vst [vmem:[#allocation91_spill] sm:$0xff] %v4263_v1 }
 0x1d8   : > { %6022 = vst [vmem:[#allocation89_spill] sm:$0xff] %v4257_v50 }
 0x1da   : > { %v4267_v47 = vpop.permute.xlu1 %1607 }
 0x1db   : > { %v4261_v61 = vpop.permute.xlu0 %1684  ;;  %6026 = vst [vmem:[#allocation93_spill] sm:$0xff] %v4267_v47 }
 0x1de   : > { %v4271_v58 = vpop.permute.xlu1 %1615 }
 0x1df   : > { %v4265_v43 = vpop.permute.xlu0 %1692  ;;  %6028 = vst [vmem:[#allocation95_spill] sm:$0xff] %v4271_v58 }
 0x1e0   : > { %6025 = vst [vmem:[#allocation92_spill] sm:$0xff] %v4265_v43 }
 0x1e2   : > { %v4275_v8 = vpop.permute.xlu1 %1660 }
 0x1e3   : > { %v4269_v12 = vpop.permute.xlu0 %1700 }
 0x1e4   : > { %6027 = vst [vmem:[#allocation94_spill] sm:$0xff] %v4269_v12 }
 0x1e6   : > { %v4279_v35 = vpop.permute.xlu1 %1668 }
 0x1e7   : > { %v4273_v52 = vpop.permute.xlu0 %1708 }
 0x1e8   : > { %6029 = vst [vmem:[#allocation96_spill] sm:$0xff] %v4273_v52  ;;  %v4295_v52 = vld [vmem:[#allocation3] sm:$0x1] }
 0x1e9   : > { %6037 = vst [vmem:[#allocation104_spill] sm:$0xff] %v4295_v52 }
 0x1ea   : > { %v4283_v46 = vpop.permute.xlu1 %1672 }
 0x1eb   : > { %v4277_v33 = vpop.permute.xlu0 %1716 }
 0x1ec   : > { %6030 = vst [vmem:[#allocation97_spill] sm:$0xff] %v4277_v33  ;;  %v6038_v33 = vld [vmem:[#allocation27_spill] sm:$0xff] }
 0x1ed   : > { %v4301_v25 = vrot.slane %v4295_v52, %v6038_v33  ;;  %v6042_v33 = vmov 0 }
 0x1ee   : > { %v4287_v43 = vpop.permute.xlu1 %1680 }
 0x1ef   : > { %6033 = vst [vmem:[#allocation100_spill] sm:$0xff] %v4287_v43 }
 0x1f0   : > { %v4281_v21 = vpop.permute.xlu0 %1761 }
 0x1f1   : > { %6031 = vst [vmem:[#allocation98_spill] sm:$0xff] %v4281_v21 }
 0x1f2   : > { %v4291_v12 = vpop.permute.xlu1 %1688 }
 0x1f3   : > { %6035 = vst [vmem:[#allocation102_spill] sm:$0xff] %v4291_v12 }
 0x1f4   : > { %v4285_v1 = vpop.permute.xlu0 %1773 }
 0x1f5   : > { %6032 = vst [vmem:[#allocation99_spill] sm:$0xff] %v4285_v1 }
 0x1f6   : > { %v4303_v21 = vpop.permute.xlu1 %1696 }
 0x1f7   : > { %6039 = vst [vmem:[#allocation105_spill] sm:$0xff] %v4303_v21 }
 0x1f8   : > { %v4289_v47 = vpop.permute.xlu0 %1781 }
 0x1f9   : > { %6034 = vst [vmem:[#allocation101_spill] sm:$0xff] %v4289_v47 }
 0x1fc   : > { %v4293_v58 = vpop.permute.xlu0 %1789 }
 0x1fd   : > { %6036 = vst [vmem:[#allocation103_spill] sm:$0xff] %v4293_v58 }
 0x200   : > { %v4305_v10 = vpop.permute.xlu0 %1797 }
 0x201   : > { %6040 = vst [vmem:[#allocation106_spill] sm:$0xff] %v4305_v10  ;;  %v4316_v10 = vpop.permute.xlu1 %1704 }
 0x202   : > { %6045 = vst [vmem:[#allocation108_spill] sm:$0xff] %v4316_v10 }
 0x204   : > { %v4372_v49 = vpop.permute.xlu0 %1801 }
 0x205   : > { %6053 = vst [vmem:[#allocation110_spill] sm:$0xff] %v4372_v49  ;;  %v4391_v14 = vpop.permute.xlu1 %1712 }
 0x206   : > { %6054 = vst [vmem:[#allocation111_spill] sm:$0xff] %v4391_v14 }
 0x224   : > { %v2811_v1 = vpop.f32.mrb[0].mxu0 }
 0x225   : > { %v1087_v43 = vadd.f32 %v2811_v1, %v4301_v25  ;;  %v2843_v47 = vpop.f32.mrb[0].mxu1  ;;  %v1017_v15 = vpop.f32.mrb[1].mxu0 }
 0x226   : > { %v2155_v12 = vadd.f32 %v4297_v16, %v2843_v47  ;;  %v1085_v58 = vadd.f32 %v4301_v25, %v1017_v15  ;;  %v2085_v44 = vpop.f32.mrb[1].mxu1  ;;  %v2812_v38 = vpop.f32.mrb[2].mxu0 }
 0x227   : > { %vm1103_vm15 = vcmp.le.f32.partialorder %v1087_v43, 8.0  ;;  %v2844_v30 = vpop.f32.mrb[2].mxu1  ;;  %v1020_v36 = vpop.f32.mrb[3].mxu0  ;;  %v6047_v43 = vmov 0 }
 0x228   : > { %vm4312_vm9 = vmand %vm6041_vm1, %vm1103_vm15  ;;  %vm2171_vm5 = vcmp.le.f32.partialorder %v2155_v12, 16.0  ;;  %vm1101_vm7 = vcmp.le.f32.partialorder %v1085_v58, 8.0  ;;  %v2088_v1 = vpop.f32.mrb[3].mxu1  ;;  %vm6046_vm15 = vnez %v5862_v31  ;;  %v2153_v12 = vadd.f32 %v4297_v16, %v2085_v44 }
 0x229   : > { %v6043_v33 = vsel %vm4312_vm9, 4294967295, %v6042_v33  ;;  %v1220_v47 = vsel %vm4312_vm9, %v3986_v7, -3e+38  ;;  %v1321_v15 = vsel %vm4312_vm9, %v4095_v41, -3e+38  ;;  %vm4329_vm1 = vmand %vm6046_vm15, %vm2171_vm5  ;;  %v6051_v31 = vmov 0 }
 0x22a   : > { %6044 = vst [vmem:[#allocation107_spill] sm:$0xff] %v6043_v33  ;;  %v1422_v26 = vsel %vm4312_vm9, %v4153_v48, -3e+38  ;;  %v6048_v43 = vsel %vm4329_vm1, 4294967295, %v6047_v43  ;;  %v1523_v58 = vsel %vm4312_vm9, %v4201_v39, -3e+38  ;;  %vm4345_vm5 = vmand %vm6050_vm14, %vm1101_vm7  ;;  %v1088_v44 = vadd.f32 %v2812_v38, %v4301_v25 }
 0x22b   : > { %6049 = vst [vmem:[#allocation109_spill] sm:$0xff] %v6048_v43  ;;  %v1624_v52 = vsel %vm4312_vm9, %v4246_v23, -3e+38  ;;  %v1725_v21 = vsel %vm4312_vm9, %v4279_v35, -3e+38  ;;  %v6052_v31 = vsel %vm4345_vm5, 4294967295, %v6051_v31  ;;  %v2156_v62 = vadd.f32 %v4297_v16, %v2844_v30 }
 0x22c   : > { %v2208_v10 = vsel %vm4329_vm1, %v3986_v7, -3e+38  ;;  %v2245_v50 = vsel %vm4329_vm1, %v4095_v41, -3e+38  ;;  %v2282_v33 = vsel %vm4329_vm1, %v4153_v48, -3e+38  ;;  %v4370_v41 = vadd.f32 %v4301_v25, %v1020_v36 }
 0x22d   : > { %v2319_v20 = vsel %vm4329_vm1, %v4201_v39, -3e+38  ;;  %v2356_v38 = vsel %vm4329_vm1, %v4246_v23, -3e+38  ;;  %v2393_v7 = vsel %vm4329_vm1, %v4279_v35, -3e+38  ;;  %v4384_v23 = vadd.f32 %v4297_v16, %v2088_v1 }
 0x22e   : > { %v1218_v30 = vsel %vm4345_vm5, %v3932_v32, -3e+38  ;;  %v1319_v48 = vsel %vm4345_vm5, %v4089_v4, -3e+38  ;;  %v1420_v39 = vsel %vm4345_vm5, %v4123_v22, -3e+38  ;;  %vm6055_vm14 = vnez %v5851_v17 }
 0x22f   : > { %v1236_v35 = vmax.f32 %v1220_v47, %v1218_v30  ;;  %v1337_v36 = vmax.f32 %v1321_v15, %v1319_v48  ;;  %v1438_v43 = vmax.f32 %v1422_v26, %v1420_v39  ;;  %v1521_v49 = vsel %vm4345_vm5, %v4194_v54, -3e+38  ;;  %v2815_v51 = vpop.f32.mrb[4].mxu0  ;;  %v4389_v24 = vpop.f32.mrb[4].mxu1 }
 0x230   : > { %v1539_v9 = vmax.f32 %v1523_v58, %v1521_v49  ;;  %v1622_v6 = vsel %vm4345_vm5, %v4210_v34, -3e+38  ;;  %v1723_v1 = vsel %vm4345_vm5, %v4275_v8, -3e+38  ;;  %vm2169_vm7 = vcmp.le.f32.partialorder %v2153_v12, 16.0  ;;  %v4399_v47 = vpop.f32.mrb[5].mxu0 }
 0x231   : > { %v1640_v15 = vmax.f32 %v1624_v52, %v1622_v6  ;;  %v1741_v26 = vmax.f32 %v1725_v21, %v1723_v1  ;;  %vm4403_vm15 = vmand %vm6055_vm14, %vm2169_vm7  ;;  %v6056_v30 = vmov 0  ;;  %vm1104_vm8 = vcmp.le.f32.partialorder %v1088_v44, 8.0  ;;  %v4407_v49 = vpop.f32.mrb[5].mxu1  ;;  %v4409_v58 = vpop.f32.mrb[6].mxu0 }
 0x232   : > { %v6057_v30 = vsel %vm4403_vm15, 4294967295, %v6056_v30  ;;  %vm2172_vm11 = vcmp.le.f32.partialorder %v2156_v62, 16.0  ;;  %v2206_v12 = vsel %vm4403_vm15, %v3932_v32, -3e+38  ;;  %v2243_v6 = vsel %vm4403_vm15, %v4089_v4, -3e+38 }
 0x233   : > { %6058 = vst [vmem:[#allocation112_spill] sm:$0xff] %v6057_v30  ;;  %v2280_v17 = vsel %vm4403_vm15, %v4123_v22, -3e+38  ;;  %vm6059_vm7 = vnez %v5854_v19  ;;  %v6060_v21 = vmov 0  ;;  %v4427_v52 = vadd.f32 %v2815_v51, %v4301_v25  ;;  %v4432_v39 = vpop.f32.mrb[6].mxu1  ;;  %v4434_v1 = vpop.f32.mrb[7].mxu0 }
 0x234   : > { %vm4422_vm14 = vmand %vm6059_vm7, %vm1104_vm8  ;;  %v2224_v44 = vmax.f32 %v2208_v10, %v2206_v12  ;;  %v2261_v48 = vmax.f32 %v2245_v50, %v2243_v6  ;;  %v2298_v32 = vmax.f32 %v2282_v33, %v2280_v17  ;;  %v2317_v4 = vsel %vm4403_vm15, %v4194_v54, -3e+38  ;;  %v4436_v22 = vpop.permute.xlu0 %1809  ;;  %v4461_v6 = vpop.permute.xlu1 %1720  ;;  %v6185_v30 = vld [vmem:[#allocation105_spill] sm:$0xff] }
 0x235   : > { %v6061_v21 = vsel %vm4422_vm14, 4294967295, %v6060_v21  ;;  %6062 = vst [vmem:[#allocation113_spill] sm:$0xff] %v4436_v22  ;;  %v2335_v19 = vmax.f32 %v2319_v20, %v2317_v4  ;;  %v2354_v14 = vsel %vm4403_vm15, %v4210_v34, -3e+38  ;;  %v2391_v51 = vsel %vm4403_vm15, %v4275_v8, -3e+38 }
 0x236   : > { %v1221_v50 = vsel %vm4422_vm14, %v3850_v57, -3e+38  ;;  %v2372_v54 = vmax.f32 %v2356_v38, %v2354_v14  ;;  %v2409_v10 = vmax.f32 %v2393_v7, %v2391_v51  ;;  %v1322_v12 = vsel %vm4422_vm14, %v4104_v56, -3e+38  ;;  %v4457_v20 = vpop.f32.mrb[7].mxu1  ;;  %v4459_v8 = vpop.f32.mrb[8].mxu0 }
 0x237   : > { %v1234_v33 = vmax.f32 %v1221_v50, %v1236_v35  ;;  %vm6063_vm8 = vnez %v5858_v29  ;;  %v6064_v34 = vmov 0  ;;  %v1335_v14 = vmax.f32 %v1322_v12, %v1337_v36  ;;  %v4475_v36 = vpop.f32.mrb[8].mxu1  ;;  %v4477_v51 = vpop.f32.mrb[9].mxu0 }
 0x238   : > { %vm4453_vm7 = vmand %vm6063_vm8, %vm2172_vm11  ;;  %v1423_v38 = vsel %vm4422_vm14, %v4129_v60, -3e+38  ;;  %v1524_v62 = vsel %vm4422_vm14, %v4205_v11, -3e+38  ;;  %v1625_v29 = vsel %vm4422_vm14, %v4216_v42, -3e+38  ;;  %vm6067_vm8 = vnez %v5849_v59 }
 0x239   : > { %v6065_v34 = vsel %vm4453_vm7, 4294967295, %v6064_v34  ;;  %v1436_v7 = vmax.f32 %v1423_v38, %v1438_v43  ;;  %v1537_v35 = vmax.f32 %v1524_v62, %v1539_v9  ;;  %v1638_v17 = vmax.f32 %v1625_v29, %v1640_v15  ;;  %v4493_v29 = vpop.f32.mrb[10].mxu0 }
 0x23a   : > { %v1726_v4 = vsel %vm4422_vm14, %v4283_v46, -3e+38  ;;  %v2209_v12 = vsel %vm4453_vm7, %v3850_v57, -3e+38  ;;  %v2246_v22 = vsel %vm4453_vm7, %v4104_v56, -3e+38  ;;  %v4495_v57 = vpop.permute.xlu0 %1821 }
 0x23b   : > { %v1739_v50 = vmax.f32 %v1726_v4, %v1741_v26  ;;  %v2283_v9 = vsel %vm4453_vm7, %v4129_v60, -3e+38  ;;  %v2222_v43 = vmax.f32 %v2209_v12, %v2224_v44  ;;  %v2259_v15 = vmax.f32 %v2246_v22, %v2261_v48  ;;  %v4491_v26 = vpop.f32.mrb[9].mxu1  ;;  %6066 = vst [vmem:[#allocation114_spill] sm:$0xff] %v4495_v57 }
 0x23c   : > { %v2296_v38 = vmax.f32 %v2283_v9, %v2298_v32  ;;  %v2320_v62 = vsel %vm4453_vm7, %v4205_v11, -3e+38  ;;  %v2357_v56 = vsel %vm4453_vm7, %v4216_v42, -3e+38  ;;  %v2394_v60 = vsel %vm4453_vm7, %v4283_v46, -3e+38 }
 0x23d   : > { %v2333_v4 = vmax.f32 %v2320_v62, %v2335_v19  ;;  %vm1102_vm11 = vcmp.le.f32.partialorder %v4370_v41, 8.0  ;;  %v4504_v44 = vpop.f32.mrb[10].mxu1  ;;  %v2370_v11 = vmax.f32 %v2357_v56, %v2372_v54  ;;  %v2407_v48 = vmax.f32 %v2394_v60, %v2409_v10  ;;  %v4514_v42 = vpop.f32.mrb[11].mxu0 }
 0x23e   : > { %vm4508_vm0 = vmand %vm6067_vm8, %vm1102_vm11  ;;  %v6068_v32 = vmov 0  ;;  %vm2170_vm2 = vcmp.le.f32.partialorder %v4384_v23, 16.0  ;;  %vm1107_vm13 = vcmp.le.f32.partialorder %v4427_v52, 8.0  ;;  %v4516_v22 = vpop.f32.mrb[11].mxu1  ;;  %vm6070_vm11 = vnez %v5856_v13  ;;  %v4535_v54 = vpop.permute.xlu1 %1765 }
 0x23f   : > { %v6069_v32 = vsel %vm4508_vm0, 4294967295, %v6068_v32  ;;  %v1219_v46 = vsel %vm4508_vm0, %v3799_v55, -3e+38  ;;  %v1320_v59 = vsel %vm4508_vm0, %v4071_v40, -3e+38  ;;  %vm4529_vm8 = vmand %vm6070_vm11, %vm2170_vm2  ;;  %v6071_v23 = vmov 0  ;;  %v4575_v52 = vpop.permute.xlu0 %1866 }
 0x240   : > { %v1421_v41 = vsel %vm4508_vm0, %v4147_v18, -3e+38  ;;  %v6072_v23 = vsel %vm4529_vm8, 4294967295, %v6071_v23  ;;  %v2159_v19 = vadd.f32 %v4297_v16, %v4389_v24  ;;  %6074 = vst [vmem:[#allocation116_spill] sm:$0xff] %v4535_v54  ;;  %v1237_v10 = vmax.f32 %v1219_v46, %v1234_v33  ;;  %v4540_v56 = vpop.f32.mrb[12].mxu0 }
 0x241   : > { %6073 = vst [vmem:[#allocation115_spill] sm:$0xff] %v6072_v23  ;;  %v1338_v12 = vmax.f32 %v1320_v59, %v1335_v14  ;;  %v1439_v9 = vmax.f32 %v1421_v41, %v1436_v7  ;;  %v1522_v62 = vsel %vm4508_vm0, %v4173_v5, -3e+38  ;;  %v1623_v13 = vsel %vm4508_vm0, %v4240_v28, -3e+38  ;;  %v4562_v41 = vpop.f32.mrb[12].mxu1 }
 0x242   : > { %v1540_v60 = vmax.f32 %v1522_v62, %v1537_v35  ;;  %v1724_v24 = vsel %vm4508_vm0, %v4253_v53, -3e+38  ;;  %v2207_v33 = vsel %vm4529_vm8, %v3799_v55, -3e+38  ;;  %v1641_v14 = vmax.f32 %v1623_v13, %v1638_v17  ;;  %v4564_v62 = vpop.f32.mrb[13].mxu0 }
 0x243   : > { %v1742_v7 = vmax.f32 %v1724_v24, %v1739_v50  ;;  %v2225_v46 = vmax.f32 %v2207_v33, %v2222_v43  ;;  %v2244_v59 = vsel %vm4529_vm8, %v4071_v40, -3e+38  ;;  %vm6075_vm2 = vnez %v5900_v27  ;;  %v4580_v24 = vpop.f32.mrb[13].mxu1 }
 0x244   : > { %vm4558_vm11 = vmand %vm6075_vm2, %vm1107_vm13  ;;  %v6076_v35 = vmov 0  ;;  %v2262_v55 = vmax.f32 %v2244_v59, %v2259_v15  ;;  %v2281_v17 = vsel %vm4529_vm8, %v4147_v18, -3e+38  ;;  %v2318_v40 = vsel %vm4529_vm8, %v4173_v5, -3e+38  ;;  %v4582_v18 = vpop.f32.mrb[14].mxu0 }
 0x245   : > { %v6077_v35 = vsel %vm4558_vm11, 4294967295, %v6076_v35  ;;  %v2355_v27 = vsel %vm4529_vm8, %v4240_v28, -3e+38  ;;  %v2299_v50 = vmax.f32 %v2281_v17, %v2296_v38  ;;  %v2336_v43 = vmax.f32 %v2318_v40, %v2333_v4  ;;  %v4593_v4 = vpop.permute.xlu1 %1769 }
 0x246   : > { %6078 = vst [vmem:[#allocation117_spill] sm:$0xff] %v6077_v35  ;;  %v2373_v13 = vmax.f32 %v2355_v27, %v2370_v11  ;;  %v2392_v15 = vsel %vm4529_vm8, %v4253_v53, -3e+38  ;;  %v1224_v38 = vsel %vm4558_vm11, %v4038_v2, -3e+38  ;;  %6079 = vst [vmem:[#allocation118_spill] sm:$0xff] %v4593_v4  ;;  %v1089_v4 = vadd.f32 %v4301_v25, %v4399_v47 }
 0x247   : > { %v2410_v33 = vmax.f32 %v2392_v15, %v2407_v48  ;;  %v1235_v53 = vmax.f32 %v1224_v38, %v1237_v10  ;;  %v1325_v11 = vsel %vm4558_vm11, %v4087_v3, -3e+38  ;;  %v1426_v48 = vsel %vm4558_vm11, %v4165_v63, -3e+38  ;;  %v4607_v10 = vpop.f32.mrb[14].mxu1  ;;  %v4609_v38 = vpop.f32.mrb[15].mxu0 }
 0x248   : > { %v1527_v59 = vsel %vm4558_vm11, %v4183_v37, -3e+38  ;;  %v1336_v17 = vmax.f32 %v1325_v11, %v1338_v12  ;;  %v1437_v40 = vmax.f32 %v1426_v48, %v1439_v9  ;;  %v1628_v15 = vsel %vm4558_vm11, %v4255_v0, -3e+38  ;;  %v4616_v12 = vpop.f32.mrb[15].mxu1 }
 0x249   : > { %v1538_v27 = vmax.f32 %v1527_v59, %v1540_v60  ;;  %v1639_v28 = vmax.f32 %v1628_v15, %v1641_v14  ;;  %v1729_v5 = vsel %vm4558_vm11, %v4261_v61, -3e+38  ;;  %vm2175_vm13 = vcmp.le.f32.partialorder %v2159_v19, 16.0  ;;  %6080 = vst [vmem:[#allocation119_spill] sm:$0xff] %v4616_v12  ;;  %v4652_v59 = vpop.permute.xlu1 %1777 }
 0x24a   : > { %v1740_v9 = vmax.f32 %v1729_v5, %v1742_v7  ;;  %vm6081_vm2 = vnez %v5904_v45  ;;  %v6082_v60 = vmov 0  ;;  %v2157_v14 = vadd.f32 %v4297_v16, %v4407_v49  ;;  %6085 = vst [vmem:[#allocation121_spill] sm:$0xff] %v4652_v59 }
 0x24b   : > { %vm4620_vm10 = vmand %vm6081_vm2, %vm2175_vm13  ;;  %v1092_v11 = vadd.f32 %v4409_v58, %v4301_v25  ;;  %v2160_v19 = vadd.f32 %v4297_v16, %v4432_v39  ;;  %v4641_v49 = vadd.f32 %v4301_v25, %v4434_v1  ;;  %vm1105_vm13 = vcmp.le.f32.partialorder %v1089_v4, 8.0  ;;  %v6092_v4 = vld [vmem:[#allocation65_spill] sm:$0xff] }
 0x24c   : > { %v6083_v60 = vsel %vm4620_vm10, 4294967295, %v6082_v60  ;;  %v2212_v47 = vsel %vm4620_vm10, %v4038_v2, -3e+38  ;;  %v2249_v45 = vsel %vm4620_vm10, %v4087_v3, -3e+38  ;;  %vm2173_vm14 = vcmp.le.f32.partialorder %v2157_v14, 16.0 }
 0x24d   : > { %6084 = vst [vmem:[#allocation120_spill] sm:$0xff] %v6083_v60  ;;  %v2286_v7 = vsel %vm4620_vm10, %v4165_v63, -3e+38  ;;  %v2223_v58 = vmax.f32 %v2212_v47, %v2225_v46  ;;  %v2260_v5 = vmax.f32 %v2249_v45, %v2262_v55  ;;  %v2323_v39 = vsel %vm4620_vm10, %v4183_v37, -3e+38  ;;  %v6086_v55 = vld [vmem:[#allocation15_spill] sm:$0xff] }
 0x24e   : > { %v2297_v48 = vmax.f32 %v2286_v7, %v2299_v50  ;;  %v2334_v2 = vmax.f32 %v2323_v39, %v2336_v43  ;;  %v2360_v3 = vsel %vm4620_vm10, %v4255_v0, -3e+38  ;;  %v2397_v63 = vsel %vm4620_vm10, %v4261_v61, -3e+38  ;;  %v6090_v37 = vld [vmem:[#allocation21_spill] sm:$0xff] }
 0x24f   : > { %v2371_v1 = vmax.f32 %v2360_v3, %v2373_v13  ;;  %v2408_v46 = vmax.f32 %v2397_v63, %v2410_v33  ;;  %vm6087_vm2 = vnez %v6086_v55  ;;  %v6088_v50 = vmov 0  ;;  %v6091_v43 = vld [vmem:[#allocation49_spill] sm:$0xff]  ;;  %v6093_v33 = vld [vmem:[#allocation28_spill] sm:$0xff] }
 0x250   : > { %vm4656_vm7 = vmand %vm6087_vm2, %vm1105_vm13  ;;  %vm1108_vm1 = vcmp.le.f32.partialorder %v1092_v11, 8.0  ;;  %vm6094_vm9 = vnez %v6093_v33  ;;  %v6095_v15 = vmov 0  ;;  %v2158_v14 = vadd.f32 %v4297_v16, %v4457_v20  ;;  %v6098_v39 = vld [vmem:[#allocation69_spill] sm:$0xff]  ;;  %v6099_v55 = vld [vmem:[#allocation88_spill] sm:$0xff] }
 0x251   : > { %v6089_v50 = vsel %vm4656_vm7, 4294967295, %v6088_v50  ;;  %v1222_v0 = vsel %vm4656_vm7, %v6090_v37, -3e+38  ;;  %v1323_v61 = vsel %vm4656_vm7, %v6091_v43, -3e+38  ;;  %vm4671_vm13 = vmand %vm6094_vm9, %vm2173_vm14  ;;  %v6100_v33 = vld [vmem:[#allocation89_spill] sm:$0xff]  ;;  %v2164_v35 = vadd.f32 %v4297_v16, %v4504_v44 }
 0x252   : > { %v1424_v13 = vsel %vm4656_vm7, %v6092_v4, -3e+38  ;;  %v6096_v15 = vsel %vm4671_vm13, 4294967295, %v6095_v15  ;;  %v1240_v47 = vmax.f32 %v1222_v0, %v1235_v53  ;;  %v1341_v45 = vmax.f32 %v1323_v61, %v1336_v17 }
 0x253   : > { %6097 = vst [vmem:[#allocation15_spill] sm:$0xff] %v6096_v15  ;;  %v1442_v7 = vmax.f32 %v1424_v13, %v1437_v40  ;;  %v1525_v3 = vsel %vm4656_vm7, %v6098_v39, -3e+38  ;;  %v1626_v59 = vsel %vm4656_vm7, %v6099_v55, -3e+38  ;;  %vm1106_vm4 = vcmp.le.f32.partialorder %v4641_v49, 8.0 }
 0x254   : > { %v1543_v63 = vmax.f32 %v1525_v3, %v1538_v27  ;;  %v1727_v54 = vsel %vm4656_vm7, %v6100_v33, -3e+38  ;;  %v2210_v20 = vsel %vm4671_vm13, %v6090_v37, -3e+38  ;;  %v1644_v53 = vmax.f32 %v1626_v59, %v1639_v28  ;;  %v6101_v27 = vld [vmem:[#allocation30_spill] sm:$0xff] }
 0x255   : > { %v1745_v17 = vmax.f32 %v1727_v54, %v1740_v9  ;;  %v2228_v40 = vmax.f32 %v2210_v20, %v2223_v58  ;;  %v2247_v0 = vsel %vm4671_vm13, %v6091_v43, -3e+38  ;;  %vm6102_vm9 = vnez %v6101_v27  ;;  %v4708_v9 = vpop.permute.xlu1 %1785  ;;  %v6106_v43 = vld [vmem:[#allocation38_spill] sm:$0xff]  ;;  %v6107_v20 = vld [vmem:[#allocation55_spill] sm:$0xff]  ;;  %v6109_v27 = vld [vmem:[#allocation77_spill] sm:$0xff] }
 0x256   : > { %vm4695_vm14 = vmand %vm6102_vm9, %vm1108_vm1  ;;  %v2265_v13 = vmax.f32 %v2247_v0, %v2260_v5  ;;  %v2284_v3 = vsel %vm4671_vm13, %v6092_v4, -3e+38  ;;  %v2321_v54 = vsel %vm4671_vm13, %v6098_v39, -3e+38  ;;  %v2358_v28 = vsel %vm4671_vm13, %v6099_v55, -3e+38 }
 0x257   : > { %6105 = vst [vmem:[#allocation21_spill] sm:$0xff] %v4708_v9  ;;  %v2302_v11 = vmax.f32 %v2284_v3, %v2297_v48  ;;  %v2339_v58 = vmax.f32 %v2321_v54, %v2334_v2  ;;  %v2376_v59 = vmax.f32 %v2358_v28, %v2371_v1  ;;  %v2395_v5 = vsel %vm4671_vm13, %v6100_v33, -3e+38  ;;  %v6108_v0 = vld [vmem:[#allocation61_spill] sm:$0xff]  ;;  %v6111_v28 = vld [vmem:[#allocation102_spill] sm:$0xff]  ;;  %v1879_v9 = vpop.permute.xlu0 %1878 }
 0x258   : > { %v2413_v37 = vmax.f32 %v2395_v5, %v2408_v46  ;;  %v1225_v4 = vsel %vm4695_vm14, %v6106_v43, -3e+38  ;;  %v1326_v39 = vsel %vm4695_vm14, %v6107_v20, -3e+38  ;;  %v1427_v55 = vsel %vm4695_vm14, %v6108_v0, -3e+38 }
 0x259   : > { %v1238_v48 = vmax.f32 %v1225_v4, %v1240_v47  ;;  %v1339_v2 = vmax.f32 %v1326_v39, %v1341_v45  ;;  %v1440_v1 = vmax.f32 %v1427_v55, %v1442_v7  ;;  %v1528_v33 = vsel %vm4695_vm14, %v6109_v27, -3e+38  ;;  %v6110_v3 = vld [vmem:[#allocation81_spill] sm:$0xff]  ;;  %v6112_v47 = vld [vmem:[#allocation24_spill] sm:$0xff]  ;;  %v4758_v55 = vpop.permute.xlu1 %1793 }
 0x25a   : > { %v1541_v46 = vmax.f32 %v1528_v33, %v1543_v63  ;;  %v1629_v54 = vsel %vm4695_vm14, %v6110_v3, -3e+38  ;;  %v1730_v5 = vsel %vm4695_vm14, %v6111_v28, -3e+38  ;;  %vm2176_vm1 = vcmp.le.f32.partialorder %v2160_v19, 16.0  ;;  %6120 = vst [vmem:[#allocation49_spill] sm:$0xff] %v4758_v55 }
 0x25b   : > { %v1642_v57 = vmax.f32 %v1629_v54, %v1644_v53  ;;  %v1743_v12 = vmax.f32 %v1730_v5, %v1745_v17  ;;  %vm6113_vm2 = vnez %v6112_v47  ;;  %vm2174_vm12 = vcmp.le.f32.partialorder %v2158_v14, 16.0  ;;  %v6116_v53 = vld [vmem:[#allocation31_spill] sm:$0xff]  ;;  %v6121_v5 = vld [vmem:[#allocation32_spill] sm:$0xff]  ;;  %v6122_v47 = vld [vmem:[#allocation53_spill] sm:$0xff] }
 0x25c   : > { %vm4733_vm9 = vmand %vm6113_vm2, %vm2176_vm1  ;;  %vm6117_vm1 = vnez %v6116_v53  ;;  %v1095_v49 = vadd.f32 %v4459_v8, %v4301_v25 }
 0x25d   : > { %v2213_v7 = vsel %vm4733_vm9, %v6106_v43, -3e+38  ;;  %v2250_v19 = vsel %vm4733_vm9, %v6107_v20, -3e+38  ;;  %v2287_v63 = vsel %vm4733_vm9, %v6108_v0, -3e+38  ;;  %vm4749_vm2 = vmand %vm6117_vm1, %vm1106_vm4 }
 0x25e   : > { %v2226_v4 = vmax.f32 %v2213_v7, %v2228_v40  ;;  %v2263_v39 = vmax.f32 %v2250_v19, %v2265_v13  ;;  %v2300_v43 = vmax.f32 %v2287_v63, %v2302_v11  ;;  %v2324_v20 = vsel %vm4733_vm9, %v6109_v27, -3e+38  ;;  %v6128_v63 = vld [vmem:[#allocation76_spill] sm:$0xff] }
 0x25f   : > { %v2337_v33 = vmax.f32 %v2324_v20, %v2339_v58  ;;  %v2361_v0 = vsel %vm4733_vm9, %v6110_v3, -3e+38  ;;  %v2398_v54 = vsel %vm4733_vm9, %v6111_v28, -3e+38  ;;  %v1223_v8 = vsel %vm4749_vm2, %v6121_v5, -3e+38 }
 0x260   : > { %v2374_v40 = vmax.f32 %v2361_v0, %v2376_v59  ;;  %v2411_v13 = vmax.f32 %v2398_v54, %v2413_v37  ;;  %v1241_v11 = vmax.f32 %v1223_v8, %v1238_v48  ;;  %v1324_v27 = vsel %vm4749_vm2, %v6122_v47, -3e+38  ;;  %v6123_v58 = vld [vmem:[#allocation22_spill] sm:$0xff]  ;;  %v6127_v28 = vld [vmem:[#allocation59_spill] sm:$0xff]  ;;  %v6130_v0 = vld [vmem:[#allocation100_spill] sm:$0xff] }
 0x261   : > { %vm6124_vm4 = vnez %v6123_v58  ;;  %v1342_v7 = vmax.f32 %v1324_v27, %v1339_v2  ;;  %v1425_v19 = vsel %vm4749_vm2, %v6127_v28, -3e+38  ;;  %v1526_v59 = vsel %vm4749_vm2, %v6128_v63, -3e+38  ;;  %v6129_v37 = vld [vmem:[#allocation79_spill] sm:$0xff]  ;;  %v1887_v2 = vpop.permute.xlu0 %1886 }
 0x262   : > { %vm4775_vm1 = vmand %vm6124_vm4, %vm2174_vm12  ;;  %v1627_v48 = vsel %vm4749_vm2, %v6129_v37, -3e+38  ;;  %v1443_v14 = vmax.f32 %v1425_v19, %v1440_v1  ;;  %v1544_v53 = vmax.f32 %v1526_v59, %v1541_v46  ;;  %v1728_v54 = vsel %vm4749_vm2, %v6130_v0, -3e+38 }
 0x263   : > { %v1645_v20 = vmax.f32 %v1627_v48, %v1642_v57  ;;  %v1746_v8 = vmax.f32 %v1728_v54, %v1743_v12  ;;  %v2211_v27 = vsel %vm4775_vm1, %v6121_v5, -3e+38  ;;  %v2248_v58 = vsel %vm4775_vm1, %v6122_v47, -3e+38  ;;  %v1863_v12 = vpop.permute.xlu1 %1862 }
 0x264   : > { %v2285_v1 = vsel %vm4775_vm1, %v6127_v28, -3e+38  ;;  %v2229_v46 = vmax.f32 %v2211_v27, %v2226_v4  ;;  %v2266_v57 = vmax.f32 %v2248_v58, %v2263_v39  ;;  %v2322_v59 = vsel %vm4775_vm1, %v6128_v63, -3e+38 }
 0x265   : > { %v2303_v19 = vmax.f32 %v2285_v1, %v2300_v43  ;;  %v2340_v48 = vmax.f32 %v2322_v59, %v2337_v33  ;;  %v2359_v5 = vsel %vm4775_vm1, %v6129_v37, -3e+38  ;;  %v2396_v47 = vsel %vm4775_vm1, %v6130_v0, -3e+38 }
 0x266   : > { %v1931_v28 = vsel %vm4558_vm11, %v1887_v2, -3e+38  ;;  %v2377_v4 = vmax.f32 %v2359_v5, %v2374_v40  ;;  %v2414_v39 = vmax.f32 %v2396_v47, %v2411_v13  ;;  %v6131_v43 = vsel %vm4508_vm0, %v4575_v52, -3e+38 }
 0x267   : > { %v4815_v63 = vmax.f32 %v6131_v43, %v1931_v28  ;;  %v2471_v33 = vsel %vm4620_vm10, %v1887_v2, -3e+38  ;;  %v6132_v37 = vsel %vm4529_vm8, %v4575_v52, -3e+38  ;;  %v1925_v0 = vsel %vm4345_vm5, %v1863_v12, -3e+38 }
 0x268   : > { %v4823_v54 = vmax.f32 %v6132_v37, %v2471_v33  ;;  %v1929_v40 = vsel %vm4656_vm7, %v1879_v9, -3e+38  ;;  %v2465_v13 = vsel %vm4403_vm15, %v1863_v12, -3e+38  ;;  %v2469_v2 = vsel %vm4671_vm13, %v1879_v9, -3e+38 }
 0x269   : > { %v4831_v27 = vmax.f32 %v1925_v0, %v1929_v40  ;;  %vm1111_vm12 = vcmp.le.f32.partialorder %v1095_v49, 8.0  ;;  %v2163_v52 = vadd.f32 %v4297_v16, %v4475_v36  ;;  %v4837_v58 = vmax.f32 %v2465_v13, %v2469_v2  ;;  %v6136_v49 = vld [vmem:[#allocation46_spill] sm:$0xff]  ;;  %v6137_v28 = vld [vmem:[#allocation51_spill] sm:$0xff]  ;;  %v6138_v33 = vld [vmem:[#allocation68_spill] sm:$0xff] }
 0x26a   : > { %vm4841_vm4 = vmand %vm3909_vm3, %vm1111_vm12  ;;  %v6134_v59 = vmov 0  ;;  %v1093_v12 = vadd.f32 %v4301_v25, %v4477_v51  ;;  %v2161_v5 = vadd.f32 %v4297_v16, %v4491_v26  ;;  %v1096_v9 = vadd.f32 %v4493_v29, %v4301_v25  ;;  %v6139_v40 = vld [vmem:[#allocation73_spill] sm:$0xff]  ;;  %v6140_v2 = vld [vmem:[#allocation91_spill] sm:$0xff] }
 0x26b   : > { %v6135_v59 = vsel %vm4841_vm4, 4294967295, %v6134_v59  ;;  %v1228_v47 = vsel %vm4841_vm4, %v6136_v49, -3e+38  ;;  %v1329_v43 = vsel %vm4841_vm4, %v6137_v28, -3e+38  ;;  %v6141_v36 = vld [vmem:[#allocation94_spill] sm:$0xff] }
 0x26c   : > { %v1430_v51 = vsel %vm4841_vm4, %v6138_v33, -3e+38  ;;  %v1239_v37 = vmax.f32 %v1228_v47, %v1241_v11  ;;  %v1340_v29 = vmax.f32 %v1329_v43, %v1342_v7  ;;  %v1531_v13 = vsel %vm4841_vm4, %v6139_v40, -3e+38 }
 0x26d   : > { %v1441_v0 = vmax.f32 %v1430_v51, %v1443_v14  ;;  %v1632_v1 = vsel %vm4841_vm4, %v6140_v2, -3e+38  ;;  %v1733_v60 = vsel %vm4841_vm4, %v6141_v36, -3e+38  ;;  %v1542_v15 = vmax.f32 %v1531_v13, %v1544_v53  ;;  %v6145_v53 = vld [vmem:[#allocation17_spill] sm:$0xff]  ;;  %v6149_v13 = vld [vmem:[#allocation44_spill] sm:$0xff] }
 0x26e   : > { %v1643_v26 = vmax.f32 %v1632_v1, %v1645_v20  ;;  %v1744_v11 = vmax.f32 %v1733_v60, %v1746_v8  ;;  %vm2179_vm3 = vcmp.le.f32.partialorder %v2163_v52, 16.0  ;;  %v6143_v14 = vmov 0  ;;  %v6150_v1 = vld [vmem:[#allocation50_spill] sm:$0xff] }
 0x26f   : > { %vm4877_vm12 = vmand %vm3925_vm6, %vm2179_vm3  ;;  %vm1109_vm10 = vcmp.le.f32.partialorder %v1093_v12, 8.0  ;;  %vm2177_vm11 = vcmp.le.f32.partialorder %v2161_v5, 16.0  ;;  %vm1112_vm13 = vcmp.le.f32.partialorder %v1096_v9, 8.0  ;;  %vm2180_vm8 = vcmp.le.f32.partialorder %v2164_v35, 16.0 }
 0x270   : > { %v6144_v14 = vsel %vm4877_vm12, 4294967295, %v6143_v14  ;;  %v2216_v47 = vsel %vm4877_vm12, %v6136_v49, -3e+38  ;;  %v2253_v44 = vsel %vm4877_vm12, %v6137_v28, -3e+38  ;;  %vm6146_vm6 = vnez %v6145_v53 }
 0x271   : > { %v2290_v60 = vsel %vm4877_vm12, %v6138_v33, -3e+38  ;;  %vm4892_vm3 = vmand %vm6146_vm6, %vm1109_vm10  ;;  %v4898_v8 = vadd.f32 %v4301_v25, %v4514_v42  ;;  %v2227_v52 = vmax.f32 %v2216_v47, %v2229_v46  ;;  %v2264_v12 = vmax.f32 %v2253_v44, %v2266_v57  ;;  %v6156_v44 = vld [vmem:[#allocation72_spill] sm:$0xff] }
 0x272   : > { %v2301_v49 = vmax.f32 %v2290_v60, %v2303_v19  ;;  %v2327_v28 = vsel %vm4877_vm12, %v6139_v40, -3e+38  ;;  %v2364_v33 = vsel %vm4877_vm12, %v6140_v2, -3e+38  ;;  %v2401_v51 = vsel %vm4877_vm12, %v6141_v36, -3e+38 }
 0x273   : > { %v2338_v43 = vmax.f32 %v2327_v28, %v2340_v48  ;;  %v1226_v42 = vsel %vm4892_vm3, %v6149_v13, -3e+38  ;;  %v2375_v46 = vmax.f32 %v2364_v33, %v2377_v4  ;;  %v2412_v57 = vmax.f32 %v2401_v51, %v2414_v39  ;;  %v6151_v48 = vld [vmem:[#allocation25_spill] sm:$0xff]  ;;  %v6155_v36 = vld [vmem:[#allocation67_spill] sm:$0xff]  ;;  %v6157_v39 = vld [vmem:[#allocation90_spill] sm:$0xff] }
 0x274   : > { %v1244_v19 = vmax.f32 %v1226_v42, %v1239_v37  ;;  %v1327_v40 = vsel %vm4892_vm3, %v6150_v1, -3e+38  ;;  %vm6152_vm10 = vnez %v6151_v48  ;;  %v6153_v2 = vmov 0  ;;  %v6158_v28 = vld [vmem:[#allocation92_spill] sm:$0xff]  ;;  %v6267_v51 = vld [vmem:[#allocation121_spill] sm:$0xff] }
 0x275   : > { %vm4918_vm6 = vmand %vm6152_vm10, %vm2177_vm11  ;;  %v1345_v7 = vmax.f32 %v1327_v40, %v1340_v29  ;;  %v1428_v47 = vsel %vm4892_vm3, %v6155_v36, -3e+38  ;;  %v1529_v4 = vsel %vm4892_vm3, %v6156_v44, -3e+38  ;;  %v1630_v37 = vsel %vm4892_vm3, %v6157_v39, -3e+38 }
 0x276   : > { %v6154_v2 = vsel %vm4918_vm6, 4294967295, %v6153_v2  ;;  %v1446_v5 = vmax.f32 %v1428_v47, %v1441_v0  ;;  %v1547_v60 = vmax.f32 %v1529_v4, %v1542_v15  ;;  %v1648_v53 = vmax.f32 %v1630_v37, %v1643_v26  ;;  %v6159_v29 = vld [vmem:[#allocation29_spill] sm:$0xff]  ;;  %v6163_v4 = vld [vmem:[#allocation42_spill] sm:$0xff] }
 0x277   : > { %v1731_v33 = vsel %vm4892_vm3, %v6158_v28, -3e+38  ;;  %vm6160_vm11 = vnez %v6159_v29  ;;  %v2214_v40 = vsel %vm4918_vm6, %v6149_v13, -3e+38  ;;  %v2251_v15 = vsel %vm4918_vm6, %v6150_v1, -3e+38 }
 0x278   : > { %vm4937_vm10 = vmand %vm6160_vm11, %vm1112_vm13  ;;  %v1749_v42 = vmax.f32 %v1731_v33, %v1744_v11  ;;  %v2288_v26 = vsel %vm4918_vm6, %v6155_v36, -3e+38  ;;  %v2232_v9 = vmax.f32 %v2214_v40, %v2227_v52  ;;  %v2269_v0 = vmax.f32 %v2251_v15, %v2264_v12  ;;  %v6164_v37 = vld [vmem:[#allocation57_spill] sm:$0xff]  ;;  %v6170_v40 = vld [vmem:[#allocation80_spill] sm:$0xff] }
 0x279   : > { %v2306_v48 = vmax.f32 %v2288_v26, %v2301_v49  ;;  %v2325_v47 = vsel %vm4918_vm6, %v6156_v44, -3e+38  ;;  %v2362_v13 = vsel %vm4918_vm6, %v6157_v39, -3e+38  ;;  %v2399_v1 = vsel %vm4918_vm6, %v6158_v28, -3e+38 }
 0x27a   : > { %v2343_v11 = vmax.f32 %v2325_v47, %v2338_v43  ;;  %v1229_v36 = vsel %vm4937_vm10, %v6163_v4, -3e+38  ;;  %v2380_v52 = vmax.f32 %v2362_v13, %v2375_v46  ;;  %v2417_v12 = vmax.f32 %v2399_v1, %v2412_v57  ;;  %v6165_v43 = vld [vmem:[#allocation26_spill] sm:$0xff]  ;;  %v6169_v28 = vld [vmem:[#allocation63_spill] sm:$0xff]  ;;  %v6171_v57 = vld [vmem:[#allocation85_spill] sm:$0xff] }
 0x27b   : > { %v1242_v49 = vmax.f32 %v1229_v36, %v1244_v19  ;;  %v1330_v44 = vsel %vm4937_vm10, %v6164_v37, -3e+38  ;;  %vm6166_vm13 = vnez %v6165_v43  ;;  %v1431_v29 = vsel %vm4937_vm10, %v6169_v28, -3e+38  ;;  %v6172_v47 = vld [vmem:[#allocation108_spill] sm:$0xff] }
 0x27c   : > { %vm4968_vm11 = vmand %vm6166_vm13, %vm2180_vm8  ;;  %v1343_v33 = vmax.f32 %v1330_v44, %v1345_v7  ;;  %v1532_v46 = vsel %vm4937_vm10, %v6170_v40, -3e+38  ;;  %v1633_v19 = vsel %vm4937_vm10, %v6171_v57, -3e+38  ;;  %v1444_v35 = vmax.f32 %v1431_v29, %v1446_v5  ;;  %v1871_v5 = vpop.permute.xlu1 %1870 }
 0x27d   : > { %v1545_v15 = vmax.f32 %v1532_v46, %v1547_v60  ;;  %v1646_v26 = vmax.f32 %v1633_v19, %v1648_v53  ;;  %v1734_v13 = vsel %vm4937_vm10, %v6172_v47, -3e+38  ;;  %v2217_v1 = vsel %vm4968_vm11, %v6163_v4, -3e+38 }
 0x27e   : > { %v1747_v7 = vmax.f32 %v1734_v13, %v1749_v42  ;;  %v2254_v36 = vsel %vm4968_vm11, %v6164_v37, -3e+38  ;;  %v2291_v44 = vsel %vm4968_vm11, %v6169_v28, -3e+38  ;;  %v2230_v60 = vmax.f32 %v2217_v1, %v2232_v9  ;;  %v6173_v9 = vld [vmem:[#allocation16_spill] sm:$0xff] }
 0x27f   : > { %v2267_v53 = vmax.f32 %v2254_v36, %v2269_v0  ;;  %v2304_v43 = vmax.f32 %v2291_v44, %v2306_v48  ;;  %v2328_v42 = vsel %vm4968_vm11, %v6170_v40, -3e+38  ;;  %v2365_v4 = vsel %vm4968_vm11, %v6171_v57, -3e+38  ;;  %v6179_v57 = vld [vmem:[#allocation40_spill] sm:$0xff] }
 0x280   : > { %v2341_v29 = vmax.f32 %v2328_v42, %v2343_v11  ;;  %v2402_v37 = vsel %vm4968_vm11, %v6172_v47, -3e+38  ;;  %vm1110_vm8 = vcmp.le.f32.partialorder %v4898_v8, 8.0  ;;  %v2378_v28 = vmax.f32 %v2365_v4, %v2380_v52  ;;  %v6177_v11 = vld [vmem:[#allocation107_spill] sm:$0xff]  ;;  %v6180_v47 = vld [vmem:[#allocation56_spill] sm:$0xff]  ;;  %v6181_v52 = vld [vmem:[#allocation62_spill] sm:$0xff] }
 0x281   : > { %v2415_v46 = vmax.f32 %v2402_v37, %v2417_v12  ;;  %vm6174_vm13 = vnez %v6173_v9  ;;  %v6175_v0 = vmov 0  ;;  %v2162_v48 = vadd.f32 %v4297_v16, %v4516_v22  ;;  %v1899_v22 = vpop.permute.xlu0 %1898  ;;  %v6183_v4 = vld [vmem:[#allocation78_spill] sm:$0xff] }
 0x282   : > { %vm5005_vm15 = vmand %vm6174_vm13, %vm1110_vm8  ;;  %vm6178_vm7 = vnez %v6177_v11  ;;  %v6182_v13 = vmax.f32 %v4831_v27, %v4815_v63  ;;  %v6184_v11 = vld [vmem:[#allocation83_spill] sm:$0xff] }
 0x283   : > { %v6176_v0 = vsel %vm5005_vm15, 4294967295, %v6175_v0  ;;  %v1927_v40 = vsel %vm6178_vm7, %v1871_v5, -3e+38  ;;  %v1227_v19 = vsel %vm5005_vm15, %v6179_v57, -3e+38  ;;  %vm2178_vm8 = vcmp.le.f32.partialorder %v2162_v48, 16.0 }
 0x284   : > { %v1328_v8 = vsel %vm5005_vm15, %v6180_v47, -3e+38  ;;  %v1429_v12 = vsel %vm5005_vm15, %v6181_v52, -3e+38  ;;  %v1946_v1 = vmax.f32 %v6182_v13, %v1927_v40  ;;  %v1245_v36 = vmax.f32 %v1227_v19, %v1242_v49  ;;  %v6186_v40 = vld [vmem:[#allocation23_spill] sm:$0xff] }
 0x285   : > { %v1346_v44 = vmax.f32 %v1328_v8, %v1343_v33  ;;  %v1447_v42 = vmax.f32 %v1429_v12, %v1444_v35  ;;  %v1530_v37 = vsel %vm5005_vm15, %v6183_v4, -3e+38  ;;  %v1631_v23 = vsel %vm5005_vm15, %v6184_v11, -3e+38  ;;  %v6191_v33 = vld [vmem:[#allocation109_spill] sm:$0xff] }
 0x286   : > { %v1548_v9 = vmax.f32 %v1530_v37, %v1545_v15  ;;  %v1732_v55 = vsel %vm5005_vm15, %v6185_v30, -3e+38  ;;  %v1649_v63 = vmax.f32 %v1631_v23, %v1646_v26  ;;  %vm6187_vm13 = vnez %v6186_v40 }
 0x287   : > { %v1750_v27 = vmax.f32 %v1732_v55, %v1747_v7  ;;  %vm5036_vm7 = vmand %vm6187_vm13, %vm2178_vm8  ;;  %v6188_v49 = vmov 0  ;;  %vm6192_vm0 = vnez %v6191_v33  ;;  %v1934_v15 = vsel %vm5005_vm15, %v1899_v22, -3e+38 }
 0x288   : > { %v6189_v49 = vsel %vm5036_vm7, 4294967295, %v6188_v49  ;;  %v2467_v35 = vsel %vm6192_vm0, %v1871_v5, -3e+38  ;;  %v2215_v19 = vsel %vm5036_vm7, %v6179_v57, -3e+38  ;;  %v6193_v26 = vmax.f32 %v4837_v58, %v4823_v54  ;;  %v1875_v5 = vpop.permute.xlu1 %1874 }
 0x289   : > { %6190 = vst [vmem:[#allocation65_spill] sm:$0xff] %v6189_v49  ;;  %v2252_v23 = vsel %vm5036_vm7, %v6180_v47, -3e+38  ;;  %v2289_v55 = vsel %vm5036_vm7, %v6181_v52, -3e+38  ;;  %v2233_v48 = vmax.f32 %v2215_v19, %v2230_v60  ;;  %v1950_v37 = vmax.f32 %v1946_v1, %v1934_v15  ;;  %v6202_v15 = vld [vmem:[#allocation54_spill] sm:$0xff] }
 0x28a   : > { %v2486_v7 = vmax.f32 %v6193_v26, %v2467_v35  ;;  %v2270_v8 = vmax.f32 %v2252_v23, %v2267_v53  ;;  %v2307_v12 = vmax.f32 %v2289_v55, %v2304_v43  ;;  %v2326_v57 = vsel %vm5036_vm7, %v6183_v4, -3e+38  ;;  %v6196_v35 = vld [vmem:[#allocation20_spill] sm:$0xff]  ;;  %v6203_v19 = vld [vmem:[#allocation71_spill] sm:$0xff]  ;;  %v6204_v55 = vld [vmem:[#allocation41_spill] sm:$0xff] }
 0x28b   : > { %v2344_v13 = vmax.f32 %v2326_v57, %v2341_v29  ;;  %v2363_v47 = vsel %vm5036_vm7, %v6184_v11, -3e+38  ;;  %v2400_v52 = vsel %vm5036_vm7, %v6185_v30, -3e+38  ;;  %v2474_v60 = vsel %vm5036_vm7, %v1899_v22, -3e+38 }
 0x28c   : > { %v2381_v54 = vmax.f32 %v2363_v47, %v2378_v28  ;;  %v2418_v58 = vmax.f32 %v2400_v52, %v2415_v46  ;;  %vm6194_vm8 = vnez %v6061_v21  ;;  %v2490_v43 = vmax.f32 %v2486_v7, %v2474_v60  ;;  %v6209_v7 = vld [vmem:[#allocation104_spill] sm:$0xff] }
 0x28d   : > { %v1928_v53 = vsel %vm6194_vm8, %v1875_v5, -3e+38  ;;  %vm6195_vm13 = vnez %v6065_v34  ;;  %v1099_v11 = vadd.f32 %v4540_v56, %v4301_v25  ;;  %v2167_v30 = vadd.f32 %v4297_v16, %v4562_v41 }
 0x28e   : > { %v5069_v4 = vmax.f32 %v1928_v53, %v1950_v37  ;;  %v2468_v29 = vsel %vm6195_vm13, %v1875_v5, -3e+38  ;;  %v1097_v28 = vadd.f32 %v4301_v25, %v4564_v62  ;;  %v2165_v46 = vadd.f32 %v4297_v16, %v4580_v24  ;;  %v6201_v62 = vld [vmem:[#allocation48_spill] sm:$0xff]  ;;  %v6210_v37 = vld [vmem:[#allocation75_spill] sm:$0xff] }
 0x28f   : > { %v1100_v1 = vadd.f32 %v4582_v18, %v4301_v25  ;;  %v5083_v22 = vmax.f32 %v2468_v29, %v2490_v43  ;;  %vm1115_vm0 = vcmp.le.f32.partialorder %v1099_v11, 8.0  ;;  %v1134_v40 = vrot.slane %v4582_v18, 7  ;;  %v6211_v43 = vld [vmem:[#allocation95_spill] sm:$0xff]  ;;  %v6212_v11 = vld [vmem:[#allocation97_spill] sm:$0xff] }
 0x290   : > { %v5088_v56 = vadd.f32 %v4297_v16, %v4607_v10  ;;  %vm6197_vm7 = vnez %v6196_v35  ;;  %v6198_v41 = vmov 0  ;;  %vm2183_vm5 = vcmp.le.f32.partialorder %v2167_v30, 16.0  ;;  %v6213_v35 = vld [vmem:[#allocation37_spill] sm:$0xff] }
 0x291   : > { %vm5092_vm15 = vmand %vm6197_vm7, %vm1115_vm0  ;;  %vm1113_vm12 = vcmp.le.f32.partialorder %v1097_v28, 8.0  ;;  %vm2181_vm4 = vcmp.le.f32.partialorder %v2165_v46, 16.0  ;;  %vm1116_vm6 = vcmp.le.f32.partialorder %v1100_v1, 8.0  ;;  %vm6205_vm0 = vnez %v6204_v55 }
 0x292   : > { %v6199_v41 = vsel %vm5092_vm15, 4294967295, %v6198_v41  ;;  %v1232_v24 = vsel %vm5092_vm15, %v6201_v62, -3e+38  ;;  %v1333_v18 = vsel %vm5092_vm15, %v6202_v15, -3e+38  ;;  %vm5107_vm7 = vmand %vm6205_vm0, %vm2183_vm5  ;;  %v6206_v26 = vmov 0 }
 0x293   : > { %6200 = vst [vmem:[#allocation28_spill] sm:$0xff] %v6199_v41  ;;  %v1434_v23 = vsel %vm5092_vm15, %v6203_v19, -3e+38  ;;  %v6207_v26 = vsel %vm5107_vm7, 4294967295, %v6206_v26  ;;  %v1136_v5 = vadd.f32 %v1134_v40, %v6209_v7  ;;  %v1247_v57 = vmax.f32 %v1232_v24, %v1245_v36  ;;  %v6223_v7 = vld [vmem:[#allocation47_spill] sm:$0xff] }
 0x294   : > { %6208 = vst [vmem:[#allocation69_spill] sm:$0xff] %v6207_v26  ;;  %v1348_v47 = vmax.f32 %v1333_v18, %v1346_v44  ;;  %v1449_v52 = vmax.f32 %v1434_v23, %v1447_v42  ;;  %v1535_v60 = vsel %vm5092_vm15, %v6210_v37, -3e+38  ;;  %v1636_v29 = vsel %vm5092_vm15, %v6211_v43, -3e+38 }
 0x295   : > { %v1550_v53 = vmax.f32 %v1535_v60, %v1548_v9  ;;  %v1737_v30 = vsel %vm5092_vm15, %v6212_v11, -3e+38  ;;  %v2220_v40 = vsel %vm5107_vm7, %v6201_v62, -3e+38  ;;  %1137 = vst [vmem:[#allocation3] sm:$0x1] %v1136_v5  ;;  %v1651_v36 = vmax.f32 %v1636_v29, %v1649_v63 }
 0x296   : > { %v1752_v44 = vmax.f32 %v1737_v30, %v1750_v27  ;;  %v2235_v42 = vmax.f32 %v2220_v40, %v2233_v48  ;;  %v2257_v9 = vsel %vm5107_vm7, %v6202_v15, -3e+38  ;;  %vm6214_vm5 = vnez %v6213_v35  ;;  %v6226_v29 = vld [vmem:[#allocation74_spill] sm:$0xff]  ;;  %v6227_v30 = vld [vmem:[#allocation93_spill] sm:$0xff] }
 0x297   : > { %vm5130_vm0 = vmand %vm6214_vm5, %vm1113_vm12  ;;  %v6215_v24 = vmov 0  ;;  %v2272_v18 = vmax.f32 %v2257_v9, %v2270_v8  ;;  %v2294_v62 = vsel %vm5107_vm7, %v6203_v19, -3e+38  ;;  %v2331_v63 = vsel %vm5107_vm7, %v6210_v37, -3e+38  ;;  %v6218_v8 = vld [vmem:[#allocation39_spill] sm:$0xff] }
 0x298   : > { %v6216_v24 = vsel %vm5130_vm0, 4294967295, %v6215_v24  ;;  %v2368_v27 = vsel %vm5107_vm7, %v6211_v43, -3e+38  ;;  %v2309_v48 = vmax.f32 %v2294_v62, %v2307_v12  ;;  %v2346_v28 = vmax.f32 %v2331_v63, %v2344_v13  ;;  %v6224_v37 = vld [vmem:[#allocation52_spill] sm:$0xff]  ;;  %v6225_v13 = vld [vmem:[#allocation70_spill] sm:$0xff] }
 0x299   : > { %6217 = vst [vmem:[#allocation88_spill] sm:$0xff] %v6216_v24  ;;  %v2383_v15 = vmax.f32 %v2368_v27, %v2381_v54  ;;  %v2405_v23 = vsel %vm5107_vm7, %v6212_v11, -3e+38  ;;  %vm6219_vm12 = vnez %v6218_v8  ;;  %v6220_v19 = vmov 0  ;;  %v6228_v9 = vld [vmem:[#allocation96_spill] sm:$0xff]  ;;  %v6229_v27 = vld [vmem:[#allocation35_spill] sm:$0xff] }
 0x29a   : > { %vm5149_vm5 = vmand %vm6219_vm12, %vm2181_vm4  ;;  %v2420_v55 = vmax.f32 %v2405_v23, %v2418_v58  ;;  %v1230_v5 = vsel %vm5130_vm0, %v6223_v7, -3e+38  ;;  %v1331_v12 = vsel %vm5130_vm0, %v6224_v37, -3e+38  ;;  %v1432_v54 = vsel %vm5130_vm0, %v6225_v13, -3e+38 }
 0x29b   : > { %v6221_v19 = vsel %vm5149_vm5, 4294967295, %v6220_v19  ;;  %v1243_v46 = vmax.f32 %v1230_v5, %v1247_v57  ;;  %v1344_v60 = vmax.f32 %v1331_v12, %v1348_v47  ;;  %v1445_v43 = vmax.f32 %v1432_v54, %v1449_v52  ;;  %v5174_v57 = vpop.permute.xlu1 %1882  ;;  %v6233_v12 = vld [vmem:[#allocation45_spill] sm:$0xff]  ;;  %v6234_v54 = vld [vmem:[#allocation60_spill] sm:$0xff] }
 0x29c   : > { %6222 = vst [vmem:[#allocation89_spill] sm:$0xff] %v6221_v19  ;;  %v1533_v11 = vsel %vm5130_vm0, %v6226_v29, -3e+38  ;;  %v1634_v40 = vsel %vm5130_vm0, %v6227_v30, -3e+38  ;;  %vm6230_vm4 = vnez %v6229_v27 }
 0x29d   : > { %v1546_v58 = vmax.f32 %v1533_v11, %v1550_v53  ;;  %v1735_v35 = vsel %vm5130_vm0, %v6228_v9, -3e+38  ;;  %v2218_v62 = vsel %vm5149_vm5, %v6223_v7, -3e+38  ;;  %v1647_v47 = vmax.f32 %v1634_v40, %v1651_v36  ;;  %vm5182_vm12 = vmand %vm6230_vm4, %vm1116_vm6  ;;  %v6235_v11 = vld [vmem:[#allocation66_spill] sm:$0xff]  ;;  %v6236_v40 = vld [vmem:[#allocation84_spill] sm:$0xff] }
 0x29e   : > { %v1748_v52 = vmax.f32 %v1735_v35, %v1752_v44  ;;  %v2231_v63 = vmax.f32 %v2218_v62, %v2235_v42  ;;  %v2255_v53 = vsel %vm5149_vm5, %v6224_v37, -3e+38  ;;  %v2292_v7 = vsel %vm5149_vm5, %v6225_v13, -3e+38  ;;  %v6237_v35 = vld [vmem:[#allocation87_spill] sm:$0xff] }
 0x29f   : > { %v2268_v8 = vmax.f32 %v2255_v53, %v2272_v18  ;;  %v2329_v36 = vsel %vm5149_vm5, %v6226_v29, -3e+38  ;;  %v2366_v44 = vsel %vm5149_vm5, %v6227_v30, -3e+38  ;;  %v2305_v1 = vmax.f32 %v2292_v7, %v2309_v48  ;;  %v5217_v27 = vpop.permute.xlu1 %1890 }
 0x2a0   : > { %v2342_v42 = vmax.f32 %v2329_v36, %v2346_v28  ;;  %v2379_v5 = vmax.f32 %v2366_v44, %v2383_v15  ;;  %v2403_v37 = vsel %vm5149_vm5, %v6228_v9, -3e+38  ;;  %v1233_v13 = vsel %vm5182_vm12, %v6233_v12, -3e+38 }
 0x2a1   : > { %v2416_v18 = vmax.f32 %v2403_v37, %v2420_v55  ;;  %v1334_v29 = vsel %vm5182_vm12, %v6234_v54, -3e+38  ;;  %v1435_v30 = vsel %vm5182_vm12, %v6235_v11, -3e+38  ;;  %v1246_v48 = vmax.f32 %v1233_v13, %v1243_v46  ;;  %v2992_v13 = vld [vmem:[#allocation3 + $0x1] sm:$0x1] }
 0x2a2   : > { %v1347_v28 = vmax.f32 %v1334_v29, %v1344_v60  ;;  %v1448_v15 = vmax.f32 %v1435_v30, %v1445_v43  ;;  %v1536_v9 = vsel %vm5182_vm12, %v6236_v40, -3e+38  ;;  %v1637_v62 = vsel %vm5182_vm12, %v6237_v35, -3e+38  ;;  %v6238_v43 = vld [vmem:[#allocation36_spill] sm:$0xff] }
 0x2a3   : > { %v1549_v55 = vmax.f32 %v1536_v9, %v1546_v58  ;;  %v1738_v53 = vsel %vm5182_vm12, %v4461_v6, -3e+38  ;;  %vm2184_vm6 = vcmp.le.f32.partialorder %v5088_v56, 16.0  ;;  %v1650_v46 = vmax.f32 %v1637_v62, %v1647_v47 }
 0x2a4   : > { %v1751_v60 = vmax.f32 %v1738_v53, %v1748_v52  ;;  %vm6239_vm4 = vnez %v6238_v43  ;;  %v2202_v58 = vrot.slane %v4607_v10, 7  ;;  %v1098_v36 = vadd.f32 %v4301_v25, %v4609_v38  ;;  %v6242_v52 = vld [vmem:[#allocation119_spill] sm:$0xff] }
 0x2a5   : > { %vm5221_vm7 = vmand %vm6239_vm4, %vm2184_vm6  ;;  %v2166_v37 = vadd.f32 %v4297_v16, %v6242_v52  ;;  %v6250_v53 = vld [vmem:[#allocation19_spill] sm:$0xff] }
 0x2a6   : > { %v2221_v44 = vsel %vm5221_vm7, %v6233_v12, -3e+38  ;;  %v2258_v56 = vsel %vm5221_vm7, %v6234_v54, -3e+38  ;;  %v2295_v47 = vsel %vm5221_vm7, %v6235_v11, -3e+38  ;;  %v2204_v10 = vadd.f32 %v2992_v13, %v2202_v58 }
 0x2a7   : > { %v2234_v29 = vmax.f32 %v2221_v44, %v2231_v63  ;;  %v2271_v30 = vmax.f32 %v2258_v56, %v2268_v8  ;;  %v5239_v25 = vmax.f32 %v2295_v47, %v2305_v1  ;;  %v2332_v38 = vsel %vm5221_vm7, %v6236_v40, -3e+38  ;;  %v6243_v8 = vld [vmem:[#allocation33_spill] sm:$0xff]  ;;  %v6254_v47 = vld [vmem:[#allocation82_spill] sm:$0xff] }
 0x2a8   : > { %v2369_v12 = vsel %vm5221_vm7, %v6237_v35, -3e+38  ;;  %v2406_v54 = vsel %vm5221_vm7, %v4461_v6, -3e+38  ;;  %2205 = vst [vmem:[#allocation3 + $0x1] sm:$0x1] %v2204_v10  ;;  %v5250_v16 = vmax.f32 %v2332_v38, %v2342_v42  ;;  %vm6244_vm4 = vnez %v6243_v8  ;;  %v5265_v6 = vpop.permute.xlu1 %1805 }
 0x2a9   : > { %v5252_v11 = vmax.f32 %v2369_v12, %v2379_v5  ;;  %v5254_v63 = vmax.f32 %v2406_v54, %v2416_v18  ;;  %vm1114_vm6 = vcmp.le.f32.partialorder %v1098_v36, 8.0  ;;  %vm2182_vm5 = vcmp.le.f32.partialorder %v2166_v37, 16.0  ;;  %v6247_v42 = vld [vmem:[#allocation43_spill] sm:$0xff]  ;;  %v6248_v18 = vld [vmem:[#allocation58_spill] sm:$0xff]  ;;  %v6249_v35 = vld [vmem:[#allocation64_spill] sm:$0xff] }
 0x2aa   : > { %vm5258_vm15 = vmand %vm6244_vm4, %vm1114_vm6  ;;  %v1930_v40 = vsel %vm4749_vm2, %v5174_v57, -3e+38  ;;  %vm6251_vm6 = vnez %v6250_v53  ;;  %v6255_v13 = vld [vmem:[#allocation86_spill] sm:$0xff]  ;;  %v6256_v38 = vld [vmem:[#allocation111_spill] sm:$0xff] }
 0x2ab   : > { %v1231_v5 = vsel %vm5258_vm15, %v6247_v42, -3e+38  ;;  %v1332_v9 = vsel %vm5258_vm15, %v6248_v18, -3e+38  ;;  %v1433_v62 = vsel %vm5258_vm15, %v6249_v35, -3e+38  ;;  %vm5278_vm4 = vmand %vm6251_vm6, %vm2182_vm5  ;;  %v5283_v58 = vmax.f32 %v1930_v40, %v5069_v4 }
 0x2ac   : > { %v1248_v36 = vmax.f32 %v1246_v48, %v1231_v5  ;;  %v1349_v44 = vmax.f32 %v1347_v28, %v1332_v9  ;;  %v1450_v56 = vmax.f32 %v1448_v15, %v1433_v62  ;;  %v1534_v52 = vsel %vm5258_vm15, %v6254_v47, -3e+38  ;;  %v5300_v26 = vpop.permute.xlu1 %1894 }
 0x2ad   : > { %v1551_v37 = vmax.f32 %v1549_v55, %v1534_v52  ;;  %v1635_v10 = vsel %vm5258_vm15, %v6255_v13, -3e+38  ;;  %v1736_v12 = vsel %vm5258_vm15, %v6256_v38, -3e+38  ;;  %v2219_v4 = vsel %vm5278_vm4, %v6247_v42, -3e+38 }
 0x2ae   : > { %v1249_v48 = vrot.slane %v1248_v36, 4  ;;  %v1350_v28 = vrot.slane %v1349_v44, 4  ;;  %v1451_v15 = vrot.slane %v1450_v56, 4  ;;  %v1652_v54 = vmax.f32 %v1650_v46, %v1635_v10 }
 0x2af   : > { %v1552_v8 = vrot.slane %v1551_v37, 4  ;;  %v1753_v40 = vmax.f32 %v1751_v60, %v1736_v12  ;;  %v2236_v5 = vmax.f32 %v2234_v29, %v2219_v4  ;;  %v2256_v55 = vsel %vm5278_vm4, %v6248_v18, -3e+38 }
 0x2b0   : > { %v1250_v9 = vmax.f32 %v1248_v36, %v1249_v48  ;;  %v1351_v62 = vmax.f32 %v1349_v44, %v1350_v28  ;;  %v1452_v53 = vmax.f32 %v1450_v56, %v1451_v15  ;;  %v1653_v52 = vrot.slane %v1652_v54, 4 }
 0x2b1   : > { %v1553_v33 = vmax.f32 %v1551_v37, %v1552_v8  ;;  %v1754_v41 = vrot.slane %v1753_v40, 4  ;;  %v2237_v42 = vrot.slane %v2236_v5, 4  ;;  %v2273_v19 = vmax.f32 %v2271_v30, %v2256_v55 }
 0x2b2   : > { %v1251_v49 = vrot.slane %v1250_v9, 2  ;;  %v1352_v24 = vrot.slane %v1351_v62, 2  ;;  %v1453_v46 = vrot.slane %v1452_v53, 2  ;;  %v1654_v10 = vmax.f32 %v1652_v54, %v1653_v52 }
 0x2b3   : > { %v1554_v60 = vrot.slane %v1553_v33, 2  ;;  %v5302_v29 = vmax.f32 %v1753_v40, %v1754_v41  ;;  %v2238_v12 = vmax.f32 %v2236_v5, %v2237_v42  ;;  %v2274_v4 = vrot.slane %v2273_v19, 4  ;;  %v5310_v40 = vpop.permute.xlu1 %1902 }
 0x2b4   : > { %v1252_v18 = vmax.f32 %v1250_v9, %v1251_v49  ;;  %v1353_v36 = vmax.f32 %v1351_v62, %v1352_v24  ;;  %v1454_v44 = vmax.f32 %v1452_v53, %v1453_v46  ;;  %v1655_v56 = vrot.slane %v1654_v10, 2  ;;  %v1915_v46 = vpop.permute.xlu0 %1914 }
 0x2b5   : > { %v5304_v48 = vmax.f32 %v1553_v33, %v1554_v60  ;;  %v2239_v28 = vrot.slane %v2238_v12, 2  ;;  %v2275_v37 = vmax.f32 %v2273_v19, %v2274_v4  ;;  %v2470_v30 = vsel %vm4775_vm1, %v5174_v57, -3e+38 }
 0x2b6   : > { %v1253_v15 = vrot.slane %v1252_v18, 1  ;;  %v1354_v8 = vrot.slane %v1353_v36, 1  ;;  %v1455_v54 = vrot.slane %v1454_v44, 1  ;;  %v1756_v41 = vrot.slane %v5302_v29, 2 }
 0x2b7   : > { %v5312_v5 = vmax.f32 %v1654_v10, %v1655_v56  ;;  %v2240_v49 = vmax.f32 %v2238_v12, %v2239_v28  ;;  %v2276_v24 = vrot.slane %v2275_v37, 2  ;;  %v2293_v33 = vsel %vm5278_vm4, %v6249_v35, -3e+38 }
 0x2b8   : > { %v5317_v19 = vmax.f32 %v1252_v18, %v1253_v15  ;;  %v5319_v55 = vmax.f32 %v1353_v36, %v1354_v8  ;;  %v1556_v57 = vrot.slane %v5304_v48, 1  ;;  %v2310_v9 = vmax.f32 %v5239_v25, %v2293_v33 }
 0x2b9   : > { %v2241_v62 = vrot.slane %v2240_v49, 1  ;;  %v2277_v53 = vmax.f32 %v2275_v37, %v2276_v24  ;;  %v2330_v52 = vsel %vm5278_vm4, %v6254_v47, -3e+38  ;;  %v2367_v42 = vsel %vm5278_vm4, %v6255_v13, -3e+38 }
 0x2ba   : > { %v2311_v35 = vrot.slane %v2310_v9, 4  ;;  %v2347_v10 = vmax.f32 %v5250_v16, %v2330_v52  ;;  %v2384_v60 = vmax.f32 %v5252_v11, %v2367_v42  ;;  %v2404_v25 = vsel %vm5278_vm4, %v6256_v38, -3e+38  ;;  %v1907_v16 = vpop.permute.xlu1 %1906 }
 0x2bb   : > { %v5334_v12 = vmax.f32 %v1454_v44, %v1455_v54  ;;  %v2278_v4 = vrot.slane %v2277_v53, 1  ;;  %v2421_v18 = vmax.f32 %v5254_v63, %v2404_v25  ;;  %v2485_v47 = vmax.f32 %v2470_v30, %v5083_v22 }
 0x2bc   : > { %v2312_v36 = vmax.f32 %v2310_v9, %v2311_v35  ;;  %v2348_v56 = vrot.slane %v2347_v10, 4  ;;  %v2385_v13 = vrot.slane %v2384_v60, 4  ;;  %v1938_v28 = vsel %vm5258_vm15, %v1915_v46, -3e+38  ;;  %v6258_v35 = vld [vmem:[#allocation103_spill] sm:$0xff] }
 0x2bd   : > { %v5340_v37 = vmax.f32 %v2240_v49, %v2241_v62  ;;  %v2422_v11 = vrot.slane %v2421_v18, 4  ;;  %v1947_v15 = vmax.f32 %v1938_v28, %v5283_v58  ;;  %v2478_v38 = vsel %vm5278_vm4, %v1915_v46, -3e+38  ;;  %v6257_v46 = vld [vmem:[#allocation99_spill] sm:$0xff] }
 0x2be   : > { %v2313_v44 = vrot.slane %v2312_v36, 2  ;;  %v2349_v8 = vmax.f32 %v2347_v10, %v2348_v56  ;;  %v2386_v63 = vmax.f32 %v2384_v60, %v2385_v13  ;;  %v2487_v54 = vmax.f32 %v2478_v38, %v2485_v47  ;;  %v6259_v13 = vld [vmem:[#allocation114_spill] sm:$0xff] }
 0x2bf   : > { %v5345_v22 = vmax.f32 %v2277_v53, %v2278_v4  ;;  %v5347_v30 = vmax.f32 %v2421_v18, %v2422_v11  ;;  %v1932_v24 = vsel %vm4695_vm14, %v5217_v27, -3e+38  ;;  %v2472_v49 = vsel %vm4733_vm9, %v5217_v27, -3e+38  ;;  %v5369_v18 = vpop.permute.xlu1 %1813 }
 0x2c0   : > { %v2314_v58 = vmax.f32 %v2312_v36, %v2313_v44  ;;  %v2350_v33 = vrot.slane %v2349_v8, 2  ;;  %v2387_v9 = vrot.slane %v2386_v63, 2  ;;  %v1948_v62 = vmax.f32 %v1932_v24, %v1947_v15 }
 0x2c1   : > { %v2424_v52 = vrot.slane %v5347_v30, 2  ;;  %v2488_v42 = vmax.f32 %v2472_v49, %v2487_v54  ;;  %v1827_v53 = vsel %vm6194_vm8, %v6257_v46, -3e+38  ;;  %v1831_v10 = vsel %vm4695_vm14, %v6258_v35, -3e+38 }
 0x2c2   : > { %v2315_v60 = vrot.slane %v2314_v58, 1  ;;  %v5362_v25 = vmax.f32 %v2349_v8, %v2350_v33  ;;  %v5364_v4 = vmax.f32 %v2386_v63, %v2387_v9  ;;  %v1835_v27 = vsel %vm4937_vm10, %v5265_v6, -3e+38 }
 0x2c3   : > { %v1843_v47 = vmax.f32 %v1827_v53, %v1831_v10  ;;  %v2431_v21 = vsel %vm6195_vm13, %v6257_v46, -3e+38  ;;  %v2435_v61 = vsel %vm4733_vm9, %v6258_v35, -3e+38  ;;  %v2439_v36 = vsel %vm4968_vm11, %v5265_v6, -3e+38  ;;  %v5413_v35 = vpop.permute.xlu1 %1817 }
 0x2c4   : > { %v2352_v56 = vrot.slane %v5362_v25, 1  ;;  %v1839_v28 = vsel %vm5182_vm12, %v6259_v13, -3e+38  ;;  %v2443_v11 = vsel %vm5221_vm7, %v6259_v13, -3e+38  ;;  %v2447_v34 = vmax.f32 %v2431_v21, %v2435_v61  ;;  %v6265_v53 = vld [vmem:[#allocation116_spill] sm:$0xff] }
 0x2c5   : > { %v1847_v15 = vmax.f32 %v1843_v47, %v1835_v27  ;;  %v1933_v45 = vsel %vm4892_vm3, %v5300_v26, -3e+38  ;;  %vm6260_vm14 = vnez %v6154_v2  ;;  %vm6261_vm9 = vnez %v6135_v59  ;;  %v6270_v27 = vld [vmem:[#allocation49_spill] sm:$0xff]  ;;  %v6271_v61 = vld [vmem:[#allocation106_spill] sm:$0xff] }
 0x2c6   : > { %v2473_v6 = vsel %vm6260_vm14, %v5300_v26, -3e+38  ;;  %v1935_v38 = vsel %vm6261_vm9, %v5310_v40, -3e+38  ;;  %v2451_v44 = vmax.f32 %v2447_v34, %v2439_v36  ;;  %v1949_v8 = vmax.f32 %v1933_v45, %v1948_v62  ;;  %v6263_v26 = vld [vmem:[#allocation98_spill] sm:$0xff]  ;;  %v6277_v34 = vld [vmem:[#allocation115_spill] sm:$0xff] }
 0x2c7   : > { %v2489_v63 = vmax.f32 %v2473_v6, %v2488_v42  ;;  %vm6262_vm8 = vnez %v6144_v14  ;;  %v5399_v24 = vmax.f32 %v1847_v15, %v1839_v28  ;;  %v1936_v49 = vsel %vm4937_vm10, %v1907_v16, -3e+38  ;;  %v6275_v28 = vld [vmem:[#allocation112_spill] sm:$0xff] }
 0x2c8   : > { %v2475_v54 = vsel %vm6262_vm8, %v5310_v40, -3e+38  ;;  %v2476_v33 = vsel %vm4968_vm11, %v1907_v16, -3e+38  ;;  %vm6264_vm13 = vnez %v6052_v31  ;;  %v5408_v46 = vmax.f32 %v2451_v44, %v2443_v11  ;;  %v6269_v16 = vld [vmem:[#allocation101_spill] sm:$0xff] }
 0x2c9   : > { %v1824_v9 = vsel %vm6264_vm13, %v6263_v26, -3e+38  ;;  %v1953_v62 = vmax.f32 %v1949_v8, %v1935_v38  ;;  %v2493_v42 = vmax.f32 %v2489_v63, %v2475_v54  ;;  %vm6266_vm5 = vnez %v6069_v32  ;;  %v6281_v63 = vld [vmem:[#allocation65_spill] sm:$0xff] }
 0x2ca   : > { %v1825_v40 = vsel %vm6266_vm5, %v6265_v53, -3e+38  ;;  %v5415_v10 = vmax.f32 %v2314_v58, %v2315_v60  ;;  %vm6268_vm10 = vnez %v6089_v50  ;;  %v1829_v31 = vsel %vm4749_vm2, %v6269_v16, -3e+38  ;;  %v6273_v60 = vld [vmem:[#allocation113_spill] sm:$0xff] }
 0x2cb   : > { %v1828_v39 = vsel %vm6268_vm10, %v6267_v51, -3e+38  ;;  %v1832_v47 = vsel %vm4892_vm3, %v6270_v27, -3e+38  ;;  %vm1962_vm11 = vcmask 1040384   ;;  %v5426_v21 = vmax.f32 %v1936_v49, %v1953_v62  ;;  %v6283_v49 = vld [vmem:[#allocation89_spill] sm:$0xff] }
 0x2cc   : > { %v5428_v32 = vmax.f32 %v2476_v33, %v2493_v42  ;;  %vm6272_vm6 = vnez %v6176_v0  ;;  %v1836_v36 = vsel %vm5130_vm0, %v6273_v60, -3e+38  ;;  %v1837_v17 = vsel %vm5258_vm15, %v5369_v18, -3e+38  ;;  %v6279_v0 = vld [vmem:[#allocation15_spill] sm:$0xff] }
 0x2cd   : > { %v1833_v58 = vsel %vm6272_vm6, %v6271_v61, -3e+38  ;;  %v1840_v13 = vmax.f32 %v1824_v9, %v1828_v39  ;;  %v1841_v20 = vmax.f32 %v1825_v40, %v1829_v31  ;;  %vm6276_vm2 = vnez %v6275_v28 }
 0x2ce   : > { %v2428_v11 = vsel %vm6276_vm2, %v6263_v26, -3e+38  ;;  %vm6278_vm3 = vnez %v6277_v34  ;;  %vm6280_vm13 = vnez %v6279_v0  ;;  %v2433_v6 = vsel %vm4775_vm1, %v6269_v16, -3e+38 }
 0x2cf   : > { %v2429_v15 = vsel %vm6278_vm3, %v6265_v53, -3e+38  ;;  %v2432_v45 = vsel %vm6280_vm13, %v6267_v51, -3e+38  ;;  %v1757_v1 = vmax.f32 %v5302_v29, %v1756_v41  ;;  %v1844_v38 = vmax.f32 %v1840_v13, %v1832_v47  ;;  %v1911_v41 = vpop.permute.xlu1 %1910  ;;  %v6288_v47 = vld [vmem:[#allocation21_spill] sm:$0xff] }
 0x2d0   : > { %v1845_v44 = vmax.f32 %v1841_v20, %v1833_v58  ;;  %v2436_v8 = vsel %vm6260_vm14, %v6270_v27, -3e+38  ;;  %vm6282_vm15 = vnez %v6281_v63  ;;  %vm6284_vm5 = vnez %v6283_v49 }
 0x2d1   : > { %v2437_v54 = vsel %vm6282_vm15, %v6271_v61, -3e+38  ;;  %v2440_v33 = vsel %vm6284_vm5, %v6273_v60, -3e+38  ;;  %v2444_v3 = vmax.f32 %v2428_v11, %v2432_v45  ;;  %v2445_v26 = vmax.f32 %v2429_v15, %v2433_v6  ;;  %v6289_v61 = vld [vmem:[#allocation117_spill] sm:$0xff]  ;;  %v6291_v60 = vld [vmem:[#allocation110_spill] sm:$0xff] }
 0x2d2   : > { %v1557_v29 = vmax.f32 %v5304_v48, %v1556_v57  ;;  %v1848_v9 = vmax.f32 %v1844_v38, %v1836_v36  ;;  %v1849_v62 = vmax.f32 %v1845_v44, %v1837_v17  ;;  %v2441_v2 = vsel %vm5278_vm4, %v5369_v18, -3e+38  ;;  %v6285_v48 = vld [vmem:[#allocation118_spill] sm:$0xff]  ;;  %v6286_v57 = vld [vmem:[#allocation107_spill] sm:$0xff]  ;;  %v6292_v17 = vld [vmem:[#allocation28_spill] sm:$0xff] }
 0x2d3   : > { %vm1964_vm1 = vcmask 1041408   ;;  %v2448_v42 = vmax.f32 %v2444_v3, %v2436_v8  ;;  %v2449_v53 = vmax.f32 %v2445_v26, %v2437_v54  ;;  %vm1966_vm14 = vcmask 1042432   ;;  %v6294_v45 = vld [vmem:[#allocation109_spill] sm:$0xff] }
 0x2d4   : > { %vm1968_vm10 = vcmask 1043456   ;;  %v1852_v40 = vmax.f32 %v1848_v9, %v1849_v62  ;;  %vm1970_vm6 = vcmask 1044480   ;;  %v1657_v51 = vrot.slane %v5312_v5, 1 }
 0x2d5   : > { %v1758_v39 = vrot.slane %v1757_v1, 1  ;;  %v2452_v16 = vmax.f32 %v2448_v42, %v2440_v33  ;;  %v2453_v31 = vmax.f32 %v2449_v53, %v2441_v2  ;;  %vm6287_vm2 = vnez %v6286_v57 }
 0x2d6   : > { %v1826_v27 = vsel %vm6287_vm2, %v6285_v48, -3e+38  ;;  %vm6290_vm3 = vnez %v6289_v61  ;;  %v1658_v18 = vmax.f32 %v5312_v5, %v1657_v51  ;;  %v1834_v36 = vsel %vm6261_vm9, %v6291_v60, -3e+38  ;;  %v1919_v5 = vpop.permute.xlu1 %1918 }
 0x2d7   : > { %v1830_v43 = vsel %vm6290_vm3, %v6288_v47, -3e+38  ;;  %v1759_v58 = vmax.f32 %v1757_v1, %v1758_v39  ;;  %vm6293_vm4 = vnez %v6292_v17  ;;  %v2456_v20 = vmax.f32 %v2452_v16, %v2453_v31 }
 0x2d8   : > { %v1838_v13 = vsel %vm6293_vm4, %v5413_v35, -3e+38  ;;  %v1842_v28 = vmax.f32 %v1826_v27, %v1830_v43  ;;  %v1963_v11 = vsel %vm1962_vm11, %v5317_v19, %v5319_v55  ;;  %v2353_v34 = vmax.f32 %v5362_v25, %v2352_v56  ;;  %v6296_v55 = vld [vmem:[#allocation120_spill] sm:$0xff] }
 0x2d9   : > { %v1965_v15 = vsel %vm1964_vm1, %v1963_v11, %v5334_v12  ;;  %v2389_v59 = vrot.slane %v5364_v4, 1  ;;  %v2425_v0 = vmax.f32 %v5347_v30, %v2424_v52  ;;  %vm6295_vm9 = vnez %v6294_v45  ;;  %v6298_v52 = vld [vmem:[#allocation69_spill] sm:$0xff] }
 0x2da   : > { %v2430_v6 = vsel %vm6295_vm9, %v6285_v48, -3e+38  ;;  %v1846_v1 = vmax.f32 %v1842_v28, %v1834_v36  ;;  %v1967_v19 = vsel %vm1966_vm14, %v1965_v15, %v1557_v29  ;;  %vm6297_vm13 = vnez %v6296_v55  ;;  %v1923_v2 = vpop.permute.xlu1 %1922 }
 0x2db   : > { %v2434_v25 = vsel %vm6297_vm13, %v6288_v47, -3e+38  ;;  %v2438_v12 = vsel %vm6262_vm8, %v6291_v60, -3e+38  ;;  %v1969_v56 = vsel %vm1968_vm10, %v1967_v19, %v1658_v18  ;;  %v2390_v38 = vmax.f32 %v5364_v4, %v2389_v59  ;;  %v1976_v59 = vld [vmem:[#allocation2] sm:$0xff]  ;;  %v2509_v19 = vld [vmem:[#allocation2 + $0x8] sm:$0xff] }
 0x2dc   : > { %v2426_v30 = vrot.slane %v2425_v0, 1  ;;  %vm6299_vm15 = vnez %v6298_v52  ;;  %v1850_v8 = vmax.f32 %v1846_v1, %v1838_v13  ;;  %v1971_v63 = vsel %vm1970_vm6, %v1969_v56, %v1759_v58 }
 0x2dd   : > { %v2442_v44 = vsel %vm6299_vm15, %v5413_v35, -3e+38  ;;  %v2446_v54 = vmax.f32 %v2430_v6, %v2434_v25  ;;  %v2502_v33 = vsel %vm1962_vm11, %v5340_v37, %v5345_v22  ;;  %v1937_v4 = vsel %vm5130_vm0, %v1911_v41, -3e+38 }
 0x2de   : > { %v2427_v3 = vmax.f32 %v2425_v0, %v2426_v30  ;;  %v2503_v14 = vsel %vm1964_vm1, %v2502_v33, %v5415_v10  ;;  %v2477_v26 = vsel %vm6284_vm5, %v1911_v41, -3e+38  ;;  %v1853_v35 = vmax.f32 %v1850_v8, %v5399_v24  ;;  %v2527_v30 = vld [vmem:[#allocation3 + $0x1] sm:$0x1] (!%p2756_p1) }
 0x2df   : > { %v2450_v29 = vmax.f32 %v2446_v54, %v2438_v12  ;;  %v2504_v9 = vsel %vm1966_vm14, %v2503_v14, %v2353_v34  ;;  %v1952_v62 = vmax.f32 %v1937_v4, %v5426_v21  ;;  %v2492_v22 = vmax.f32 %v2477_v26, %v5428_v32  ;;  %v6300_v54 = vld [vmem:[#allocation27_spill] sm:$0xff] (!%p2756_p1) }
 0x2e0   : > { %v2505_v37 = vsel %vm1968_vm10, %v2504_v9, %v2390_v38  ;;  %v1939_v10 = vsel %vm6293_vm4, %v1919_v5, -3e+38  ;;  %v2479_v50 = vsel %vm6299_vm15, %v1919_v5, -3e+38  ;;  %v1854_v49 = vmax.f32 %v1852_v40, %v1853_v35  ;;  %v2516_v38 = vld [vmem:[#allocation3] sm:$0x1] (!%p2756_p1) }
 0x2e1   : > { %v2454_v41 = vmax.f32 %v2450_v29, %v2442_v44  ;;  %v2506_v24 = vsel %vm1970_vm6, %v2505_v37, %v2427_v3  ;;  %v1954_v42 = vmax.f32 %v1939_v10, %v1952_v62  ;;  %v2494_v53 = vmax.f32 %v2479_v50, %v2492_v22 }
 0x2e2   : > { %v1940_v21 = vsel %vm5182_vm12, %v1923_v2, -3e+38  ;;  %v2480_v51 = vsel %vm5221_vm7, %v1923_v2, -3e+38  ;;  %v1855_v39 = vrot.slane %v1854_v49, 4  ;;  %vm1972_vm7 = vcmask 1045504  }
 0x2e3   : > { %v2457_v32 = vmax.f32 %v2454_v41, %v5408_v46  ;;  %v1955_v16 = vmax.f32 %v1940_v21, %v1954_v42  ;;  %v2495_v31 = vmax.f32 %v2480_v51, %v2494_v53  ;;  %vm1974_vm0 = vcmask 1046528  }
 0x2e4   : > { %v1856_v48 = vmax.f32 %v1854_v49, %v1855_v39  ;;  %vm2517_vm12 = vcmp.gt.f32.partialorder (!%p2756_p1), %v2516_v38, 0.0  ;;  %vm2528_vm8 = vcmp.gt.f32.partialorder (!%p2756_p1), %v2527_v30, 0.0  ;;  %v3101_v52 = vmov (!%p2756_p1), 0  }
 0x2e5   : > { %v2458_v57 = vmax.f32 %v2456_v20, %v2457_v32  ;;  %v1956_v27 = vrot.slane %v1955_v16, 4  ;;  %v2496_v40 = vrot.slane %v2495_v31, 4  ;;  %v2519_v44 = vsel (!%p2756_p1), %vm2517_vm12, 1, %v3101_v52 }
 0x2e6   : > { %v1857_v47 = vrot.slane %v1856_v48, 2  ;;  %v2530_v8 = vsel (!%p2756_p1), %vm2528_vm8, 1, %v3101_v52  ;;  %v2523_v33 = vrot.slane (!%p2756_p1), %v2519_v44, %v6300_v54 }
 0x2e7   : > { %v2459_v61 = vrot.slane %v2458_v57, 4  ;;  %v1957_v43 = vmax.f32 %v1955_v16, %v1956_v27  ;;  %v2497_v18 = vmax.f32 %v2495_v31, %v2496_v40  ;;  %v2534_v14 = vrot.slane (!%p2756_p1), %v2530_v8, %v6300_v54 }
 0x2e8   : > { %v1858_v58 = vmax.f32 %v1856_v48, %v1857_v47  ;;  %vm2524_vm11 = vcmp.eq.s32.totalorder (!%p2756_p1), %v2523_v33, 1 }
 0x2e9   : > { %v2460_v60 = vmax.f32 %v2458_v57, %v2459_v61  ;;  %v1958_v23 = vrot.slane %v1957_v43, 2  ;;  %v2498_v36 = vrot.slane %v2497_v18, 2  ;;  %vm2535_vm5 = vcmp.eq.s32.totalorder (!%p2756_p1), %v2534_v14, 1 }
 0x2ea   : > { %v1859_v17 = vrot.slane %v1858_v58, 1 }
 0x2eb   : > { %v2461_v7 = vrot.slane %v2460_v60, 2  ;;  %v1959_v13 = vmax.f32 %v1957_v43, %v1958_v23  ;;  %v2499_v28 = vmax.f32 %v2497_v18, %v2498_v36 }
 0x2ec   : > { %v1860_v46 = vmax.f32 %v1858_v58, %v1859_v17 }
 0x2ed   : > { %v2462_v11 = vmax.f32 %v2460_v60, %v2461_v7  ;;  %v1960_v34 = vrot.slane %v1959_v13, 1  ;;  %v2500_v20 = vrot.slane %v2499_v28, 1 }
 0x2ee   : > { %v1973_v5 = vsel %vm1972_vm7, %v1971_v63, %v1860_v46 }
 0x2ef   : > { %v2463_v15 = vrot.slane %v2462_v11, 1  ;;  %v1961_v0 = vmax.f32 %v1959_v13, %v1960_v34  ;;  %v2501_v45 = vmax.f32 %v2499_v28, %v2500_v20 }
 0x2f1   : > { %v2464_v6 = vmax.f32 %v2462_v11, %v2463_v15  ;;  %v1975_v1 = vsel %vm1974_vm0, %v1973_v5, %v1961_v0  ;;  %2515 = sbr.rel (%p2756_p1) target bundleno = 769 (0x301), region = 52 }
 0x2f2   : > { %v1977_v55 = vmax.f32 %v1976_v59, %v1975_v1 }
 0x2f3   : > { %v2507_v25 = vsel %vm1972_vm7, %v2506_v24, %v2464_v6 }
 0x2f4   : > { %1978 = vst [vmem:[#allocation2] sm:$0xff] %v1977_v55  ;;  %v2508_v12 = vsel %vm1974_vm0, %v2507_v25, %v2501_v45 }
 0x2f5   : > { %v2510_v56 = vmax.f32 %v2509_v19, %v2508_v12 }
 0x2f7   : > { %2511 = vst [vmem:[#allocation2 + $0x8] sm:$0xff] %v2510_v56 }
 0x2fb   : > { %v2518_v63 = vld [vmem:[#allocation2] sm:$0xff] }
 0x2fc   : > { %v2525_v4 = vsel %vm2524_vm11, %v2518_v63, 0.0 }
 0x2fd   : > { %2526 = vst [vmem:[%s3243_s20] sm:$0xff] %v2525_v4 }
 0x2fe   : > { %v2529_v3 = vld [vmem:[#allocation2 + $0x8] sm:$0xff] }
 0x2ff   : > { %v2536_v26 = vsel %vm2535_vm5, %v2529_v3, 0.0 }
 0x300   : > { %2537 = vst [vmem:[%s3243_s20 + $0x8] sm:$0xff] %v2536_v26 }
 0x301 PF: > { %s2758_s24 = sshll.u32 %s3076_s25, 7  ;;  %s2551_s27 = sshll.u32 %s3243_s20, 4  ;;  %s5549_s27 = int_to_ptr.vmem [resolvable:$true] %s2551_s27 }
 0x302   : > { %s5546_s26 = scalar_lea.hbm %s5611_s6, %s2758_s24  ;;  %s6301_s7 = sand.u32 1, %s3064_s22  }
 0x303   : > { %s5553_s8 = scalar_lea.sflag [#allocation5], %s6301_s7  ;;  %s2994_s10 = scalar_lea.vmem %s5549_s27, 256 }
 0x304   : > { %p2995_p2 = scmp.ne.s32.totalorder %s5549_s27, %s2994_s10  ;;  %s3102_s25 = smov [#allocation4]  }
 0x305   : > { %s2998_s13 = sshll.u32 %s3102_s25, 4  ;;  %s2999_s13 = int_to_ptr.vmem [resolvable:$false] %s2998_s13 }
 0x306   : > { %p2996_p4 = pnand %p2995_p2, %p3190_p3  ;;  %s3000_s14 = scalar_lea.vmem %s2999_s13, 512 }
 0x307   : > { %p3001_p6 = scmp.lt.s32.totalorder %s5549_s27, %s2999_s13  ;;  %p3002_p7 = scmp.lt.s32.totalorder %s3000_s14, %s2994_s10 }
 0x308   : > { %p2997_p5 = pneg %p2996_p4 }
 0x309   : > { %p3003_p8 = por %p3002_p7, %p3001_p6 }
 0x30b   : > { %p3004_p10 = pnand %p3003_p8, %p2997_p5 }
 0x30d   : > { %3007 = shalt.err (!%p3004_p10)
}
 0x30e   : > { %s3008_s20 = scalar_lea.hbm %s5546_s26, 256  ;;  %s3012_s17 = scalar_lea.hbm %s5611_s6, 512 }
 0x30f   : > { %p3009_p11 = scmp.ne.s32.totalorder %s5546_s26, %s3008_s20  ;;  %p3013_p0 = scmp.lt.u32.totalorder %s5546_s26, %s5611_s6 }
 0x310   : > { %p3014_p1 = scmp.lt.u32.totalorder %s3012_s17, %s3008_s20  ;;  %p3016_p4 = scmp.lt.u32.totalorder %s3008_s20, %s5546_s26 }
 0x311   : > { %p3010_p12 = pnand %p3009_p11, %p3190_p3 }
 0x312   : > { %p3015_p2 = por %p3014_p1, %p3013_p0 }
 0x313   : > { %p3011_p13 = pneg %p3010_p12 }
 0x314   : > { %p3017_p5 = por %p3016_p4, %p3015_p2 }
 0x316   : > { %p3018_p6 = pnand %p3017_p5, %p3011_p13 }
 0x318   : > { %3021 = shalt.err (!%p3018_p6)
}
 0x319   : > { %s3103_s30 = smov 128   ;;  %s3104_s11 = smov 256  }
 0x31a   : > { %s3105_s12 = smov 8  }
 0x31b   : > { %2857 = dma.vmem_to_hbm [thread:$0]  (%p3190_p3), %s5549_s27, 256, %s5546_s26, %s5553_s8, %s3103_s30, %s3104_s11, %s3105_s12  }
 0x31c PF: > { %s6302_s21 = sld [smem:[#allocation7_spill]]  ;;  %p2863_p7 = scmp.ge.s32.totalorder %s3088_s28, 2 }
 0x31e   : > { %p2860_p8 = pnand %p2863_p7, %p3200_p9 }
 0x322   : > { %s2566_s19 = sand.u32 1, %s6302_s21  }
 0x323   : > { %s2567_s23 = scalar_lea.sflag [#allocation5], %s2566_s19 }
 0x324   : > { %3055 = dma.done.wait (!%p2860_p8), %s2567_s23, 256  }
 0x325   : > { %3057 = vsyncadd (!%p2860_p8), %s2567_s23, 4294967040  ;;  %s19_s28 = sadd.s32 1, %s3088_s28   ;;  %s6304_s7 = sld [smem:[#allocation8_spill]] }
 0x326   : > { %p16_p10 = scmp.ge.s32.totalorder %s19_s28, 6   ;;  %s6305_s23 = sld [smem:[#allocation14_spill]] }
 0x327   : > { %s6306_s24 = sld [smem:[#allocation9_spill]]  ;;  %s6307_s25 = sld [smem:[#allocation10_spill]] }
 0x328   : > { %s6308_s26 = sld [smem:[#allocation11_spill]]  ;;  %s6309_s27 = sld [smem:[#allocation12_spill]] }
 0x329   : > { %s6310_s21 = smov %s3064_s22  ;;  %18 = sbr.rel (!%p16_p10) target bundleno = 5 (0x5), region = 99 }
 0x32b   : > { %s6311_s22 = smov %s6304_s7 }
 0x330   :  { %2572 = vsyncpa [#allocation5], 1 }
 0x331   :  { %2574 = vsyncpa [#allocation5 + $0x1], 1 }

</bundles_post_ra>
